<compile_context>
chip_gen: v5e
topology: v5e:2x2
jax: 0.10.0
libtpu: 0.0.40
codegen_flags: <defaults>
</compile_context>

<pallas_src>
import functools

import jax
import jax.numpy as jnp
import numpy as np
from jax.experimental import pallas as pl
from jax.experimental.pallas import tpu as pltpu

KERNEL_K = 3
STRIDE = 2
PAD = 1
CHANNEL = 32
N_CONV = 4
HEAD_W = 128  # lane-dense packed head output width (logits | v | logp_a | 0-pad)


# ----------------------------------------------------------------------------
# Static shape bookkeeping
# ----------------------------------------------------------------------------
def _conv_out(s):
    return (s + 2 * PAD - KERNEL_K) // STRIDE + 1


def layer_shapes(in_channels, H, W):
    """Per conv layer: (Cin, Hin, Win, Cout, Hout, Wout)."""
    shapes = []
    c, h, w = in_channels, H, W
    for _ in range(N_CONV):
        ho, wo = _conv_out(h), _conv_out(w)
        shapes.append((c, h, w, CHANNEL, ho, wo))
        c, h, w = CHANNEL, ho, wo
    return shapes


def _const_map(rank):
    def idx(*_):
        return (0,) * rank
    return idx


# ----------------------------------------------------------------------------
# Fused Pallas kernel (entire forward pass, one sample per grid step)
# ----------------------------------------------------------------------------
def make_fused_kernel(shapes, act_dim, hid):
    n_layers = len(shapes)

    def kernel(act_sref, x_ref, *refs):
        # refs = [wc0, bc0, ..., wc3, bc3, w1, b1, wh, bh, out, scr0, scr1, scr2]
        wc = [refs[2 * l] for l in range(n_layers)]
        bc = [refs[2 * l + 1] for l in range(n_layers)]
        base = 2 * n_layers
        w1_ref, b1_ref, wh_ref, bh_ref, out_ref = refs[base:base + 5]
        act_scr = refs[base + 5:]

        b = pl.program_id(0)
        trunk_pre = jnp.zeros((1, hid), jnp.float32)

        # --- conv stack: each output row = sum of 3 row-Toeplitz matmuls -----
        for l, (cin, hin, win, cout, hout, wout) in enumerate(shapes):
            src = x_ref if l == 0 else act_scr[l - 1]
            last = (l == n_layers - 1)
            for ho in range(hout):
                acc = bc[l][...]                              # (1, wout*cout) f32
                for i in range(KERNEL_K):
                    r = STRIDE * ho + i - PAD                 # input row (static)
                    if 0 <= r < hin:                          # zero-pad rows skipped
                        row = src[pl.ds(r, 1), :]             # (1, win*cin) bf16
                        acc = acc + jnp.dot(
                            row, wc[l][i],
                            preferred_element_type=jnp.float32)
                row_out = jnp.maximum(acc, 0.0)               # bias+ReLU in f32
                if not last:
                    act_scr[l][pl.ds(ho, 1), :] = row_out.astype(act_scr[l].dtype)
                else:
                    # fold the flatten + trunk Linear accumulation in here
                    w1_slab = w1_ref[ho * wout * cout:(ho + 1) * wout * cout, :]
                    trunk_pre = trunk_pre + jnp.dot(
                        row_out.astype(jnp.bfloat16), w1_slab,
                        preferred_element_type=jnp.float32)

        # --- shared trunk Linear + ReLU --------------------------------------
        h = jnp.maximum(trunk_pre + b1_ref[...], 0.0)         # (1, hid) f32

        # --- merged logits+value head (lane-dense, one MXU matmul) -----------
        head = jnp.dot(h.astype(jnp.bfloat16), wh_ref[...],
                       preferred_element_type=jnp.float32) + bh_ref[...]  # (1,128)

        col = jax.lax.broadcasted_iota(jnp.int32, (1, HEAD_W), 1)
        valid = col < act_dim
        masked = jnp.where(valid, head, jnp.full_like(head, -1e30))
        m = jnp.max(masked, axis=-1, keepdims=True)
        ex = jnp.where(valid, jnp.exp(masked - m), 0.0)
        lse = m + jnp.log(jnp.sum(ex, axis=-1, keepdims=True))

        a = act_sref[b]                                       # scalar from SMEM
        logp_a = jnp.sum(jnp.where(col == a, head - lse, 0.0),
                         axis=-1, keepdims=True)              # (1, 1)

        # packed row: [0:A) = logits, A = value, A+1 = logp_a, rest = 0
        packed = jnp.where(col == act_dim + 1, logp_a, head)
        out_ref[...] = packed

    return kernel


# ----------------------------------------------------------------------------
# Forward wrapper (single pallas_call)
# ----------------------------------------------------------------------------
def forward(kparams, obs, act, *, act_dim):
    """obs: (N, C, H, W) f32 NCHW, act: (N,) int32.

    Returns (logits, logp_a, v) matching CNNCategoricalActorCritic.
    """
    N, C, H, W = obs.shape
    shapes = layer_shapes(C, H, W)
    hid = kparams["b1"].shape[1]

    # one-time input prep (tiny XLA ops): NCHW -> NHWC -> lane-flatten -> bf16
    x = jnp.transpose(obs, (0, 2, 3, 1)).reshape(N, H, W * C).astype(jnp.bfloat16)

    kernel = make_fused_kernel(shapes, act_dim, hid)

    in_specs = [pl.BlockSpec((None, H, W * C), lambda b, *_: (b, 0, 0))]
    inputs = [x]
    for l in range(len(shapes)):
        wcl = kparams["conv_w"][l]   # (3, Win*Cin, Wout*Cout) bf16
        bcl = kparams["conv_b"][l]   # (1, Wout*Cout) f32
        in_specs.append(pl.BlockSpec(wcl.shape, _const_map(wcl.ndim)))
        in_specs.append(pl.BlockSpec(bcl.shape, _const_map(bcl.ndim)))
        inputs += [wcl, bcl]
    for name in ("w1", "b1", "wh", "bh"):
        arr = kparams[name]
        in_specs.append(pl.BlockSpec(arr.shape, _const_map(arr.ndim)))
        inputs.append(arr)

    # per-sample intermediate activations stay in VMEM scratch (bf16)
    scratch = [pltpu.VMEM((s[4], s[5] * s[3]), jnp.bfloat16) for s in shapes[:-1]]

    grid_spec = pltpu.PrefetchScalarGridSpec(
        num_scalar_prefetch=1,              # actions -> SMEM
        grid=(N,),
        in_specs=in_specs,
        out_specs=pl.BlockSpec((None, 1, HEAD_W), lambda b, *_: (b, 0, 0)),
        scratch_shapes=scratch,
    )

    packed = pl.pallas_call(
        kernel,
        out_shape=jax.ShapeDtypeStruct((N, 1, HEAD_W), jnp.float32),
        grid_spec=grid_spec,
        compiler_params=pltpu.CompilerParams(
            dimension_semantics=("parallel",)),
    )(act.astype(jnp.int32), *inputs)

    packed = packed[:, 0, :]
    logits = packed[:, :act_dim]
    v = packed[:, act_dim]
    logp_a = packed[:, act_dim + 1]
    return logits, logp_a, v


# ----------------------------------------------------------------------------
# Parameters: PyTorch layout for the reference + kernel-format conversion
# ----------------------------------------------------------------------------
def init_params(key, in_channels, height, width, act_dim):
    shapes = layer_shapes(in_channels, height, width)
    _, _, _, cout4, h4, w4 = shapes[-1]
    obs_dim = cout4 * h4 * w4
    hid = obs_dim // 2

    params = {"conv": [], "obs_dim": obs_dim, "hid": hid}
    keys = jax.random.split(key, 2 * len(shapes) + 6)
    ki = 0
    for (cin, _, _, cout, _, _) in shapes:
        w = 0.1 * jax.random.normal(keys[ki], (cout, cin, KERNEL_K, KERNEL_K),
                                    jnp.float32); ki += 1
        b = 0.1 * jax.random.normal(keys[ki], (cout,), jnp.float32); ki += 1
        params["conv"].append((w, b))
    params["w1"] = 0.1 * jax.random.normal(keys[ki], (obs_dim, hid), jnp.float32); ki += 1
    params["b1"] = 0.1 * jax.random.normal(keys[ki], (hid,), jnp.float32); ki += 1
    params["wl"] = 0.1 * jax.random.normal(keys[ki], (hid, act_dim), jnp.float32); ki += 1
    params["bl"] = 0.1 * jax.random.normal(keys[ki], (act_dim,), jnp.float32); ki += 1
    params["wv"] = 0.1 * jax.random.normal(keys[ki], (hid, 1), jnp.float32); ki += 1
    params["bv"] = 0.1 * jax.random.normal(keys[ki], (1,), jnp.float32); ki += 1
    return params


def prepare_kernel_params(params, in_channels, height, width, act_dim):
    """Host-side (NumPy) conversion of PyTorch-layout weights to kernel format."""
    assert act_dim + 2 <= HEAD_W
    shapes = layer_shapes(in_channels, height, width)
    hid = params["hid"]
    kp = {"conv_w": [], "conv_b": []}

    # conv weights -> per-row block-Toeplitz matrices ("im2col" folded into W)
    for l, (cin, hin, win, cout, hout, wout) in enumerate(shapes):
        w, b = params["conv"][l]
        w = np.asarray(w, np.float32)                 # (cout, cin, 3, 3)
        big = np.zeros((KERNEL_K, win * cin, wout * cout), np.float32)
        for i in range(KERNEL_K):
            for wo in range(wout):
                for j in range(KERNEL_K):
                    wcol = STRIDE * wo + j - PAD      # input column (unpadded)
                    if 0 <= wcol < win:
                        big[i,
                            wcol * cin:(wcol + 1) * cin,
                            wo * cout:(wo + 1) * cout] = w[:, :, i, j].T
        kp["conv_w"].append(jnp.asarray(big, jnp.bfloat16))
        bias_flat = np.tile(np.asarray(b, np.float32), wout).reshape(1, wout * cout)
        kp["conv_b"].append(jnp.asarray(bias_flat, jnp.float32))

    # trunk Linear: permute rows from NCHW-flatten (c,h,w) to NHWC-flatten (h,w,c)
    _, _, _, cout4, h4, w4 = shapes[-1]
    w1 = np.asarray(params["w1"], np.float32)         # (obs_dim, hid)
    w1p = (w1.reshape(cout4, h4, w4, hid)
             .transpose(1, 2, 0, 3)
             .reshape(h4 * w4 * cout4, hid))
    kp["w1"] = jnp.asarray(w1p, jnp.bfloat16)
    kp["b1"] = jnp.asarray(np.asarray(params["b1"], np.float32).reshape(1, hid))

    # merged logits+value head, zero-padded to a lane-dense width of 128
    wl = np.asarray(params["wl"], np.float32)
    bl = np.asarray(params["bl"], np.float32).reshape(act_dim)
    wv = np.asarray(params["wv"], np.float32).reshape(hid)
    bv = float(np.asarray(params["bv"]).reshape(()))
    wh = np.zeros((hid, HEAD_W), np.float32)
    wh[:, :act_dim] = wl
    wh[:, act_dim] = wv
    bh = np.zeros((1, HEAD_W), np.float32)
    bh[0, :act_dim] = bl
    bh[0, act_dim] = bv
    kp["wh"] = jnp.asarray(wh, jnp.bfloat16)
    kp["bh"] = jnp.asarray(bh, jnp.float32)
    return kp


# ----------------------------------------------------------------------------
# Pure-JAX reference (correctness sanity check)
# ----------------------------------------------------------------------------
def forward_ref(params, obs, act):
    x = obs
    for (w, b) in params["conv"]:
        x = jax.lax.conv_general_dilated(
            x, w, window_strides=(STRIDE, STRIDE),
            padding=((PAD, PAD), (PAD, PAD)),
            dimension_numbers=("NCHW", "OIHW", "NCHW"))
        x = jax.nn.relu(x + b.reshape(1, -1, 1, 1))
    flat = x.reshape(x.shape[0], -1)
    h = jax.nn.relu(flat @ params["w1"] + params["b1"])
    logits = h @ params["wl"] + params["bl"]
    v = (h @ params["wv"] + params["bv"])[:, 0]
    logp = jax.nn.log_softmax(logits, axis=-1)
    logp_a = jnp.take_along_axis(logp, act[:, None], axis=-1)[:, 0]
    return logits, logp_a, v


# ----------------------------------------------------------------------------
if __name__ == "__main__":
    key = jax.random.PRNGKey(0)
    k_obs, k_act, k_par = jax.random.split(key, 3)

    batch, in_channels, height, width = 2, 4, 16, 16
    act_dim = 6

    obs = jax.random.normal(k_obs, (batch, in_channels, height, width), jnp.float32)
    act = jax.random.randint(k_act, (batch,), 0, act_dim, jnp.int32)

    params = init_params(k_par, in_channels, height, width, act_dim)
    kparams = prepare_kernel_params(params, in_channels, height, width, act_dim)

    fwd = jax.jit(functools.partial(forward, act_dim=act_dim))
    logits, logp_a, v = fwd(kparams, obs, act)
    jax.block_until_ready((logits, logp_a, v))

    # sanity check against the f32 pure-JAX reference (bf16 MXU -> loose tol)
    logits_r, logp_r, v_r = forward_ref(params, obs, act)
    np.testing.assert_allclose(np.asarray(logits), np.asarray(logits_r),
                               rtol=5e-2, atol=5e-2)
    np.testing.assert_allclose(np.asarray(logp_a), np.asarray(logp_r),
                               rtol=5e-2, atol=5e-2)
    np.testing.assert_allclose(np.asarray(v), np.asarray(v_r),
                               rtol=5e-2, atol=5e-2)

    print("KERNEL_OK")
</pallas_src>

<mosaic_0001>
module attributes {stable_mosaic.version = 11 : i64} {
  func.func @kernel(%arg0: i32, %arg1: memref<2xi32, #tpu.memory_space<smem>>, %arg2: memref<1x16x64xbf16, #tpu.memory_space<vmem>>, %arg3: memref<3x64x256xbf16, #tpu.memory_space<vmem>>, %arg4: memref<1x256xf32, #tpu.memory_space<vmem>>, %arg5: memref<3x256x128xbf16, #tpu.memory_space<vmem>>, %arg6: memref<1x128xf32, #tpu.memory_space<vmem>>, %arg7: memref<3x128x64xbf16, #tpu.memory_space<vmem>>, %arg8: memref<1x64xf32, #tpu.memory_space<vmem>>, %arg9: memref<3x64x32xbf16, #tpu.memory_space<vmem>>, %arg10: memref<1x32xf32, #tpu.memory_space<vmem>>, %arg11: memref<32x16xbf16, #tpu.memory_space<vmem>>, %arg12: memref<1x16xf32, #tpu.memory_space<vmem>>, %arg13: memref<16x128xbf16, #tpu.memory_space<vmem>>, %arg14: memref<1x128xf32, #tpu.memory_space<vmem>>, %arg15: memref<1x1x128xf32, #tpu.memory_space<vmem>>, %arg16: memref<8x256xbf16, #tpu.memory_space<vmem>>, %arg17: memref<4x128xbf16, #tpu.memory_space<vmem>>, %arg18: memref<2x64xbf16, #tpu.memory_space<vmem>>) attributes {dimension_semantics = [#tpu.dimension_semantics<parallel>], iteration_bounds = array<i64: 2>, scalar_prefetch = 1 : i64, scratch_operands = 3 : i64, tpu.core_type = #tpu.core_type<tc>, window_params = [{transform_indices = @transform_0, window_bounds = array<i64: 1, 16, 64>}, {pipeline_mode = #tpu.pipeline_mode<synchronous>, transform_indices = @transform_1, window_bounds = array<i64: 3, 64, 256>}, {pipeline_mode = #tpu.pipeline_mode<synchronous>, transform_indices = @transform_2, window_bounds = array<i64: 1, 256>}, {pipeline_mode = #tpu.pipeline_mode<synchronous>, transform_indices = @transform_3, window_bounds = array<i64: 3, 256, 128>}, {pipeline_mode = #tpu.pipeline_mode<synchronous>, transform_indices = @transform_4, window_bounds = array<i64: 1, 128>}, {pipeline_mode = #tpu.pipeline_mode<synchronous>, transform_indices = @transform_5, window_bounds = array<i64: 3, 128, 64>}, {pipeline_mode = #tpu.pipeline_mode<synchronous>, transform_indices = @transform_6, window_bounds = array<i64: 1, 64>}, {pipeline_mode = #tpu.pipeline_mode<synchronous>, transform_indices = @transform_7, window_bounds = array<i64: 3, 64, 32>}, {pipeline_mode = #tpu.pipeline_mode<synchronous>, transform_indices = @transform_8, window_bounds = array<i64: 1, 32>}, {pipeline_mode = #tpu.pipeline_mode<synchronous>, transform_indices = @transform_9, window_bounds = array<i64: 32, 16>}, {pipeline_mode = #tpu.pipeline_mode<synchronous>, transform_indices = @transform_10, window_bounds = array<i64: 1, 16>}, {pipeline_mode = #tpu.pipeline_mode<synchronous>, transform_indices = @transform_11, window_bounds = array<i64: 16, 128>}, {pipeline_mode = #tpu.pipeline_mode<synchronous>, transform_indices = @transform_12, window_bounds = array<i64: 1, 128>}, {transform_indices = @transform_13, window_bounds = array<i64: 1, 1, 128>}]} {
    %cst = arith.constant 0.000000e+00 : f32
    %0 = vector.broadcast %cst : f32 to vector<1x16xf32>
    %c0 = arith.constant 0 : index
    %c0_0 = arith.constant 0 : index
    %1 = vector.load %arg4[%c0, %c0_0] : memref<1x256xf32, #tpu.memory_space<vmem>>, vector<1x256xf32>
    %c0_1 = arith.constant 0 : index
    %c0_2 = arith.constant 0 : index
    %c0_3 = arith.constant 0 : index
    %2 = vector.load %arg2[%c0_1, %c0_2, %c0_3] : memref<1x16x64xbf16, #tpu.memory_space<vmem>>, vector<1x1x64xbf16>
    %3 = vector.shape_cast %2 : vector<1x1x64xbf16> to vector<1x64xbf16>
    %c1 = arith.constant 1 : index
    %c0_4 = arith.constant 0 : index
    %c0_5 = arith.constant 0 : index
    %4 = vector.load %arg3[%c1, %c0_4, %c0_5] : memref<3x64x256xbf16, #tpu.memory_space<vmem>>, vector<1x64x256xbf16>
    %5 = vector.shape_cast %4 : vector<1x64x256xbf16> to vector<64x256xbf16>
    %cst_6 = arith.constant dense<0.000000e+00> : vector<1x256xf32>
    %6 = tpu.matmul %3, %5, %cst_6 {dimension_numbers = #tpu.dot_dimension_numbers<[1], [0], [0], [1], [0, 0, 1, 1], [], []>} : vector<1x64xbf16>, vector<64x256xbf16>, vector<1x256xf32> -> vector<1x256xf32>
    %7 = arith.addf %1, %6 : vector<1x256xf32>
    %c0_7 = arith.constant 0 : index
    %c1_8 = arith.constant 1 : index
    %c0_9 = arith.constant 0 : index
    %8 = vector.load %arg2[%c0_7, %c1_8, %c0_9] : memref<1x16x64xbf16, #tpu.memory_space<vmem>>, vector<1x1x64xbf16>
    %9 = vector.shape_cast %8 : vector<1x1x64xbf16> to vector<1x64xbf16>
    %c2 = arith.constant 2 : index
    %c0_10 = arith.constant 0 : index
    %c0_11 = arith.constant 0 : index
    %10 = vector.load %arg3[%c2, %c0_10, %c0_11] : memref<3x64x256xbf16, #tpu.memory_space<vmem>>, vector<1x64x256xbf16>
    %11 = vector.shape_cast %10 : vector<1x64x256xbf16> to vector<64x256xbf16>
    %cst_12 = arith.constant dense<0.000000e+00> : vector<1x256xf32>
    %12 = tpu.matmul %9, %11, %cst_12 {dimension_numbers = #tpu.dot_dimension_numbers<[1], [0], [0], [1], [0, 0, 1, 1], [], []>} : vector<1x64xbf16>, vector<64x256xbf16>, vector<1x256xf32> -> vector<1x256xf32>
    %13 = arith.addf %7, %12 : vector<1x256xf32>
    %cst_13 = arith.constant 0.000000e+00 : f32
    %14 = vector.broadcast %cst_13 : f32 to vector<1x256xf32>
    %15 = arith.maximumf %13, %14 : vector<1x256xf32>
    %16 = arith.truncf %15 : vector<1x256xf32> to vector<1x256xbf16>
    %c0_14 = arith.constant 0 : index
    %c0_15 = arith.constant 0 : index
    %17 = vector.load %arg16[%c0_14, %c0_15] : memref<8x256xbf16, #tpu.memory_space<vmem>>, vector<1x256xbf16>
    tpu.vector_store %arg16[%c0_14, %c0_15], %16 {strides = array<i32>} : memref<8x256xbf16, #tpu.memory_space<vmem>>, vector<1x256xbf16>,
    %c0_16 = arith.constant 0 : index
    %c0_17 = arith.constant 0 : index
    %18 = vector.load %arg4[%c0_16, %c0_17] : memref<1x256xf32, #tpu.memory_space<vmem>>, vector<1x256xf32>
    %c0_18 = arith.constant 0 : index
    %c1_19 = arith.constant 1 : index
    %c0_20 = arith.constant 0 : index
    %19 = vector.load %arg2[%c0_18, %c1_19, %c0_20] : memref<1x16x64xbf16, #tpu.memory_space<vmem>>, vector<1x1x64xbf16>
    %20 = vector.shape_cast %19 : vector<1x1x64xbf16> to vector<1x64xbf16>
    %c0_21 = arith.constant 0 : index
    %c0_22 = arith.constant 0 : index
    %c0_23 = arith.constant 0 : index
    %21 = vector.load %arg3[%c0_21, %c0_22, %c0_23] : memref<3x64x256xbf16, #tpu.memory_space<vmem>>, vector<1x64x256xbf16>
    %22 = vector.shape_cast %21 : vector<1x64x256xbf16> to vector<64x256xbf16>
    %cst_24 = arith.constant dense<0.000000e+00> : vector<1x256xf32>
    %23 = tpu.matmul %20, %22, %cst_24 {dimension_numbers = #tpu.dot_dimension_numbers<[1], [0], [0], [1], [0, 0, 1, 1], [], []>} : vector<1x64xbf16>, vector<64x256xbf16>, vector<1x256xf32> -> vector<1x256xf32>
    %24 = arith.addf %18, %23 : vector<1x256xf32>
    %c0_25 = arith.constant 0 : index
    %c2_26 = arith.constant 2 : index
    %c0_27 = arith.constant 0 : index
    %25 = vector.load %arg2[%c0_25, %c2_26, %c0_27] : memref<1x16x64xbf16, #tpu.memory_space<vmem>>, vector<1x1x64xbf16>
    %26 = vector.shape_cast %25 : vector<1x1x64xbf16> to vector<1x64xbf16>
    %c1_28 = arith.constant 1 : index
    %c0_29 = arith.constant 0 : index
    %c0_30 = arith.constant 0 : index
    %27 = vector.load %arg3[%c1_28, %c0_29, %c0_30] : memref<3x64x256xbf16, #tpu.memory_space<vmem>>, vector<1x64x256xbf16>
    %28 = vector.shape_cast %27 : vector<1x64x256xbf16> to vector<64x256xbf16>
    %cst_31 = arith.constant dense<0.000000e+00> : vector<1x256xf32>
    %29 = tpu.matmul %26, %28, %cst_31 {dimension_numbers = #tpu.dot_dimension_numbers<[1], [0], [0], [1], [0, 0, 1, 1], [], []>} : vector<1x64xbf16>, vector<64x256xbf16>, vector<1x256xf32> -> vector<1x256xf32>
    %30 = arith.addf %24, %29 : vector<1x256xf32>
    %c0_32 = arith.constant 0 : index
    %c3 = arith.constant 3 : index
    %c0_33 = arith.constant 0 : index
    %31 = vector.load %arg2[%c0_32, %c3, %c0_33] : memref<1x16x64xbf16, #tpu.memory_space<vmem>>, vector<1x1x64xbf16>
    %32 = vector.shape_cast %31 : vector<1x1x64xbf16> to vector<1x64xbf16>
    %c2_34 = arith.constant 2 : index
    %c0_35 = arith.constant 0 : index
    %c0_36 = arith.constant 0 : index
    %33 = vector.load %arg3[%c2_34, %c0_35, %c0_36] : memref<3x64x256xbf16, #tpu.memory_space<vmem>>, vector<1x64x256xbf16>
    %34 = vector.shape_cast %33 : vector<1x64x256xbf16> to vector<64x256xbf16>
    %cst_37 = arith.constant dense<0.000000e+00> : vector<1x256xf32>
    %35 = tpu.matmul %32, %34, %cst_37 {dimension_numbers = #tpu.dot_dimension_numbers<[1], [0], [0], [1], [0, 0, 1, 1], [], []>} : vector<1x64xbf16>, vector<64x256xbf16>, vector<1x256xf32> -> vector<1x256xf32>
    %36 = arith.addf %30, %35 : vector<1x256xf32>
    %cst_38 = arith.constant 0.000000e+00 : f32
    %37 = vector.broadcast %cst_38 : f32 to vector<1x256xf32>
    %38 = arith.maximumf %36, %37 : vector<1x256xf32>
    %39 = arith.truncf %38 : vector<1x256xf32> to vector<1x256xbf16>
    %c1_39 = arith.constant 1 : index
    %c0_40 = arith.constant 0 : index
    %40 = vector.load %arg16[%c1_39, %c0_40] : memref<8x256xbf16, #tpu.memory_space<vmem>>, vector<1x256xbf16>
    tpu.vector_store %arg16[%c1_39, %c0_40], %39 {strides = array<i32>} : memref<8x256xbf16, #tpu.memory_space<vmem>>, vector<1x256xbf16>,
    %c0_41 = arith.constant 0 : index
    %c0_42 = arith.constant 0 : index
    %41 = vector.load %arg4[%c0_41, %c0_42] : memref<1x256xf32, #tpu.memory_space<vmem>>, vector<1x256xf32>
    %c0_43 = arith.constant 0 : index
    %c3_44 = arith.constant 3 : index
    %c0_45 = arith.constant 0 : index
    %42 = vector.load %arg2[%c0_43, %c3_44, %c0_45] : memref<1x16x64xbf16, #tpu.memory_space<vmem>>, vector<1x1x64xbf16>
    %43 = vector.shape_cast %42 : vector<1x1x64xbf16> to vector<1x64xbf16>
    %c0_46 = arith.constant 0 : index
    %c0_47 = arith.constant 0 : index
    %c0_48 = arith.constant 0 : index
    %44 = vector.load %arg3[%c0_46, %c0_47, %c0_48] : memref<3x64x256xbf16, #tpu.memory_space<vmem>>, vector<1x64x256xbf16>
    %45 = vector.shape_cast %44 : vector<1x64x256xbf16> to vector<64x256xbf16>
    %cst_49 = arith.constant dense<0.000000e+00> : vector<1x256xf32>
    %46 = tpu.matmul %43, %45, %cst_49 {dimension_numbers = #tpu.dot_dimension_numbers<[1], [0], [0], [1], [0, 0, 1, 1], [], []>} : vector<1x64xbf16>, vector<64x256xbf16>, vector<1x256xf32> -> vector<1x256xf32>
    %47 = arith.addf %41, %46 : vector<1x256xf32>
    %c0_50 = arith.constant 0 : index
    %c4 = arith.constant 4 : index
    %c0_51 = arith.constant 0 : index
    %48 = vector.load %arg2[%c0_50, %c4, %c0_51] : memref<1x16x64xbf16, #tpu.memory_space<vmem>>, vector<1x1x64xbf16>
    %49 = vector.shape_cast %48 : vector<1x1x64xbf16> to vector<1x64xbf16>
    %c1_52 = arith.constant 1 : index
    %c0_53 = arith.constant 0 : index
    %c0_54 = arith.constant 0 : index
    %50 = vector.load %arg3[%c1_52, %c0_53, %c0_54] : memref<3x64x256xbf16, #tpu.memory_space<vmem>>, vector<1x64x256xbf16>
    %51 = vector.shape_cast %50 : vector<1x64x256xbf16> to vector<64x256xbf16>
    %cst_55 = arith.constant dense<0.000000e+00> : vector<1x256xf32>
    %52 = tpu.matmul %49, %51, %cst_55 {dimension_numbers = #tpu.dot_dimension_numbers<[1], [0], [0], [1], [0, 0, 1, 1], [], []>} : vector<1x64xbf16>, vector<64x256xbf16>, vector<1x256xf32> -> vector<1x256xf32>
    %53 = arith.addf %47, %52 : vector<1x256xf32>
    %c0_56 = arith.constant 0 : index
    %c5 = arith.constant 5 : index
    %c0_57 = arith.constant 0 : index
    %54 = vector.load %arg2[%c0_56, %c5, %c0_57] : memref<1x16x64xbf16, #tpu.memory_space<vmem>>, vector<1x1x64xbf16>
    %55 = vector.shape_cast %54 : vector<1x1x64xbf16> to vector<1x64xbf16>
    %c2_58 = arith.constant 2 : index
    %c0_59 = arith.constant 0 : index
    %c0_60 = arith.constant 0 : index
    %56 = vector.load %arg3[%c2_58, %c0_59, %c0_60] : memref<3x64x256xbf16, #tpu.memory_space<vmem>>, vector<1x64x256xbf16>
    %57 = vector.shape_cast %56 : vector<1x64x256xbf16> to vector<64x256xbf16>
    %cst_61 = arith.constant dense<0.000000e+00> : vector<1x256xf32>
    %58 = tpu.matmul %55, %57, %cst_61 {dimension_numbers = #tpu.dot_dimension_numbers<[1], [0], [0], [1], [0, 0, 1, 1], [], []>} : vector<1x64xbf16>, vector<64x256xbf16>, vector<1x256xf32> -> vector<1x256xf32>
    %59 = arith.addf %53, %58 : vector<1x256xf32>
    %cst_62 = arith.constant 0.000000e+00 : f32
    %60 = vector.broadcast %cst_62 : f32 to vector<1x256xf32>
    %61 = arith.maximumf %59, %60 : vector<1x256xf32>
    %62 = arith.truncf %61 : vector<1x256xf32> to vector<1x256xbf16>
    %c2_63 = arith.constant 2 : index
    %c0_64 = arith.constant 0 : index
    %63 = vector.load %arg16[%c2_63, %c0_64] : memref<8x256xbf16, #tpu.memory_space<vmem>>, vector<1x256xbf16>
    tpu.vector_store %arg16[%c2_63, %c0_64], %62 {strides = array<i32>} : memref<8x256xbf16, #tpu.memory_space<vmem>>, vector<1x256xbf16>,
    %c0_65 = arith.constant 0 : index
    %c0_66 = arith.constant 0 : index
    %64 = vector.load %arg4[%c0_65, %c0_66] : memref<1x256xf32, #tpu.memory_space<vmem>>, vector<1x256xf32>
    %c0_67 = arith.constant 0 : index
    %c5_68 = arith.constant 5 : index
    %c0_69 = arith.constant 0 : index
    %65 = vector.load %arg2[%c0_67, %c5_68, %c0_69] : memref<1x16x64xbf16, #tpu.memory_space<vmem>>, vector<1x1x64xbf16>
    %66 = vector.shape_cast %65 : vector<1x1x64xbf16> to vector<1x64xbf16>
    %c0_70 = arith.constant 0 : index
    %c0_71 = arith.constant 0 : index
    %c0_72 = arith.constant 0 : index
    %67 = vector.load %arg3[%c0_70, %c0_71, %c0_72] : memref<3x64x256xbf16, #tpu.memory_space<vmem>>, vector<1x64x256xbf16>
    %68 = vector.shape_cast %67 : vector<1x64x256xbf16> to vector<64x256xbf16>
    %cst_73 = arith.constant dense<0.000000e+00> : vector<1x256xf32>
    %69 = tpu.matmul %66, %68, %cst_73 {dimension_numbers = #tpu.dot_dimension_numbers<[1], [0], [0], [1], [0, 0, 1, 1], [], []>} : vector<1x64xbf16>, vector<64x256xbf16>, vector<1x256xf32> -> vector<1x256xf32>
    %70 = arith.addf %64, %69 : vector<1x256xf32>
    %c0_74 = arith.constant 0 : index
    %c6 = arith.constant 6 : index
    %c0_75 = arith.constant 0 : index
    %71 = vector.load %arg2[%c0_74, %c6, %c0_75] : memref<1x16x64xbf16, #tpu.memory_space<vmem>>, vector<1x1x64xbf16>
    %72 = vector.shape_cast %71 : vector<1x1x64xbf16> to vector<1x64xbf16>
    %c1_76 = arith.constant 1 : index
    %c0_77 = arith.constant 0 : index
    %c0_78 = arith.constant 0 : index
    %73 = vector.load %arg3[%c1_76, %c0_77, %c0_78] : memref<3x64x256xbf16, #tpu.memory_space<vmem>>, vector<1x64x256xbf16>
    %74 = vector.shape_cast %73 : vector<1x64x256xbf16> to vector<64x256xbf16>
    %cst_79 = arith.constant dense<0.000000e+00> : vector<1x256xf32>
    %75 = tpu.matmul %72, %74, %cst_79 {dimension_numbers = #tpu.dot_dimension_numbers<[1], [0], [0], [1], [0, 0, 1, 1], [], []>} : vector<1x64xbf16>, vector<64x256xbf16>, vector<1x256xf32> -> vector<1x256xf32>
    %76 = arith.addf %70, %75 : vector<1x256xf32>
    %c0_80 = arith.constant 0 : index
    %c7 = arith.constant 7 : index
    %c0_81 = arith.constant 0 : index
    %77 = vector.load %arg2[%c0_80, %c7, %c0_81] : memref<1x16x64xbf16, #tpu.memory_space<vmem>>, vector<1x1x64xbf16>
    %78 = vector.shape_cast %77 : vector<1x1x64xbf16> to vector<1x64xbf16>
    %c2_82 = arith.constant 2 : index
    %c0_83 = arith.constant 0 : index
    %c0_84 = arith.constant 0 : index
    %79 = vector.load %arg3[%c2_82, %c0_83, %c0_84] : memref<3x64x256xbf16, #tpu.memory_space<vmem>>, vector<1x64x256xbf16>
    %80 = vector.shape_cast %79 : vector<1x64x256xbf16> to vector<64x256xbf16>
    %cst_85 = arith.constant dense<0.000000e+00> : vector<1x256xf32>
    %81 = tpu.matmul %78, %80, %cst_85 {dimension_numbers = #tpu.dot_dimension_numbers<[1], [0], [0], [1], [0, 0, 1, 1], [], []>} : vector<1x64xbf16>, vector<64x256xbf16>, vector<1x256xf32> -> vector<1x256xf32>
    %82 = arith.addf %76, %81 : vector<1x256xf32>
    %cst_86 = arith.constant 0.000000e+00 : f32
    %83 = vector.broadcast %cst_86 : f32 to vector<1x256xf32>
    %84 = arith.maximumf %82, %83 : vector<1x256xf32>
    %85 = arith.truncf %84 : vector<1x256xf32> to vector<1x256xbf16>
    %c3_87 = arith.constant 3 : index
    %c0_88 = arith.constant 0 : index
    %86 = vector.load %arg16[%c3_87, %c0_88] : memref<8x256xbf16, #tpu.memory_space<vmem>>, vector<1x256xbf16>
    tpu.vector_store %arg16[%c3_87, %c0_88], %85 {strides = array<i32>} : memref<8x256xbf16, #tpu.memory_space<vmem>>, vector<1x256xbf16>,
    %c0_89 = arith.constant 0 : index
    %c0_90 = arith.constant 0 : index
    %87 = vector.load %arg4[%c0_89, %c0_90] : memref<1x256xf32, #tpu.memory_space<vmem>>, vector<1x256xf32>
    %c0_91 = arith.constant 0 : index
    %c7_92 = arith.constant 7 : index
    %c0_93 = arith.constant 0 : index
    %88 = vector.load %arg2[%c0_91, %c7_92, %c0_93] : memref<1x16x64xbf16, #tpu.memory_space<vmem>>, vector<1x1x64xbf16>
    %89 = vector.shape_cast %88 : vector<1x1x64xbf16> to vector<1x64xbf16>
    %c0_94 = arith.constant 0 : index
    %c0_95 = arith.constant 0 : index
    %c0_96 = arith.constant 0 : index
    %90 = vector.load %arg3[%c0_94, %c0_95, %c0_96] : memref<3x64x256xbf16, #tpu.memory_space<vmem>>, vector<1x64x256xbf16>
    %91 = vector.shape_cast %90 : vector<1x64x256xbf16> to vector<64x256xbf16>
    %cst_97 = arith.constant dense<0.000000e+00> : vector<1x256xf32>
    %92 = tpu.matmul %89, %91, %cst_97 {dimension_numbers = #tpu.dot_dimension_numbers<[1], [0], [0], [1], [0, 0, 1, 1], [], []>} : vector<1x64xbf16>, vector<64x256xbf16>, vector<1x256xf32> -> vector<1x256xf32>
    %93 = arith.addf %87, %92 : vector<1x256xf32>
    %c0_98 = arith.constant 0 : index
    %c8 = arith.constant 8 : index
    %c0_99 = arith.constant 0 : index
    %94 = vector.load %arg2[%c0_98, %c8, %c0_99] : memref<1x16x64xbf16, #tpu.memory_space<vmem>>, vector<1x1x64xbf16>
    %95 = vector.shape_cast %94 : vector<1x1x64xbf16> to vector<1x64xbf16>
    %c1_100 = arith.constant 1 : index
    %c0_101 = arith.constant 0 : index
    %c0_102 = arith.constant 0 : index
    %96 = vector.load %arg3[%c1_100, %c0_101, %c0_102] : memref<3x64x256xbf16, #tpu.memory_space<vmem>>, vector<1x64x256xbf16>
    %97 = vector.shape_cast %96 : vector<1x64x256xbf16> to vector<64x256xbf16>
    %cst_103 = arith.constant dense<0.000000e+00> : vector<1x256xf32>
    %98 = tpu.matmul %95, %97, %cst_103 {dimension_numbers = #tpu.dot_dimension_numbers<[1], [0], [0], [1], [0, 0, 1, 1], [], []>} : vector<1x64xbf16>, vector<64x256xbf16>, vector<1x256xf32> -> vector<1x256xf32>
    %99 = arith.addf %93, %98 : vector<1x256xf32>
    %c0_104 = arith.constant 0 : index
    %c9 = arith.constant 9 : index
    %c0_105 = arith.constant 0 : index
    %100 = vector.load %arg2[%c0_104, %c9, %c0_105] : memref<1x16x64xbf16, #tpu.memory_space<vmem>>, vector<1x1x64xbf16>
    %101 = vector.shape_cast %100 : vector<1x1x64xbf16> to vector<1x64xbf16>
    %c2_106 = arith.constant 2 : index
    %c0_107 = arith.constant 0 : index
    %c0_108 = arith.constant 0 : index
    %102 = vector.load %arg3[%c2_106, %c0_107, %c0_108] : memref<3x64x256xbf16, #tpu.memory_space<vmem>>, vector<1x64x256xbf16>
    %103 = vector.shape_cast %102 : vector<1x64x256xbf16> to vector<64x256xbf16>
    %cst_109 = arith.constant dense<0.000000e+00> : vector<1x256xf32>
    %104 = tpu.matmul %101, %103, %cst_109 {dimension_numbers = #tpu.dot_dimension_numbers<[1], [0], [0], [1], [0, 0, 1, 1], [], []>} : vector<1x64xbf16>, vector<64x256xbf16>, vector<1x256xf32> -> vector<1x256xf32>
    %105 = arith.addf %99, %104 : vector<1x256xf32>
    %cst_110 = arith.constant 0.000000e+00 : f32
    %106 = vector.broadcast %cst_110 : f32 to vector<1x256xf32>
    %107 = arith.maximumf %105, %106 : vector<1x256xf32>
    %108 = arith.truncf %107 : vector<1x256xf32> to vector<1x256xbf16>
    %c4_111 = arith.constant 4 : index
    %c0_112 = arith.constant 0 : index
    %109 = vector.load %arg16[%c4_111, %c0_112] : memref<8x256xbf16, #tpu.memory_space<vmem>>, vector<1x256xbf16>
    tpu.vector_store %arg16[%c4_111, %c0_112], %108 {strides = array<i32>} : memref<8x256xbf16, #tpu.memory_space<vmem>>, vector<1x256xbf16>,
    %c0_113 = arith.constant 0 : index
    %c0_114 = arith.constant 0 : index
    %110 = vector.load %arg4[%c0_113, %c0_114] : memref<1x256xf32, #tpu.memory_space<vmem>>, vector<1x256xf32>
    %c0_115 = arith.constant 0 : index
    %c9_116 = arith.constant 9 : index
    %c0_117 = arith.constant 0 : index
    %111 = vector.load %arg2[%c0_115, %c9_116, %c0_117] : memref<1x16x64xbf16, #tpu.memory_space<vmem>>, vector<1x1x64xbf16>
    %112 = vector.shape_cast %111 : vector<1x1x64xbf16> to vector<1x64xbf16>
    %c0_118 = arith.constant 0 : index
    %c0_119 = arith.constant 0 : index
    %c0_120 = arith.constant 0 : index
    %113 = vector.load %arg3[%c0_118, %c0_119, %c0_120] : memref<3x64x256xbf16, #tpu.memory_space<vmem>>, vector<1x64x256xbf16>
    %114 = vector.shape_cast %113 : vector<1x64x256xbf16> to vector<64x256xbf16>
    %cst_121 = arith.constant dense<0.000000e+00> : vector<1x256xf32>
    %115 = tpu.matmul %112, %114, %cst_121 {dimension_numbers = #tpu.dot_dimension_numbers<[1], [0], [0], [1], [0, 0, 1, 1], [], []>} : vector<1x64xbf16>, vector<64x256xbf16>, vector<1x256xf32> -> vector<1x256xf32>
    %116 = arith.addf %110, %115 : vector<1x256xf32>
    %c0_122 = arith.constant 0 : index
    %c10 = arith.constant 10 : index
    %c0_123 = arith.constant 0 : index
    %117 = vector.load %arg2[%c0_122, %c10, %c0_123] : memref<1x16x64xbf16, #tpu.memory_space<vmem>>, vector<1x1x64xbf16>
    %118 = vector.shape_cast %117 : vector<1x1x64xbf16> to vector<1x64xbf16>
    %c1_124 = arith.constant 1 : index
    %c0_125 = arith.constant 0 : index
    %c0_126 = arith.constant 0 : index
    %119 = vector.load %arg3[%c1_124, %c0_125, %c0_126] : memref<3x64x256xbf16, #tpu.memory_space<vmem>>, vector<1x64x256xbf16>
    %120 = vector.shape_cast %119 : vector<1x64x256xbf16> to vector<64x256xbf16>
    %cst_127 = arith.constant dense<0.000000e+00> : vector<1x256xf32>
    %121 = tpu.matmul %118, %120, %cst_127 {dimension_numbers = #tpu.dot_dimension_numbers<[1], [0], [0], [1], [0, 0, 1, 1], [], []>} : vector<1x64xbf16>, vector<64x256xbf16>, vector<1x256xf32> -> vector<1x256xf32>
    %122 = arith.addf %116, %121 : vector<1x256xf32>
    %c0_128 = arith.constant 0 : index
    %c11 = arith.constant 11 : index
    %c0_129 = arith.constant 0 : index
    %123 = vector.load %arg2[%c0_128, %c11, %c0_129] : memref<1x16x64xbf16, #tpu.memory_space<vmem>>, vector<1x1x64xbf16>
    %124 = vector.shape_cast %123 : vector<1x1x64xbf16> to vector<1x64xbf16>
    %c2_130 = arith.constant 2 : index
    %c0_131 = arith.constant 0 : index
    %c0_132 = arith.constant 0 : index
    %125 = vector.load %arg3[%c2_130, %c0_131, %c0_132] : memref<3x64x256xbf16, #tpu.memory_space<vmem>>, vector<1x64x256xbf16>
    %126 = vector.shape_cast %125 : vector<1x64x256xbf16> to vector<64x256xbf16>
    %cst_133 = arith.constant dense<0.000000e+00> : vector<1x256xf32>
    %127 = tpu.matmul %124, %126, %cst_133 {dimension_numbers = #tpu.dot_dimension_numbers<[1], [0], [0], [1], [0, 0, 1, 1], [], []>} : vector<1x64xbf16>, vector<64x256xbf16>, vector<1x256xf32> -> vector<1x256xf32>
    %128 = arith.addf %122, %127 : vector<1x256xf32>
    %cst_134 = arith.constant 0.000000e+00 : f32
    %129 = vector.broadcast %cst_134 : f32 to vector<1x256xf32>
    %130 = arith.maximumf %128, %129 : vector<1x256xf32>
    %131 = arith.truncf %130 : vector<1x256xf32> to vector<1x256xbf16>
    %c5_135 = arith.constant 5 : index
    %c0_136 = arith.constant 0 : index
    %132 = vector.load %arg16[%c5_135, %c0_136] : memref<8x256xbf16, #tpu.memory_space<vmem>>, vector<1x256xbf16>
    tpu.vector_store %arg16[%c5_135, %c0_136], %131 {strides = array<i32>} : memref<8x256xbf16, #tpu.memory_space<vmem>>, vector<1x256xbf16>,
    %c0_137 = arith.constant 0 : index
    %c0_138 = arith.constant 0 : index
    %133 = vector.load %arg4[%c0_137, %c0_138] : memref<1x256xf32, #tpu.memory_space<vmem>>, vector<1x256xf32>
    %c0_139 = arith.constant 0 : index
    %c11_140 = arith.constant 11 : index
    %c0_141 = arith.constant 0 : index
    %134 = vector.load %arg2[%c0_139, %c11_140, %c0_141] : memref<1x16x64xbf16, #tpu.memory_space<vmem>>, vector<1x1x64xbf16>
    %135 = vector.shape_cast %134 : vector<1x1x64xbf16> to vector<1x64xbf16>
    %c0_142 = arith.constant 0 : index
    %c0_143 = arith.constant 0 : index
    %c0_144 = arith.constant 0 : index
    %136 = vector.load %arg3[%c0_142, %c0_143, %c0_144] : memref<3x64x256xbf16, #tpu.memory_space<vmem>>, vector<1x64x256xbf16>
    %137 = vector.shape_cast %136 : vector<1x64x256xbf16> to vector<64x256xbf16>
    %cst_145 = arith.constant dense<0.000000e+00> : vector<1x256xf32>
    %138 = tpu.matmul %135, %137, %cst_145 {dimension_numbers = #tpu.dot_dimension_numbers<[1], [0], [0], [1], [0, 0, 1, 1], [], []>} : vector<1x64xbf16>, vector<64x256xbf16>, vector<1x256xf32> -> vector<1x256xf32>
    %139 = arith.addf %133, %138 : vector<1x256xf32>
    %c0_146 = arith.constant 0 : index
    %c12 = arith.constant 12 : index
    %c0_147 = arith.constant 0 : index
    %140 = vector.load %arg2[%c0_146, %c12, %c0_147] : memref<1x16x64xbf16, #tpu.memory_space<vmem>>, vector<1x1x64xbf16>
    %141 = vector.shape_cast %140 : vector<1x1x64xbf16> to vector<1x64xbf16>
    %c1_148 = arith.constant 1 : index
    %c0_149 = arith.constant 0 : index
    %c0_150 = arith.constant 0 : index
    %142 = vector.load %arg3[%c1_148, %c0_149, %c0_150] : memref<3x64x256xbf16, #tpu.memory_space<vmem>>, vector<1x64x256xbf16>
    %143 = vector.shape_cast %142 : vector<1x64x256xbf16> to vector<64x256xbf16>
    %cst_151 = arith.constant dense<0.000000e+00> : vector<1x256xf32>
    %144 = tpu.matmul %141, %143, %cst_151 {dimension_numbers = #tpu.dot_dimension_numbers<[1], [0], [0], [1], [0, 0, 1, 1], [], []>} : vector<1x64xbf16>, vector<64x256xbf16>, vector<1x256xf32> -> vector<1x256xf32>
    %145 = arith.addf %139, %144 : vector<1x256xf32>
    %c0_152 = arith.constant 0 : index
    %c13 = arith.constant 13 : index
    %c0_153 = arith.constant 0 : index
    %146 = vector.load %arg2[%c0_152, %c13, %c0_153] : memref<1x16x64xbf16, #tpu.memory_space<vmem>>, vector<1x1x64xbf16>
    %147 = vector.shape_cast %146 : vector<1x1x64xbf16> to vector<1x64xbf16>
    %c2_154 = arith.constant 2 : index
    %c0_155 = arith.constant 0 : index
    %c0_156 = arith.constant 0 : index
    %148 = vector.load %arg3[%c2_154, %c0_155, %c0_156] : memref<3x64x256xbf16, #tpu.memory_space<vmem>>, vector<1x64x256xbf16>
    %149 = vector.shape_cast %148 : vector<1x64x256xbf16> to vector<64x256xbf16>
    %cst_157 = arith.constant dense<0.000000e+00> : vector<1x256xf32>
    %150 = tpu.matmul %147, %149, %cst_157 {dimension_numbers = #tpu.dot_dimension_numbers<[1], [0], [0], [1], [0, 0, 1, 1], [], []>} : vector<1x64xbf16>, vector<64x256xbf16>, vector<1x256xf32> -> vector<1x256xf32>
    %151 = arith.addf %145, %150 : vector<1x256xf32>
    %cst_158 = arith.constant 0.000000e+00 : f32
    %152 = vector.broadcast %cst_158 : f32 to vector<1x256xf32>
    %153 = arith.maximumf %151, %152 : vector<1x256xf32>
    %154 = arith.truncf %153 : vector<1x256xf32> to vector<1x256xbf16>
    %c6_159 = arith.constant 6 : index
    %c0_160 = arith.constant 0 : index
    %155 = vector.load %arg16[%c6_159, %c0_160] : memref<8x256xbf16, #tpu.memory_space<vmem>>, vector<1x256xbf16>
    tpu.vector_store %arg16[%c6_159, %c0_160], %154 {strides = array<i32>} : memref<8x256xbf16, #tpu.memory_space<vmem>>, vector<1x256xbf16>,
    %c0_161 = arith.constant 0 : index
    %c0_162 = arith.constant 0 : index
    %156 = vector.load %arg4[%c0_161, %c0_162] : memref<1x256xf32, #tpu.memory_space<vmem>>, vector<1x256xf32>
    %c0_163 = arith.constant 0 : index
    %c13_164 = arith.constant 13 : index
    %c0_165 = arith.constant 0 : index
    %157 = vector.load %arg2[%c0_163, %c13_164, %c0_165] : memref<1x16x64xbf16, #tpu.memory_space<vmem>>, vector<1x1x64xbf16>
    %158 = vector.shape_cast %157 : vector<1x1x64xbf16> to vector<1x64xbf16>
    %c0_166 = arith.constant 0 : index
    %c0_167 = arith.constant 0 : index
    %c0_168 = arith.constant 0 : index
    %159 = vector.load %arg3[%c0_166, %c0_167, %c0_168] : memref<3x64x256xbf16, #tpu.memory_space<vmem>>, vector<1x64x256xbf16>
    %160 = vector.shape_cast %159 : vector<1x64x256xbf16> to vector<64x256xbf16>
    %cst_169 = arith.constant dense<0.000000e+00> : vector<1x256xf32>
    %161 = tpu.matmul %158, %160, %cst_169 {dimension_numbers = #tpu.dot_dimension_numbers<[1], [0], [0], [1], [0, 0, 1, 1], [], []>} : vector<1x64xbf16>, vector<64x256xbf16>, vector<1x256xf32> -> vector<1x256xf32>
    %162 = arith.addf %156, %161 : vector<1x256xf32>
    %c0_170 = arith.constant 0 : index
    %c14 = arith.constant 14 : index
    %c0_171 = arith.constant 0 : index
    %163 = vector.load %arg2[%c0_170, %c14, %c0_171] : memref<1x16x64xbf16, #tpu.memory_space<vmem>>, vector<1x1x64xbf16>
    %164 = vector.shape_cast %163 : vector<1x1x64xbf16> to vector<1x64xbf16>
    %c1_172 = arith.constant 1 : index
    %c0_173 = arith.constant 0 : index
    %c0_174 = arith.constant 0 : index
    %165 = vector.load %arg3[%c1_172, %c0_173, %c0_174] : memref<3x64x256xbf16, #tpu.memory_space<vmem>>, vector<1x64x256xbf16>
    %166 = vector.shape_cast %165 : vector<1x64x256xbf16> to vector<64x256xbf16>
    %cst_175 = arith.constant dense<0.000000e+00> : vector<1x256xf32>
    %167 = tpu.matmul %164, %166, %cst_175 {dimension_numbers = #tpu.dot_dimension_numbers<[1], [0], [0], [1], [0, 0, 1, 1], [], []>} : vector<1x64xbf16>, vector<64x256xbf16>, vector<1x256xf32> -> vector<1x256xf32>
    %168 = arith.addf %162, %167 : vector<1x256xf32>
    %c0_176 = arith.constant 0 : index
    %c15 = arith.constant 15 : index
    %c0_177 = arith.constant 0 : index
    %169 = vector.load %arg2[%c0_176, %c15, %c0_177] : memref<1x16x64xbf16, #tpu.memory_space<vmem>>, vector<1x1x64xbf16>
    %170 = vector.shape_cast %169 : vector<1x1x64xbf16> to vector<1x64xbf16>
    %c2_178 = arith.constant 2 : index
    %c0_179 = arith.constant 0 : index
    %c0_180 = arith.constant 0 : index
    %171 = vector.load %arg3[%c2_178, %c0_179, %c0_180] : memref<3x64x256xbf16, #tpu.memory_space<vmem>>, vector<1x64x256xbf16>
    %172 = vector.shape_cast %171 : vector<1x64x256xbf16> to vector<64x256xbf16>
    %cst_181 = arith.constant dense<0.000000e+00> : vector<1x256xf32>
    %173 = tpu.matmul %170, %172, %cst_181 {dimension_numbers = #tpu.dot_dimension_numbers<[1], [0], [0], [1], [0, 0, 1, 1], [], []>} : vector<1x64xbf16>, vector<64x256xbf16>, vector<1x256xf32> -> vector<1x256xf32>
    %174 = arith.addf %168, %173 : vector<1x256xf32>
    %cst_182 = arith.constant 0.000000e+00 : f32
    %175 = vector.broadcast %cst_182 : f32 to vector<1x256xf32>
    %176 = arith.maximumf %174, %175 : vector<1x256xf32>
    %177 = arith.truncf %176 : vector<1x256xf32> to vector<1x256xbf16>
    %c7_183 = arith.constant 7 : index
    %c0_184 = arith.constant 0 : index
    %178 = vector.load %arg16[%c7_183, %c0_184] : memref<8x256xbf16, #tpu.memory_space<vmem>>, vector<1x256xbf16>
    tpu.vector_store %arg16[%c7_183, %c0_184], %177 {strides = array<i32>} : memref<8x256xbf16, #tpu.memory_space<vmem>>, vector<1x256xbf16>,
    %c0_185 = arith.constant 0 : index
    %c0_186 = arith.constant 0 : index
    %179 = vector.load %arg6[%c0_185, %c0_186] : memref<1x128xf32, #tpu.memory_space<vmem>>, vector<1x128xf32>
    %c0_187 = arith.constant 0 : index
    %c0_188 = arith.constant 0 : index
    %180 = vector.load %arg16[%c0_187, %c0_188] : memref<8x256xbf16, #tpu.memory_space<vmem>>, vector<1x256xbf16>
    %c1_189 = arith.constant 1 : index
    %c0_190 = arith.constant 0 : index
    %c0_191 = arith.constant 0 : index
    %181 = vector.load %arg5[%c1_189, %c0_190, %c0_191] : memref<3x256x128xbf16, #tpu.memory_space<vmem>>, vector<1x256x128xbf16>
    %182 = vector.shape_cast %181 : vector<1x256x128xbf16> to vector<256x128xbf16>
    %cst_192 = arith.constant dense<0.000000e+00> : vector<1x128xf32>
    %183 = tpu.matmul %180, %182, %cst_192 {dimension_numbers = #tpu.dot_dimension_numbers<[1], [0], [0], [1], [0, 0, 1, 1], [], []>} : vector<1x256xbf16>, vector<256x128xbf16>, vector<1x128xf32> -> vector<1x128xf32>
    %184 = arith.addf %179, %183 : vector<1x128xf32>
    %c1_193 = arith.constant 1 : index
    %c0_194 = arith.constant 0 : index
    %185 = vector.load %arg16[%c1_193, %c0_194] : memref<8x256xbf16, #tpu.memory_space<vmem>>, vector<1x256xbf16>
    %c2_195 = arith.constant 2 : index
    %c0_196 = arith.constant 0 : index
    %c0_197 = arith.constant 0 : index
    %186 = vector.load %arg5[%c2_195, %c0_196, %c0_197] : memref<3x256x128xbf16, #tpu.memory_space<vmem>>, vector<1x256x128xbf16>
    %187 = vector.shape_cast %186 : vector<1x256x128xbf16> to vector<256x128xbf16>
    %cst_198 = arith.constant dense<0.000000e+00> : vector<1x128xf32>
    %188 = tpu.matmul %185, %187, %cst_198 {dimension_numbers = #tpu.dot_dimension_numbers<[1], [0], [0], [1], [0, 0, 1, 1], [], []>} : vector<1x256xbf16>, vector<256x128xbf16>, vector<1x128xf32> -> vector<1x128xf32>
    %189 = arith.addf %184, %188 : vector<1x128xf32>
    %cst_199 = arith.constant 0.000000e+00 : f32
    %190 = vector.broadcast %cst_199 : f32 to vector<1x128xf32>
    %191 = arith.maximumf %189, %190 : vector<1x128xf32>
    %192 = arith.truncf %191 : vector<1x128xf32> to vector<1x128xbf16>
    %c0_200 = arith.constant 0 : index
    %c0_201 = arith.constant 0 : index
    %193 = vector.load %arg17[%c0_200, %c0_201] : memref<4x128xbf16, #tpu.memory_space<vmem>>, vector<1x128xbf16>
    tpu.vector_store %arg17[%c0_200, %c0_201], %192 {strides = array<i32>} : memref<4x128xbf16, #tpu.memory_space<vmem>>, vector<1x128xbf16>,
    %c0_202 = arith.constant 0 : index
    %c0_203 = arith.constant 0 : index
    %194 = vector.load %arg6[%c0_202, %c0_203] : memref<1x128xf32, #tpu.memory_space<vmem>>, vector<1x128xf32>
    %c1_204 = arith.constant 1 : index
    %c0_205 = arith.constant 0 : index
    %195 = vector.load %arg16[%c1_204, %c0_205] : memref<8x256xbf16, #tpu.memory_space<vmem>>, vector<1x256xbf16>
    %c0_206 = arith.constant 0 : index
    %c0_207 = arith.constant 0 : index
    %c0_208 = arith.constant 0 : index
    %196 = vector.load %arg5[%c0_206, %c0_207, %c0_208] : memref<3x256x128xbf16, #tpu.memory_space<vmem>>, vector<1x256x128xbf16>
    %197 = vector.shape_cast %196 : vector<1x256x128xbf16> to vector<256x128xbf16>
    %cst_209 = arith.constant dense<0.000000e+00> : vector<1x128xf32>
    %198 = tpu.matmul %195, %197, %cst_209 {dimension_numbers = #tpu.dot_dimension_numbers<[1], [0], [0], [1], [0, 0, 1, 1], [], []>} : vector<1x256xbf16>, vector<256x128xbf16>, vector<1x128xf32> -> vector<1x128xf32>
    %199 = arith.addf %194, %198 : vector<1x128xf32>
    %c2_210 = arith.constant 2 : index
    %c0_211 = arith.constant 0 : index
    %200 = vector.load %arg16[%c2_210, %c0_211] : memref<8x256xbf16, #tpu.memory_space<vmem>>, vector<1x256xbf16>
    %c1_212 = arith.constant 1 : index
    %c0_213 = arith.constant 0 : index
    %c0_214 = arith.constant 0 : index
    %201 = vector.load %arg5[%c1_212, %c0_213, %c0_214] : memref<3x256x128xbf16, #tpu.memory_space<vmem>>, vector<1x256x128xbf16>
    %202 = vector.shape_cast %201 : vector<1x256x128xbf16> to vector<256x128xbf16>
    %cst_215 = arith.constant dense<0.000000e+00> : vector<1x128xf32>
    %203 = tpu.matmul %200, %202, %cst_215 {dimension_numbers = #tpu.dot_dimension_numbers<[1], [0], [0], [1], [0, 0, 1, 1], [], []>} : vector<1x256xbf16>, vector<256x128xbf16>, vector<1x128xf32> -> vector<1x128xf32>
    %204 = arith.addf %199, %203 : vector<1x128xf32>
    %c3_216 = arith.constant 3 : index
    %c0_217 = arith.constant 0 : index
    %205 = vector.load %arg16[%c3_216, %c0_217] : memref<8x256xbf16, #tpu.memory_space<vmem>>, vector<1x256xbf16>
    %c2_218 = arith.constant 2 : index
    %c0_219 = arith.constant 0 : index
    %c0_220 = arith.constant 0 : index
    %206 = vector.load %arg5[%c2_218, %c0_219, %c0_220] : memref<3x256x128xbf16, #tpu.memory_space<vmem>>, vector<1x256x128xbf16>
    %207 = vector.shape_cast %206 : vector<1x256x128xbf16> to vector<256x128xbf16>
    %cst_221 = arith.constant dense<0.000000e+00> : vector<1x128xf32>
    %208 = tpu.matmul %205, %207, %cst_221 {dimension_numbers = #tpu.dot_dimension_numbers<[1], [0], [0], [1], [0, 0, 1, 1], [], []>} : vector<1x256xbf16>, vector<256x128xbf16>, vector<1x128xf32> -> vector<1x128xf32>
    %209 = arith.addf %204, %208 : vector<1x128xf32>
    %cst_222 = arith.constant 0.000000e+00 : f32
    %210 = vector.broadcast %cst_222 : f32 to vector<1x128xf32>
    %211 = arith.maximumf %209, %210 : vector<1x128xf32>
    %212 = arith.truncf %211 : vector<1x128xf32> to vector<1x128xbf16>
    %c1_223 = arith.constant 1 : index
    %c0_224 = arith.constant 0 : index
    %213 = vector.load %arg17[%c1_223, %c0_224] : memref<4x128xbf16, #tpu.memory_space<vmem>>, vector<1x128xbf16>
    tpu.vector_store %arg17[%c1_223, %c0_224], %212 {strides = array<i32>} : memref<4x128xbf16, #tpu.memory_space<vmem>>, vector<1x128xbf16>,
    %c0_225 = arith.constant 0 : index
    %c0_226 = arith.constant 0 : index
    %214 = vector.load %arg6[%c0_225, %c0_226] : memref<1x128xf32, #tpu.memory_space<vmem>>, vector<1x128xf32>
    %c3_227 = arith.constant 3 : index
    %c0_228 = arith.constant 0 : index
    %215 = vector.load %arg16[%c3_227, %c0_228] : memref<8x256xbf16, #tpu.memory_space<vmem>>, vector<1x256xbf16>
    %c0_229 = arith.constant 0 : index
    %c0_230 = arith.constant 0 : index
    %c0_231 = arith.constant 0 : index
    %216 = vector.load %arg5[%c0_229, %c0_230, %c0_231] : memref<3x256x128xbf16, #tpu.memory_space<vmem>>, vector<1x256x128xbf16>
    %217 = vector.shape_cast %216 : vector<1x256x128xbf16> to vector<256x128xbf16>
    %cst_232 = arith.constant dense<0.000000e+00> : vector<1x128xf32>
    %218 = tpu.matmul %215, %217, %cst_232 {dimension_numbers = #tpu.dot_dimension_numbers<[1], [0], [0], [1], [0, 0, 1, 1], [], []>} : vector<1x256xbf16>, vector<256x128xbf16>, vector<1x128xf32> -> vector<1x128xf32>
    %219 = arith.addf %214, %218 : vector<1x128xf32>
    %c4_233 = arith.constant 4 : index
    %c0_234 = arith.constant 0 : index
    %220 = vector.load %arg16[%c4_233, %c0_234] : memref<8x256xbf16, #tpu.memory_space<vmem>>, vector<1x256xbf16>
    %c1_235 = arith.constant 1 : index
    %c0_236 = arith.constant 0 : index
    %c0_237 = arith.constant 0 : index
    %221 = vector.load %arg5[%c1_235, %c0_236, %c0_237] : memref<3x256x128xbf16, #tpu.memory_space<vmem>>, vector<1x256x128xbf16>
    %222 = vector.shape_cast %221 : vector<1x256x128xbf16> to vector<256x128xbf16>
    %cst_238 = arith.constant dense<0.000000e+00> : vector<1x128xf32>
    %223 = tpu.matmul %220, %222, %cst_238 {dimension_numbers = #tpu.dot_dimension_numbers<[1], [0], [0], [1], [0, 0, 1, 1], [], []>} : vector<1x256xbf16>, vector<256x128xbf16>, vector<1x128xf32> -> vector<1x128xf32>
    %224 = arith.addf %219, %223 : vector<1x128xf32>
    %c5_239 = arith.constant 5 : index
    %c0_240 = arith.constant 0 : index
    %225 = vector.load %arg16[%c5_239, %c0_240] : memref<8x256xbf16, #tpu.memory_space<vmem>>, vector<1x256xbf16>
    %c2_241 = arith.constant 2 : index
    %c0_242 = arith.constant 0 : index
    %c0_243 = arith.constant 0 : index
    %226 = vector.load %arg5[%c2_241, %c0_242, %c0_243] : memref<3x256x128xbf16, #tpu.memory_space<vmem>>, vector<1x256x128xbf16>
    %227 = vector.shape_cast %226 : vector<1x256x128xbf16> to vector<256x128xbf16>
    %cst_244 = arith.constant dense<0.000000e+00> : vector<1x128xf32>
    %228 = tpu.matmul %225, %227, %cst_244 {dimension_numbers = #tpu.dot_dimension_numbers<[1], [0], [0], [1], [0, 0, 1, 1], [], []>} : vector<1x256xbf16>, vector<256x128xbf16>, vector<1x128xf32> -> vector<1x128xf32>
    %229 = arith.addf %224, %228 : vector<1x128xf32>
    %cst_245 = arith.constant 0.000000e+00 : f32
    %230 = vector.broadcast %cst_245 : f32 to vector<1x128xf32>
    %231 = arith.maximumf %229, %230 : vector<1x128xf32>
    %232 = arith.truncf %231 : vector<1x128xf32> to vector<1x128xbf16>
    %c2_246 = arith.constant 2 : index
    %c0_247 = arith.constant 0 : index
    %233 = vector.load %arg17[%c2_246, %c0_247] : memref<4x128xbf16, #tpu.memory_space<vmem>>, vector<1x128xbf16>
    tpu.vector_store %arg17[%c2_246, %c0_247], %232 {strides = array<i32>} : memref<4x128xbf16, #tpu.memory_space<vmem>>, vector<1x128xbf16>,
    %c0_248 = arith.constant 0 : index
    %c0_249 = arith.constant 0 : index
    %234 = vector.load %arg6[%c0_248, %c0_249] : memref<1x128xf32, #tpu.memory_space<vmem>>, vector<1x128xf32>
    %c5_250 = arith.constant 5 : index
    %c0_251 = arith.constant 0 : index
    %235 = vector.load %arg16[%c5_250, %c0_251] : memref<8x256xbf16, #tpu.memory_space<vmem>>, vector<1x256xbf16>
    %c0_252 = arith.constant 0 : index
    %c0_253 = arith.constant 0 : index
    %c0_254 = arith.constant 0 : index
    %236 = vector.load %arg5[%c0_252, %c0_253, %c0_254] : memref<3x256x128xbf16, #tpu.memory_space<vmem>>, vector<1x256x128xbf16>
    %237 = vector.shape_cast %236 : vector<1x256x128xbf16> to vector<256x128xbf16>
    %cst_255 = arith.constant dense<0.000000e+00> : vector<1x128xf32>
    %238 = tpu.matmul %235, %237, %cst_255 {dimension_numbers = #tpu.dot_dimension_numbers<[1], [0], [0], [1], [0, 0, 1, 1], [], []>} : vector<1x256xbf16>, vector<256x128xbf16>, vector<1x128xf32> -> vector<1x128xf32>
    %239 = arith.addf %234, %238 : vector<1x128xf32>
    %c6_256 = arith.constant 6 : index
    %c0_257 = arith.constant 0 : index
    %240 = vector.load %arg16[%c6_256, %c0_257] : memref<8x256xbf16, #tpu.memory_space<vmem>>, vector<1x256xbf16>
    %c1_258 = arith.constant 1 : index
    %c0_259 = arith.constant 0 : index
    %c0_260 = arith.constant 0 : index
    %241 = vector.load %arg5[%c1_258, %c0_259, %c0_260] : memref<3x256x128xbf16, #tpu.memory_space<vmem>>, vector<1x256x128xbf16>
    %242 = vector.shape_cast %241 : vector<1x256x128xbf16> to vector<256x128xbf16>
    %cst_261 = arith.constant dense<0.000000e+00> : vector<1x128xf32>
    %243 = tpu.matmul %240, %242, %cst_261 {dimension_numbers = #tpu.dot_dimension_numbers<[1], [0], [0], [1], [0, 0, 1, 1], [], []>} : vector<1x256xbf16>, vector<256x128xbf16>, vector<1x128xf32> -> vector<1x128xf32>
    %244 = arith.addf %239, %243 : vector<1x128xf32>
    %c7_262 = arith.constant 7 : index
    %c0_263 = arith.constant 0 : index
    %245 = vector.load %arg16[%c7_262, %c0_263] : memref<8x256xbf16, #tpu.memory_space<vmem>>, vector<1x256xbf16>
    %c2_264 = arith.constant 2 : index
    %c0_265 = arith.constant 0 : index
    %c0_266 = arith.constant 0 : index
    %246 = vector.load %arg5[%c2_264, %c0_265, %c0_266] : memref<3x256x128xbf16, #tpu.memory_space<vmem>>, vector<1x256x128xbf16>
    %247 = vector.shape_cast %246 : vector<1x256x128xbf16> to vector<256x128xbf16>
    %cst_267 = arith.constant dense<0.000000e+00> : vector<1x128xf32>
    %248 = tpu.matmul %245, %247, %cst_267 {dimension_numbers = #tpu.dot_dimension_numbers<[1], [0], [0], [1], [0, 0, 1, 1], [], []>} : vector<1x256xbf16>, vector<256x128xbf16>, vector<1x128xf32> -> vector<1x128xf32>
    %249 = arith.addf %244, %248 : vector<1x128xf32>
    %cst_268 = arith.constant 0.000000e+00 : f32
    %250 = vector.broadcast %cst_268 : f32 to vector<1x128xf32>
    %251 = arith.maximumf %249, %250 : vector<1x128xf32>
    %252 = arith.truncf %251 : vector<1x128xf32> to vector<1x128xbf16>
    %c3_269 = arith.constant 3 : index
    %c0_270 = arith.constant 0 : index
    %253 = vector.load %arg17[%c3_269, %c0_270] : memref<4x128xbf16, #tpu.memory_space<vmem>>, vector<1x128xbf16>
    tpu.vector_store %arg17[%c3_269, %c0_270], %252 {strides = array<i32>} : memref<4x128xbf16, #tpu.memory_space<vmem>>, vector<1x128xbf16>,
    %c0_271 = arith.constant 0 : index
    %c0_272 = arith.constant 0 : index
    %254 = vector.load %arg8[%c0_271, %c0_272] : memref<1x64xf32, #tpu.memory_space<vmem>>, vector<1x64xf32>
    %c0_273 = arith.constant 0 : index
    %c0_274 = arith.constant 0 : index
    %255 = vector.load %arg17[%c0_273, %c0_274] : memref<4x128xbf16, #tpu.memory_space<vmem>>, vector<1x128xbf16>
    %c1_275 = arith.constant 1 : index
    %c0_276 = arith.constant 0 : index
    %c0_277 = arith.constant 0 : index
    %256 = vector.load %arg7[%c1_275, %c0_276, %c0_277] : memref<3x128x64xbf16, #tpu.memory_space<vmem>>, vector<1x128x64xbf16>
    %257 = vector.shape_cast %256 : vector<1x128x64xbf16> to vector<128x64xbf16>
    %cst_278 = arith.constant dense<0.000000e+00> : vector<1x64xf32>
    %258 = tpu.matmul %255, %257, %cst_278 {dimension_numbers = #tpu.dot_dimension_numbers<[1], [0], [0], [1], [0, 0, 1, 1], [], []>} : vector<1x128xbf16>, vector<128x64xbf16>, vector<1x64xf32> -> vector<1x64xf32>
    %259 = arith.addf %254, %258 : vector<1x64xf32>
    %c1_279 = arith.constant 1 : index
    %c0_280 = arith.constant 0 : index
    %260 = vector.load %arg17[%c1_279, %c0_280] : memref<4x128xbf16, #tpu.memory_space<vmem>>, vector<1x128xbf16>
    %c2_281 = arith.constant 2 : index
    %c0_282 = arith.constant 0 : index
    %c0_283 = arith.constant 0 : index
    %261 = vector.load %arg7[%c2_281, %c0_282, %c0_283] : memref<3x128x64xbf16, #tpu.memory_space<vmem>>, vector<1x128x64xbf16>
    %262 = vector.shape_cast %261 : vector<1x128x64xbf16> to vector<128x64xbf16>
    %cst_284 = arith.constant dense<0.000000e+00> : vector<1x64xf32>
    %263 = tpu.matmul %260, %262, %cst_284 {dimension_numbers = #tpu.dot_dimension_numbers<[1], [0], [0], [1], [0, 0, 1, 1], [], []>} : vector<1x128xbf16>, vector<128x64xbf16>, vector<1x64xf32> -> vector<1x64xf32>
    %264 = arith.addf %259, %263 : vector<1x64xf32>
    %cst_285 = arith.constant 0.000000e+00 : f32
    %265 = vector.broadcast %cst_285 : f32 to vector<1x64xf32>
    %266 = arith.maximumf %264, %265 : vector<1x64xf32>
    %267 = arith.truncf %266 : vector<1x64xf32> to vector<1x64xbf16>
    %c0_286 = arith.constant 0 : index
    %c0_287 = arith.constant 0 : index
    %268 = vector.load %arg18[%c0_286, %c0_287] : memref<2x64xbf16, #tpu.memory_space<vmem>>, vector<1x64xbf16>
    tpu.vector_store %arg18[%c0_286, %c0_287], %267 {strides = array<i32>} : memref<2x64xbf16, #tpu.memory_space<vmem>>, vector<1x64xbf16>,
    %c0_288 = arith.constant 0 : index
    %c0_289 = arith.constant 0 : index
    %269 = vector.load %arg8[%c0_288, %c0_289] : memref<1x64xf32, #tpu.memory_space<vmem>>, vector<1x64xf32>
    %c1_290 = arith.constant 1 : index
    %c0_291 = arith.constant 0 : index
    %270 = vector.load %arg17[%c1_290, %c0_291] : memref<4x128xbf16, #tpu.memory_space<vmem>>, vector<1x128xbf16>
    %c0_292 = arith.constant 0 : index
    %c0_293 = arith.constant 0 : index
    %c0_294 = arith.constant 0 : index
    %271 = vector.load %arg7[%c0_292, %c0_293, %c0_294] : memref<3x128x64xbf16, #tpu.memory_space<vmem>>, vector<1x128x64xbf16>
    %272 = vector.shape_cast %271 : vector<1x128x64xbf16> to vector<128x64xbf16>
    %cst_295 = arith.constant dense<0.000000e+00> : vector<1x64xf32>
    %273 = tpu.matmul %270, %272, %cst_295 {dimension_numbers = #tpu.dot_dimension_numbers<[1], [0], [0], [1], [0, 0, 1, 1], [], []>} : vector<1x128xbf16>, vector<128x64xbf16>, vector<1x64xf32> -> vector<1x64xf32>
    %274 = arith.addf %269, %273 : vector<1x64xf32>
    %c2_296 = arith.constant 2 : index
    %c0_297 = arith.constant 0 : index
    %275 = vector.load %arg17[%c2_296, %c0_297] : memref<4x128xbf16, #tpu.memory_space<vmem>>, vector<1x128xbf16>
    %c1_298 = arith.constant 1 : index
    %c0_299 = arith.constant 0 : index
    %c0_300 = arith.constant 0 : index
    %276 = vector.load %arg7[%c1_298, %c0_299, %c0_300] : memref<3x128x64xbf16, #tpu.memory_space<vmem>>, vector<1x128x64xbf16>
    %277 = vector.shape_cast %276 : vector<1x128x64xbf16> to vector<128x64xbf16>
    %cst_301 = arith.constant dense<0.000000e+00> : vector<1x64xf32>
    %278 = tpu.matmul %275, %277, %cst_301 {dimension_numbers = #tpu.dot_dimension_numbers<[1], [0], [0], [1], [0, 0, 1, 1], [], []>} : vector<1x128xbf16>, vector<128x64xbf16>, vector<1x64xf32> -> vector<1x64xf32>
    %279 = arith.addf %274, %278 : vector<1x64xf32>
    %c3_302 = arith.constant 3 : index
    %c0_303 = arith.constant 0 : index
    %280 = vector.load %arg17[%c3_302, %c0_303] : memref<4x128xbf16, #tpu.memory_space<vmem>>, vector<1x128xbf16>
    %c2_304 = arith.constant 2 : index
    %c0_305 = arith.constant 0 : index
    %c0_306 = arith.constant 0 : index
    %281 = vector.load %arg7[%c2_304, %c0_305, %c0_306] : memref<3x128x64xbf16, #tpu.memory_space<vmem>>, vector<1x128x64xbf16>
    %282 = vector.shape_cast %281 : vector<1x128x64xbf16> to vector<128x64xbf16>
    %cst_307 = arith.constant dense<0.000000e+00> : vector<1x64xf32>
    %283 = tpu.matmul %280, %282, %cst_307 {dimension_numbers = #tpu.dot_dimension_numbers<[1], [0], [0], [1], [0, 0, 1, 1], [], []>} : vector<1x128xbf16>, vector<128x64xbf16>, vector<1x64xf32> -> vector<1x64xf32>
    %284 = arith.addf %279, %283 : vector<1x64xf32>
    %cst_308 = arith.constant 0.000000e+00 : f32
    %285 = vector.broadcast %cst_308 : f32 to vector<1x64xf32>
    %286 = arith.maximumf %284, %285 : vector<1x64xf32>
    %287 = arith.truncf %286 : vector<1x64xf32> to vector<1x64xbf16>
    %c1_309 = arith.constant 1 : index
    %c0_310 = arith.constant 0 : index
    %288 = vector.load %arg18[%c1_309, %c0_310] : memref<2x64xbf16, #tpu.memory_space<vmem>>, vector<1x64xbf16>
    tpu.vector_store %arg18[%c1_309, %c0_310], %287 {strides = array<i32>} : memref<2x64xbf16, #tpu.memory_space<vmem>>, vector<1x64xbf16>,
    %c0_311 = arith.constant 0 : index
    %c0_312 = arith.constant 0 : index
    %289 = vector.load %arg10[%c0_311, %c0_312] : memref<1x32xf32, #tpu.memory_space<vmem>>, vector<1x32xf32>
    %c0_313 = arith.constant 0 : index
    %c0_314 = arith.constant 0 : index
    %290 = vector.load %arg18[%c0_313, %c0_314] : memref<2x64xbf16, #tpu.memory_space<vmem>>, vector<1x64xbf16>
    %c1_315 = arith.constant 1 : index
    %c0_316 = arith.constant 0 : index
    %c0_317 = arith.constant 0 : index
    %291 = vector.load %arg9[%c1_315, %c0_316, %c0_317] : memref<3x64x32xbf16, #tpu.memory_space<vmem>>, vector<1x64x32xbf16>
    %292 = vector.shape_cast %291 : vector<1x64x32xbf16> to vector<64x32xbf16>
    %cst_318 = arith.constant dense<0.000000e+00> : vector<1x32xf32>
    %293 = tpu.matmul %290, %292, %cst_318 {dimension_numbers = #tpu.dot_dimension_numbers<[1], [0], [0], [1], [0, 0, 1, 1], [], []>} : vector<1x64xbf16>, vector<64x32xbf16>, vector<1x32xf32> -> vector<1x32xf32>
    %294 = arith.addf %289, %293 : vector<1x32xf32>
    %c1_319 = arith.constant 1 : index
    %c0_320 = arith.constant 0 : index
    %295 = vector.load %arg18[%c1_319, %c0_320] : memref<2x64xbf16, #tpu.memory_space<vmem>>, vector<1x64xbf16>
    %c2_321 = arith.constant 2 : index
    %c0_322 = arith.constant 0 : index
    %c0_323 = arith.constant 0 : index
    %296 = vector.load %arg9[%c2_321, %c0_322, %c0_323] : memref<3x64x32xbf16, #tpu.memory_space<vmem>>, vector<1x64x32xbf16>
    %297 = vector.shape_cast %296 : vector<1x64x32xbf16> to vector<64x32xbf16>
    %cst_324 = arith.constant dense<0.000000e+00> : vector<1x32xf32>
    %298 = tpu.matmul %295, %297, %cst_324 {dimension_numbers = #tpu.dot_dimension_numbers<[1], [0], [0], [1], [0, 0, 1, 1], [], []>} : vector<1x64xbf16>, vector<64x32xbf16>, vector<1x32xf32> -> vector<1x32xf32>
    %299 = arith.addf %294, %298 : vector<1x32xf32>
    %cst_325 = arith.constant 0.000000e+00 : f32
    %300 = vector.broadcast %cst_325 : f32 to vector<1x32xf32>
    %301 = arith.maximumf %299, %300 : vector<1x32xf32>
    %c0_326 = arith.constant 0 : index
    %c0_327 = arith.constant 0 : index
    %302 = vector.load %arg11[%c0_326, %c0_327] : memref<32x16xbf16, #tpu.memory_space<vmem>>, vector<32x16xbf16>
    %303 = arith.truncf %301 : vector<1x32xf32> to vector<1x32xbf16>
    %cst_328 = arith.constant dense<0.000000e+00> : vector<1x16xf32>
    %304 = tpu.matmul %303, %302, %cst_328 {dimension_numbers = #tpu.dot_dimension_numbers<[1], [0], [0], [1], [0, 0, 1, 1], [], []>} : vector<1x32xbf16>, vector<32x16xbf16>, vector<1x16xf32> -> vector<1x16xf32>
    %305 = arith.addf %0, %304 : vector<1x16xf32>
    %c0_329 = arith.constant 0 : index
    %c0_330 = arith.constant 0 : index
    %306 = vector.load %arg12[%c0_329, %c0_330] : memref<1x16xf32, #tpu.memory_space<vmem>>, vector<1x16xf32>
    %307 = arith.addf %305, %306 : vector<1x16xf32>
    %cst_331 = arith.constant 0.000000e+00 : f32
    %308 = vector.broadcast %cst_331 : f32 to vector<1x16xf32>
    %309 = arith.maximumf %307, %308 : vector<1x16xf32>
    %310 = arith.truncf %309 : vector<1x16xf32> to vector<1x16xbf16>
    %c0_332 = arith.constant 0 : index
    %c0_333 = arith.constant 0 : index
    %311 = vector.load %arg13[%c0_332, %c0_333] : memref<16x128xbf16, #tpu.memory_space<vmem>>, vector<16x128xbf16>
    %cst_334 = arith.constant dense<0.000000e+00> : vector<1x128xf32>
    %312 = tpu.matmul %310, %311, %cst_334 {dimension_numbers = #tpu.dot_dimension_numbers<[1], [0], [0], [1], [0, 0, 1, 1], [], []>} : vector<1x16xbf16>, vector<16x128xbf16>, vector<1x128xf32> -> vector<1x128xf32>
    %c0_335 = arith.constant 0 : index
    %c0_336 = arith.constant 0 : index
    %313 = vector.load %arg14[%c0_335, %c0_336] : memref<1x128xf32, #tpu.memory_space<vmem>>, vector<1x128xf32>
    %314 = arith.addf %312, %313 : vector<1x128xf32>
    %315 = tpu.iota {dimensions = array<i32: 1>} : vector<1x128xi32>
    %c6_i32 = arith.constant 6 : i32
    %316 = vector.broadcast %c6_i32 : i32 to vector<1x128xi32>
    %317 = arith.cmpi slt, %315, %316 : vector<1x128xi32>
    %cst_337 = arith.constant -1.000000e+30 : f32
    %318 = vector.broadcast %cst_337 : f32 to vector<1x128xf32>
    %319 = arith.select %317, %314, %318 : vector<1x128xi1>, vector<1x128xf32>
    %cst_338 = arith.constant dense<0xFF800000> : vector<1xf32>
    %320 = vector.multi_reduction <maximumf>, %319, %cst_338 [1] : vector<1x128xf32> to vector<1xf32>
    %321 = vector.shape_cast %320 : vector<1xf32> to vector<1x1xf32>
    %322 = vector.broadcast %321 : vector<1x1xf32> to vector<1x128xf32>
    %323 = arith.subf %319, %322 : vector<1x128xf32>
    %324 = math.exp %323 : vector<1x128xf32>
    %cst_339 = arith.constant 0.000000e+00 : f32
    %325 = vector.broadcast %cst_339 : f32 to vector<1x128xf32>
    %326 = arith.select %317, %324, %325 : vector<1x128xi1>, vector<1x128xf32>
    %cst_340 = arith.constant dense<0.000000e+00> : vector<1xf32>
    %327 = vector.multi_reduction <add>, %326, %cst_340 [1] : vector<1x128xf32> to vector<1xf32>
    %328 = vector.shape_cast %327 : vector<1xf32> to vector<1x1xf32>
    %329 = math.log %328 : vector<1x1xf32>
    %330 = arith.addf %321, %329 : vector<1x1xf32>
    %331 = arith.index_cast %arg0 : i32 to index
    %332 = memref.load %arg1[%331] : memref<2xi32, #tpu.memory_space<smem>>
    %333 = vector.broadcast %332 : i32 to vector<1x128xi32>
    %334 = arith.cmpi eq, %315, %333 : vector<1x128xi32>
    %335 = vector.broadcast %330 : vector<1x1xf32> to vector<1x128xf32>
    %336 = arith.subf %314, %335 : vector<1x128xf32>
    %cst_341 = arith.constant 0.000000e+00 : f32
    %337 = vector.broadcast %cst_341 : f32 to vector<1x128xf32>
    %338 = arith.select %334, %336, %337 : vector<1x128xi1>, vector<1x128xf32>
    %cst_342 = arith.constant dense<0.000000e+00> : vector<1xf32>
    %339 = vector.multi_reduction <add>, %338, %cst_342 [1] : vector<1x128xf32> to vector<1xf32>
    %340 = vector.shape_cast %339 : vector<1xf32> to vector<1x1xf32>
    %c7_i32 = arith.constant 7 : i32
    %341 = vector.broadcast %c7_i32 : i32 to vector<1x128xi32>
    %342 = arith.cmpi eq, %315, %341 : vector<1x128xi32>
    %343 = vector.shape_cast %340 : vector<1x1xf32> to vector<1x1xf32>
    %344 = vector.broadcast %343 : vector<1x1xf32> to vector<1x128xf32>
    %345 = arith.select %342, %344, %314 : vector<1x128xi1>, vector<1x128xf32>
    %c0_343 = arith.constant 0 : index
    %c0_344 = arith.constant 0 : index
    %c0_345 = arith.constant 0 : index
    %346 = vector.load %arg15[%c0_343, %c0_344, %c0_345] : memref<1x1x128xf32, #tpu.memory_space<vmem>>, vector<1x1x128xf32>
    %347 = vector.shape_cast %346 : vector<1x1x128xf32> to vector<1x128xf32>
    %348 = vector.shape_cast %345 : vector<1x128xf32> to vector<1x1x128xf32>
    tpu.vector_store %arg15[%c0_343, %c0_344, %c0_345], %348 {strides = array<i32>} : memref<1x1x128xf32, #tpu.memory_space<vmem>>, vector<1x1x128xf32>,
    return
  }
  func.func @transform_0(%arg0: i32, %arg1: memref<2xi32, #tpu.memory_space<smem>>) -> (i32, i32, i32) {
    %c0_i32 = arith.constant 0 : i32
    %c0_i32_0 = arith.constant 0 : i32
    %c0_i32_1 = arith.constant 0 : i32
    return %arg0, %c0_i32, %c0_i32_0 : i32, i32, i32
  }
  func.func @transform_1(%arg0: i32, %arg1: memref<2xi32, #tpu.memory_space<smem>>) -> (i32, i32, i32) {
    %c0_i32 = arith.constant 0 : i32
    %c0_i32_0 = arith.constant 0 : i32
    %c0_i32_1 = arith.constant 0 : i32
    %c0_i32_2 = arith.constant 0 : i32
    return %c0_i32, %c0_i32_0, %c0_i32_1 : i32, i32, i32
  }
  func.func @transform_2(%arg0: i32, %arg1: memref<2xi32, #tpu.memory_space<smem>>) -> (i32, i32) {
    %c0_i32 = arith.constant 0 : i32
    %c0_i32_0 = arith.constant 0 : i32
    %c0_i32_1 = arith.constant 0 : i32
    return %c0_i32, %c0_i32_0 : i32, i32
  }
  func.func @transform_3(%arg0: i32, %arg1: memref<2xi32, #tpu.memory_space<smem>>) -> (i32, i32, i32) {
    %c0_i32 = arith.constant 0 : i32
    %c0_i32_0 = arith.constant 0 : i32
    %c0_i32_1 = arith.constant 0 : i32
    %c0_i32_2 = arith.constant 0 : i32
    return %c0_i32, %c0_i32_0, %c0_i32_1 : i32, i32, i32
  }
  func.func @transform_4(%arg0: i32, %arg1: memref<2xi32, #tpu.memory_space<smem>>) -> (i32, i32) {
    %c0_i32 = arith.constant 0 : i32
    %c0_i32_0 = arith.constant 0 : i32
    %c0_i32_1 = arith.constant 0 : i32
    return %c0_i32, %c0_i32_0 : i32, i32
  }
  func.func @transform_5(%arg0: i32, %arg1: memref<2xi32, #tpu.memory_space<smem>>) -> (i32, i32, i32) {
    %c0_i32 = arith.constant 0 : i32
    %c0_i32_0 = arith.constant 0 : i32
    %c0_i32_1 = arith.constant 0 : i32
    %c0_i32_2 = arith.constant 0 : i32
    return %c0_i32, %c0_i32_0, %c0_i32_1 : i32, i32, i32
  }
  func.func @transform_6(%arg0: i32, %arg1: memref<2xi32, #tpu.memory_space<smem>>) -> (i32, i32) {
    %c0_i32 = arith.constant 0 : i32
    %c0_i32_0 = arith.constant 0 : i32
    %c0_i32_1 = arith.constant 0 : i32
    return %c0_i32, %c0_i32_0 : i32, i32
  }
  func.func @transform_7(%arg0: i32, %arg1: memref<2xi32, #tpu.memory_space<smem>>) -> (i32, i32, i32) {
    %c0_i32 = arith.constant 0 : i32
    %c0_i32_0 = arith.constant 0 : i32
    %c0_i32_1 = arith.constant 0 : i32
    %c0_i32_2 = arith.constant 0 : i32
    return %c0_i32, %c0_i32_0, %c0_i32_1 : i32, i32, i32
  }
  func.func @transform_8(%arg0: i32, %arg1: memref<2xi32, #tpu.memory_space<smem>>) -> (i32, i32) {
    %c0_i32 = arith.constant 0 : i32
    %c0_i32_0 = arith.constant 0 : i32
    %c0_i32_1 = arith.constant 0 : i32
    return %c0_i32, %c0_i32_0 : i32, i32
  }
  func.func @transform_9(%arg0: i32, %arg1: memref<2xi32, #tpu.memory_space<smem>>) -> (i32, i32) {
    %c0_i32 = arith.constant 0 : i32
    %c0_i32_0 = arith.constant 0 : i32
    %c0_i32_1 = arith.constant 0 : i32
    return %c0_i32, %c0_i32_0 : i32, i32
  }
  func.func @transform_10(%arg0: i32, %arg1: memref<2xi32, #tpu.memory_space<smem>>) -> (i32, i32) {
    %c0_i32 = arith.constant 0 : i32
    %c0_i32_0 = arith.constant 0 : i32
    %c0_i32_1 = arith.constant 0 : i32
    return %c0_i32, %c0_i32_0 : i32, i32
  }
  func.func @transform_11(%arg0: i32, %arg1: memref<2xi32, #tpu.memory_space<smem>>) -> (i32, i32) {
    %c0_i32 = arith.constant 0 : i32
    %c0_i32_0 = arith.constant 0 : i32
    %c0_i32_1 = arith.constant 0 : i32
    return %c0_i32, %c0_i32_0 : i32, i32
  }
  func.func @transform_12(%arg0: i32, %arg1: memref<2xi32, #tpu.memory_space<smem>>) -> (i32, i32) {
    %c0_i32 = arith.constant 0 : i32
    %c0_i32_0 = arith.constant 0 : i32
    %c0_i32_1 = arith.constant 0 : i32
    return %c0_i32, %c0_i32_0 : i32, i32
  }
  func.func @transform_13(%arg0: i32, %arg1: memref<2xi32, #tpu.memory_space<smem>>) -> (i32, i32, i32) {
    %c0_i32 = arith.constant 0 : i32
    %c0_i32_0 = arith.constant 0 : i32
    %c0_i32_1 = arith.constant 0 : i32
    return %arg0, %c0_i32, %c0_i32_0 : i32, i32, i32
  }
}

</mosaic_0001>

<bundles_post_ra>
// kernel: forward.1
= control target key start
LH: loop header
LB: loop body
LE: loop exit
PB: predicated region body
PF: predicated region fallthrough
CT: control target
= control target key end

     0   :  { %s7650_s16 = smov [#allocation6]   ;;  %s9335_s0 = inlined_call_operand.vmem [shape: s32[2], index: 0, kind: input, shape index: {}]   ;;  %s9336_s1 = inlined_call_operand.vmem [shape: bf16[2,16,64], index: 1, kind: input, shape index: {}]   ;;  %s9337_s2 = inlined_call_operand.vmem [shape: bf16[3,64,256], index: 2, kind: input, shape index: {}]   ;;  %s9338_s3 = inlined_call_operand.vmem [shape: f32[1,256], index: 3, kind: input, shape index: {}]   ;;  %s9339_s4 = inlined_call_operand.hbm [shape: bf16[3,256,128], index: 4, kind: input, shape index: {}]   ;;  %s9340_s5 = inlined_call_operand.vmem [shape: f32[1,128], index: 5, kind: input, shape index: {}]   ;;  %s9341_s6 = inlined_call_operand.vmem [shape: bf16[3,128,64], index: 6, kind: input, shape index: {}]   ;;  %s9342_s7 = inlined_call_operand.vmem [shape: f32[1,64], index: 7, kind: input, shape index: {}]   ;;  %s9343_s8 = inlined_call_operand.vmem [shape: bf16[3,64,32], index: 8, kind: input, shape index: {}]   ;;  %s9344_s9 = inlined_call_operand.vmem [shape: f32[1,32], index: 9, kind: input, shape index: {}]   ;;  %s9345_s10 = inlined_call_operand.vmem [shape: bf16[32,16], index: 10, kind: input, shape index: {}]   ;;  %s9346_s11 = inlined_call_operand.vmem [shape: f32[1,16], index: 11, kind: input, shape index: {}]   ;;  %s9347_s12 = inlined_call_operand.vmem [shape: bf16[16,128], index: 12, kind: input, shape index: {}]   ;;  %s9348_s13 = inlined_call_operand.vmem [shape: f32[1,128], index: 13, kind: input, shape index: {}]   ;;  %s9349_s14 = inlined_call_operand.vmem [shape: f32[2,1,128], index: 14, kind: output, shape index: {}]  }
   0x1   :  { %s20_s15 = sshll.u32 %s9335_s0, 4  ;;  %s21_s15 = int_to_ptr.vmem [resolvable:$true] %s20_s15 }
   0x2   :  { %23 = dma.vmem_to_smem %s21_s15, 16, %s7650_s16, [#allocation5] }
   0x3   :  { %7640 = dma.done.wait [#allocation5], 16 }
   0x4   :  { %7641 = vsyncadd [#allocation5], 4294967280 }
   0x5   :  { %26 = sfence }
   0x6   :  { %27 = vsyncpa [#allocation8], 0  ;;  %s7732_s17 = smov 0  }
   0x7 LB: > { %s359_s0 = sshll.u32 %s9339_s4, 4  ;;  %s7741_s20 = sadd.s32 4294967295, %s7648_s17   ;;  %s7648_s17 = sphi %s7732_s17, %s33_s17   ;;  %s360_s0 = int_to_ptr.hbm [resolvable:$true] %s359_s0 }
   0x8   : > { %p5245_p0 = scmp.ge.s32.totalorder %s7648_s17, 1  ;;  %p342_p1 = scmp.lt.s32.totalorder %s7648_s17, 3 }
   0x9   : > { %p7576_p2 = scmp.eq.s32.totalorder %s7741_s20, 0  ;;  %s7651_s21 = smov [#allocation7]  }
   0xa   : > { %p343_p3 = pnand %p5245_p0, %p342_p1  ;;  %s361_s22 = sshll.u32 %s7651_s21, 4  ;;  %s362_s22 = int_to_ptr.vmem [resolvable:$true] %s361_s22 }
   0xb   : > { %s7652_s23 = smov 64   ;;  %s7653_s24 = smov 4  }
   0xc   : > { %p7572_p4 = pneg %p343_p3  ;;  %412 = sbr.rel (%p343_p3) target bundleno = 1513 (0x5e9), region = 72 }
   0xe   : > { %p7573_p5 = pnand %p7576_p2, %p7572_p4 }
  0x10   : > { %7575 = dma.hbm_to_vmem [thread:$0]  (!%p7573_p5), %s360_s0, 6144, %s362_s22, [#allocation8], %s7652_s23, %s7652_s23, %s7653_s24  }
  0x11   : > { %7643 = dma.done.wait (%p7576_p2), [#allocation8], 6144  }
  0x12   : > { %7645 = vsyncadd (%p7576_p2), [#allocation8], 4294961152  ;;  %p455_p6 = scmp.lt.s32.totalorder %s7741_s20, 1  ;;  %v5286_v0 = vld [vmem:[%s9337_s2 + $0x70] sm:$0xf]  ;;  %vm515_vm0 = vcmask 523264  }
  0x13   : > { %v7164_v1 = vld [vmem:[%s9337_s2 + $0x74] sm:$0xf0]  ;;  %v7163_v2 = vld [vmem:[%s9337_s2 + $0x74] sm:$0xf]  ;;  %v5288_v4 = vld [vmem:[%s9337_s2 + $0x78] sm:$0xf0] }
  0x14   : > { %s7748_s25 = scalar_select %p455_p6, %s7741_s20, 1  ;;  %v5287_v3 = vor.u32 %v7164_v1, %v5286_v0  ;;  %v5328_v5 = vld [vmem:[%s9337_s2 + $0xb0] sm:$0xf]  ;;  %v7172_v6 = vld [vmem:[%s9337_s2 + $0xb4] sm:$0xf0]  ;;  %v5291_v7 = vor.u32 %v7163_v2, %v5288_v4  ;;  %vm548_vm1 = vcmask 1040384  }
  0x15   : > { %v5329_v8 = vor.u32 %v7172_v6, %v5328_v5  ;;  %v7171_v9 = vld [vmem:[%s9337_s2 + $0xb4] sm:$0xf]  ;;  %v5330_v10 = vld [vmem:[%s9337_s2 + $0xb8] sm:$0xf0]  ;;  %v5278_v11 = vld [vmem:[%s9337_s2 + $0x60] sm:$0xf] }
  0x16   : > { %s7156_s26 = sshll.u32 %s7748_s25, 3  ;;  %523 = vmatpush.bf16.msra.mxu0 %v5287_v3  ;;  %v5333_v12 = vor.u32 %v7171_v9, %v5330_v10  ;;  %v7162_v13 = vld [vmem:[%s9337_s2 + $0x64] sm:$0xf0]  ;;  %v7161_v14 = vld [vmem:[%s9337_s2 + $0x64] sm:$0xf]  ;;  %536 = vmatpush.bf16.msra.mxu1 %v5291_v7  ;;  %vm652_vm4 = vcmask 1044484   ;;  %s462_s0 = scalar_lea.vmem %s9349_s14, %s7748_s25 }
  0x17   : > { %v5280_v15 = vld [vmem:[%s9337_s2 + $0x68] sm:$0xf0]  ;;  %614 = vmatpush.bf16.msra.mxu2 %v5329_v8  ;;  %v5279_v16 = vor.u32 %v7162_v13, %v5278_v11  ;;  %v5320_v18 = vld [vmem:[%s9337_s2 + $0xa0] sm:$0xf]  ;;  %v7170_v19 = vld [vmem:[%s9337_s2 + $0xa4] sm:$0xf0]  ;;  %s7828_s23 = scalar_lea.vmem %s9336_s1, %s7156_s26 }
  0x18   : > { %v5283_v17 = vor.u32 %v7161_v14, %v5280_v15  ;;  %v7169_v20 = vld [vmem:[%s9337_s2 + $0xa4] sm:$0xf]  ;;  %627 = vmatpush.bf16.msra.mxu3 %v5333_v12  ;;  %v5321_v21 = vor.u32 %v7170_v19, %v5320_v18  ;;  %v5322_v22 = vld [vmem:[%s9337_s2 + $0xa8] sm:$0xf0]  ;;  %v5270_v23 = vld [vmem:[%s9337_s2 + $0x50] sm:$0xf] }
  0x19   : > { %v7160_v24 = vld [vmem:[%s9337_s2 + $0x54] sm:$0xf0]  ;;  %v5325_v25 = vor.u32 %v7169_v20, %v5322_v22  ;;  %v7159_v26 = vld [vmem:[%s9337_s2 + $0x54] sm:$0xf]  ;;  %v5272_v27 = vld [vmem:[%s9337_s2 + $0x58] sm:$0xf0] }
  0x1a   : > { %v5312_v28 = vld [vmem:[%s9337_s2 + $0x90] sm:$0xf]  ;;  %524 = vmatpush.bf16.msra.mxu0 %v5279_v16  ;;  %v5271_v29 = vor.u32 %v7160_v24, %v5270_v23  ;;  %v7168_v30 = vld [vmem:[%s9337_s2 + $0x94] sm:$0xf0]  ;;  %v7167_v31 = vld [vmem:[%s9337_s2 + $0x94] sm:$0xf]  ;;  %537 = vmatpush.bf16.msra.mxu1 %v5283_v17  ;;  %v5275_v33 = vor.u32 %v7159_v26, %v5272_v27 }
  0x1b   : > { %v5314_v32 = vld [vmem:[%s9337_s2 + $0x98] sm:$0xf0]  ;;  %615 = vmatpush.bf16.msra.mxu2 %v5321_v21  ;;  %v5313_v34 = vor.u32 %v7168_v30, %v5312_v28  ;;  %v5262_v35 = vld [vmem:[%s9337_s2 + $0x40] sm:$0xf]  ;;  %v7158_v36 = vld [vmem:[%s9337_s2 + $0x44] sm:$0xf0] }
  0x1c   : > { %v7157_v37 = vld [vmem:[%s9337_s2 + $0x44] sm:$0xf]  ;;  %628 = vmatpush.bf16.msra.mxu3 %v5325_v25  ;;  %v5317_v38 = vor.u32 %v7167_v31, %v5314_v32  ;;  %v5264_v39 = vld [vmem:[%s9337_s2 + $0x48] sm:$0xf0]  ;;  %v5304_v40 = vld [vmem:[%s9337_s2 + $0x80] sm:$0xf]  ;;  %v5263_v45 = vor.u32 %v7158_v36, %v5262_v35 }
  0x1d   : > { %v7166_v41 = vld [vmem:[%s9337_s2 + $0x84] sm:$0xf0]  ;;  %v7165_v42 = vld [vmem:[%s9337_s2 + $0x84] sm:$0xf]  ;;  %v5306_v43 = vld [vmem:[%s9337_s2 + $0x88] sm:$0xf0]  ;;  %v5267_v49 = vor.u32 %v7157_v37, %v5264_v39 }
  0x1e   : > { %v465_v44 = vld [vmem:[%s7828_s23] sm:$0x1]  ;;  %525 = vmatpush.bf16.msra.mxu0 %v5271_v29  ;;  %v7179_v47 = vld [vmem:[%s9337_s2 + $0x34] sm:$0xf]  ;;  %v5364_v48 = vld [vmem:[%s9337_s2 + $0x38] sm:$0xf0]  ;;  %538 = vmatpush.bf16.msra.mxu1 %v5275_v33  ;;  %v5305_v50 = vor.u32 %v7166_v41, %v5304_v40  ;;  %v5309_v53 = vor.u32 %v7165_v42, %v5306_v43 }
  0x1f   : > { %v562_v46 = vunpack.c.l.b16 %v465_v44  ;;  %616 = vmatpush.bf16.msra.mxu2 %v5313_v34  ;;  %v5404_v51 = vld [vmem:[%s9337_s2 + $0x70] sm:$0xf]  ;;  %v7188_v52 = vld [vmem:[%s9337_s2 + $0x74] sm:$0xf0]  ;;  %v5367_v55 = vor.u32 %v7179_v47, %v5364_v48  ;;  %v7187_v58 = vld [vmem:[%s9337_s2 + $0x74] sm:$0xf] }
  0x20   : > { %629 = vmatpush.bf16.msra.mxu3 %v5317_v38  ;;  %v5362_v56 = vld [vmem:[%s9337_s2 + $0x30] sm:$0xf]  ;;  %v7180_v57 = vld [vmem:[%s9337_s2 + $0x34] sm:$0xf0]  ;;  %v5405_v59 = vor.u32 %v7188_v52, %v5404_v51  ;;  %v5406_v60 = vld [vmem:[%s9337_s2 + $0x78] sm:$0xf0] }
  0x21   : > { %v563_v54 = vpack.c.b16 %v562_v46, %v562_v46  ;;  %v7177_v61 = vld [vmem:[%s9337_s2 + $0x24] sm:$0xf]  ;;  %v5356_v62 = vld [vmem:[%s9337_s2 + $0x28] sm:$0xf0]  ;;  %v5396_v0 = vld [vmem:[%s9337_s2 + $0x60] sm:$0xf]  ;;  %v5363_v2 = vor.u32 %v7180_v57, %v5362_v56  ;;  %v5409_v3 = vor.u32 %v7187_v58, %v5406_v60 }
  0x22   : > { %526 = vmatpush.bf16.msra.mxu0 %v5263_v45  ;;  %v7186_v1 = vld [vmem:[%s9337_s2 + $0x64] sm:$0xf0]  ;;  %539 = vmatpush.bf16.msra.mxu1 %v5267_v49  ;;  %v5359_v4 = vor.u32 %v7177_v61, %v5356_v62  ;;  %v5354_v5 = vld [vmem:[%s9337_s2 + $0x20] sm:$0xf]  ;;  %v7185_v7 = vld [vmem:[%s9337_s2 + $0x64] sm:$0xf] }
  0x23   : > { %v565_v63 = vshrl.u32 %v563_v54, 16  ;;  %617 = vmatpush.bf16.msra.mxu2 %v5305_v50  ;;  %v7178_v6 = vld [vmem:[%s9337_s2 + $0x24] sm:$0xf0]  ;;  %v5397_v8 = vor.u32 %v7186_v1, %v5396_v0  ;;  %v5398_v9 = vld [vmem:[%s9337_s2 + $0x68] sm:$0xf0]  ;;  %vm1221_vm13 = vcmask 1041409  }
  0x24   : > { %630 = vmatpush.bf16.msra.mxu3 %v5309_v53  ;;  %v7175_v10 = vld [vmem:[%s9337_s2 + $0x14] sm:$0xf]  ;;  %v5348_v11 = vld [vmem:[%s9337_s2 + $0x18] sm:$0xf0]  ;;  %v5388_v12 = vld [vmem:[%s9337_s2 + $0x50] sm:$0xf]  ;;  %v5355_v14 = vor.u32 %v7178_v6, %v5354_v5  ;;  %v5401_v18 = vor.u32 %v7185_v7, %v5398_v9 }
  0x25   : > { %5292 = vmatmul.msk.bf16.vlgmr.msra.gmra.mxu0 %vm515_vm0, %v465_v44  ;;  %5293 = vmatmul.msk.bf16.vlgmr.msra.gmra.mxu1 %vm515_vm0, %v465_v44  ;;  %v7184_v13 = vld [vmem:[%s9337_s2 + $0x54] sm:$0xf0]  ;;  %v5346_v15 = vld [vmem:[%s9337_s2 + $0x10] sm:$0xf]  ;;  %v7183_v17 = vld [vmem:[%s9337_s2 + $0x54] sm:$0xf]  ;;  %v5351_v19 = vor.u32 %v7175_v10, %v5348_v11 }
  0x26   : > { %735 = vmatpush.bf16.msrb.mxu1 %v5367_v55  ;;  %5334 = vmatmul.msk.bf16.vlgmr.msra.gmra.mxu2 %vm515_vm0, %v565_v63  ;;  %v7176_v16 = vld [vmem:[%s9337_s2 + $0x14] sm:$0xf0]  ;;  %v5390_v20 = vld [vmem:[%s9337_s2 + $0x58] sm:$0xf0]  ;;  %v7173_v21 = vld [vmem:[%s9337_s2 + $0x4] sm:$0xf]  ;;  %v5389_v23 = vor.u32 %v7184_v13, %v5388_v12 }
  0x27   : > { %810 = vmatpush.bf16.msrb.mxu2 %v5405_v59  ;;  %5335 = vmatmul.msk.bf16.vlgmr.msra.gmra.mxu3 %vm515_vm0, %v565_v63  ;;  %v5340_v22 = vld [vmem:[%s9337_s2 + $0x8] sm:$0xf0]  ;;  %v5380_v24 = vld [vmem:[%s9337_s2 + $0x40] sm:$0xf]  ;;  %v7182_v27 = vld [vmem:[%s9337_s2 + $0x44] sm:$0xf0]  ;;  %v5347_v31 = vor.u32 %v7176_v16, %v5346_v15  ;;  %v5393_v36 = vor.u32 %v7183_v17, %v5390_v20 }
  0x28   : > { %722 = vmatpush.bf16.msrb.mxu0 %v5363_v2  ;;  %823 = vmatpush.bf16.msrb.mxu3 %v5409_v3  ;;  %v660_v25 = vld [vmem:[%s7828_s23] sm:$0x1]  ;;  %v750_v26 = vld [vmem:[%s7828_s23] sm:$0x2]  ;;  %v7195_v29 = vld [vmem:[%s9337_s2 + $0xb4] sm:$0xf]  ;;  %v5343_v37 = vor.u32 %v7173_v21, %v5340_v22  ;;  %v5381_v41 = vor.u32 %v7182_v27, %v5380_v24 }
  0x29   : > { %v670_v28 = vunpack.c.l.b16 %v660_v25  ;;  %v5448_v30 = vld [vmem:[%s9337_s2 + $0xb8] sm:$0xf0]  ;;  %v5338_v32 = vld [vmem:[%s9337_s2] sm:$0xf]  ;;  %v760_v33 = vunpack.c.l.b16 %v750_v26  ;;  %v5480_v34 = vld [vmem:[%s9337_s2 + $0x30] sm:$0xf] }
  0x2a   : > { %736 = vmatpush.bf16.msrb.mxu1 %v5359_v4  ;;  %v7204_v35 = vld [vmem:[%s9337_s2 + $0x34] sm:$0xf0]  ;;  %v7174_v38 = vld [vmem:[%s9337_s2 + $0x4] sm:$0xf0]  ;;  %v7181_v39 = vld [vmem:[%s9337_s2 + $0x44] sm:$0xf]  ;;  %v5451_v43 = vor.u32 %v7195_v29, %v5448_v30 }
  0x2b   : > { %811 = vmatpush.bf16.msrb.mxu2 %v5397_v8  ;;  %v5382_v40 = vld [vmem:[%s9337_s2 + $0x48] sm:$0xf0]  ;;  %v671_v42 = vpack.c.b16 %v670_v28, %v670_v28  ;;  %v5446_v44 = vld [vmem:[%s9337_s2 + $0xb0] sm:$0xf]  ;;  %v7196_v45 = vld [vmem:[%s9337_s2 + $0xb4] sm:$0xf0]  ;;  %v5481_v47 = vor.u32 %v7204_v35, %v5480_v34  ;;  %v5339_v51 = vor.u32 %v7174_v38, %v5338_v32  ;;  %v7987_v52 = vpack.c.b16 %v760_v33, %v760_v33 }
  0x2c   : > { %723 = vmatpush.bf16.msrb.mxu0 %v5355_v14  ;;  %824 = vmatpush.bf16.msrb.mxu3 %v5401_v18  ;;  %v7203_v46 = vld [vmem:[%s9337_s2 + $0x34] sm:$0xf]  ;;  %v5482_v48 = vld [vmem:[%s9337_s2 + $0x38] sm:$0xf0]  ;;  %v7193_v49 = vld [vmem:[%s9337_s2 + $0xa4] sm:$0xf]  ;;  %v5385_v53 = vor.u32 %v7181_v39, %v5382_v40  ;;  %v5447_v54 = vor.u32 %v7196_v45, %v5446_v44 }
  0x2d   : > { %v5440_v50 = vld [vmem:[%s9337_s2 + $0xa8] sm:$0xf0]  ;;  %v5438_v55 = vld [vmem:[%s9337_s2 + $0xa0] sm:$0xf]  ;;  %v7194_v56 = vld [vmem:[%s9337_s2 + $0xa4] sm:$0xf0]  ;;  %v5485_v59 = vor.u32 %v7203_v46, %v5482_v48 }
  0x2e   : > { %737 = vmatpush.bf16.msrb.mxu1 %v5351_v19  ;;  %v5472_v57 = vld [vmem:[%s9337_s2 + $0x20] sm:$0xf]  ;;  %v673_v58 = vshrl.u32 %v671_v42, 16  ;;  %v5443_v60 = vor.u32 %v7193_v49, %v5440_v50  ;;  %v7202_v61 = vld [vmem:[%s9337_s2 + $0x24] sm:$0xf0]  ;;  %v762_v2 = vrot.slane %v7987_v52, 1  ;;  %v5439_v3 = vor.u32 %v7194_v56, %v5438_v55 }
  0x2f   : > { %812 = vmatpush.bf16.msrb.mxu2 %v5389_v23  ;;  %v7201_v62 = vld [vmem:[%s9337_s2 + $0x24] sm:$0xf]  ;;  %v5474_v63 = vld [vmem:[%s9337_s2 + $0x28] sm:$0xf0]  ;;  %v7191_v0 = vld [vmem:[%s9337_s2 + $0x94] sm:$0xf]  ;;  %v5473_v4 = vor.u32 %v7202_v61, %v5472_v57 }
  0x30   : > { %724 = vmatpush.bf16.msrb.mxu0 %v5347_v31  ;;  %825 = vmatpush.bf16.msrb.mxu3 %v5393_v36  ;;  %v5432_v1 = vld [vmem:[%s9337_s2 + $0x98] sm:$0xf0]  ;;  %v5430_v5 = vld [vmem:[%s9337_s2 + $0x90] sm:$0xf]  ;;  %v7192_v6 = vld [vmem:[%s9337_s2 + $0x94] sm:$0xf0]  ;;  %v5477_v8 = vor.u32 %v7201_v62, %v5474_v63 }
  0x31   : > { %v5464_v7 = vld [vmem:[%s9337_s2 + $0x10] sm:$0xf]  ;;  %v5435_v9 = vor.u32 %v7191_v0, %v5432_v1  ;;  %v7200_v10 = vld [vmem:[%s9337_s2 + $0x14] sm:$0xf0]  ;;  %v7199_v11 = vld [vmem:[%s9337_s2 + $0x14] sm:$0xf]  ;;  %v5431_v19 = vor.u32 %v7192_v6, %v5430_v5 }
  0x32   : > { %738 = vmatpush.bf16.msrb.mxu1 %v5343_v37  ;;  %v945_v12 = vld [vmem:[%s7828_s23] sm:$0x2]  ;;  %v5466_v13 = vld [vmem:[%s9337_s2 + $0x18] sm:$0xf0]  ;;  %v7189_v14 = vld [vmem:[%s9337_s2 + $0x84] sm:$0xf]  ;;  %v5465_v20 = vor.u32 %v7200_v10, %v5464_v7 }
  0x33   : > { %813 = vmatpush.bf16.msrb.mxu2 %v5381_v41  ;;  %v5424_v15 = vld [vmem:[%s9337_s2 + $0x88] sm:$0xf0]  ;;  %v955_v16 = vunpack.c.l.b16 %v945_v12  ;;  %v7211_v17 = vld [vmem:[%s9337_s2 + $0x74] sm:$0xf]  ;;  %v5524_v18 = vld [vmem:[%s9337_s2 + $0x78] sm:$0xf0]  ;;  %v5469_v24 = vor.u32 %v7199_v11, %v5466_v13 }
  0x34   : > { %725 = vmatpush.bf16.msrb.mxu0 %v5339_v51  ;;  %826 = vmatpush.bf16.msrb.mxu3 %v5385_v53  ;;  %v5422_v21 = vld [vmem:[%s9337_s2 + $0x80] sm:$0xf]  ;;  %v7190_v22 = vld [vmem:[%s9337_s2 + $0x84] sm:$0xf0]  ;;  %v5427_v25 = vor.u32 %v7189_v14, %v5424_v15  ;;  %v7197_v27 = vld [vmem:[%s9337_s2 + $0x4] sm:$0xf]  ;;  %v5527_v29 = vor.u32 %v7211_v17, %v5524_v18 }
  0x35   : > { %5369 = vmatmul.msk.bf16.vlgmr.msrb.gmra.mxu1 %vm515_vm0, %v673_v58  ;;  %v5456_v23 = vld [vmem:[%s9337_s2] sm:$0xf]  ;;  %v7198_v26 = vld [vmem:[%s9337_s2 + $0x4] sm:$0xf0]  ;;  %v5458_v28 = vld [vmem:[%s9337_s2 + $0x8] sm:$0xf0]  ;;  %v956_v33 = vpack.c.b16 %v955_v16, %v955_v16  ;;  %v5423_v38 = vor.u32 %v7190_v22, %v5422_v21 }
  0x36   : > { %910 = vmatpush.bf16.msra.mxu1 %v5451_v43  ;;  %5410 = vmatmul.msk.bf16.vlgmr.msrb.gmra.mxu2 %vm515_vm0, %v762_v2  ;;  %v5522_v30 = vld [vmem:[%s9337_s2 + $0x70] sm:$0xf]  ;;  %v7212_v31 = vld [vmem:[%s9337_s2 + $0x74] sm:$0xf0]  ;;  %v7219_v35 = vld [vmem:[%s9337_s2 + $0xb4] sm:$0xf]  ;;  %v5457_v39 = vor.u32 %v7198_v26, %v5456_v23  ;;  %v5461_v42 = vor.u32 %v7197_v27, %v5458_v28 }
  0x37   : > { %1008 = vmatpush.bf16.msra.mxu2 %v5481_v47  ;;  %5368 = vmatmul.msk.bf16.vlgmr.msrb.gmra.mxu0 %vm515_vm0, %v673_v58  ;;  %v5564_v32 = vld [vmem:[%s9337_s2 + $0xb0] sm:$0xf]  ;;  %v7220_v34 = vld [vmem:[%s9337_s2 + $0xb4] sm:$0xf0]  ;;  %v5566_v36 = vld [vmem:[%s9337_s2 + $0xb8] sm:$0xf0]  ;;  %v5523_v43 = vor.u32 %v7212_v31, %v5522_v30 }
  0x38   : > { %897 = vmatpush.bf16.msra.mxu0 %v5447_v54  ;;  %1021 = vmatpush.bf16.msra.mxu3 %v5485_v59  ;;  %v847_v37 = vshrl.u32 %v7987_v52, 16  ;;  %v7209_v40 = vld [vmem:[%s9337_s2 + $0x64] sm:$0xf]  ;;  %v5516_v41 = vld [vmem:[%s9337_s2 + $0x68] sm:$0xf0]  ;;  %v5565_v44 = vor.u32 %v7220_v34, %v5564_v32  ;;  %v5569_v45 = vor.u32 %v7219_v35, %v5566_v36  ;;  %v958_v48 = vshrl.u32 %v956_v33, 16 }
  0x39   : > { %5411 = vmatmul.msk.bf16.vlgmr.msrb.gmra.mxu3 %vm515_vm0, %v762_v2  ;;  %v5514_v46 = vld [vmem:[%s9337_s2 + $0x60] sm:$0xf]  ;;  %v7210_v47 = vld [vmem:[%s9337_s2 + $0x64] sm:$0xf0]  ;;  %v5519_v49 = vor.u32 %v7209_v40, %v5516_v41  ;;  %v7217_v54 = vld [vmem:[%s9337_s2 + $0xa4] sm:$0xf] }
  0x3a   : > { %911 = vmatpush.bf16.msra.mxu1 %v5443_v60  ;;  %v849_v50 = vrot.slane %v847_v37, 1  ;;  %v5556_v51 = vld [vmem:[%s9337_s2 + $0xa0] sm:$0xf]  ;;  %v7218_v52 = vld [vmem:[%s9337_s2 + $0xa4] sm:$0xf0]  ;;  %v5515_v53 = vor.u32 %v7210_v47, %v5514_v46  ;;  %v960_v60 = vrot.slane %v958_v48, 1 }
  0x3b   : > { %1009 = vmatpush.bf16.msra.mxu2 %v5473_v4  ;;  %v5558_v55 = vld [vmem:[%s9337_s2 + $0xa8] sm:$0xf0]  ;;  %v7207_v56 = vld [vmem:[%s9337_s2 + $0x54] sm:$0xf]  ;;  %v5508_v57 = vld [vmem:[%s9337_s2 + $0x58] sm:$0xf0]  ;;  %v5557_v62 = vor.u32 %v7218_v52, %v5556_v51 }
  0x3c   : > { %898 = vmatpush.bf16.msra.mxu0 %v5439_v3  ;;  %1022 = vmatpush.bf16.msra.mxu3 %v5477_v8  ;;  %v5506_v58 = vld [vmem:[%s9337_s2 + $0x50] sm:$0xf]  ;;  %v7208_v59 = vld [vmem:[%s9337_s2 + $0x54] sm:$0xf0]  ;;  %v5561_v63 = vor.u32 %v7217_v54, %v5558_v55  ;;  %v7215_v1 = vld [vmem:[%s9337_s2 + $0x94] sm:$0xf]  ;;  %v5511_v3 = vor.u32 %v7207_v56, %v5508_v57 }
  0x3d   : > { %v5548_v61 = vld [vmem:[%s9337_s2 + $0x90] sm:$0xf]  ;;  %v7216_v0 = vld [vmem:[%s9337_s2 + $0x94] sm:$0xf0]  ;;  %v1036_v2 = vld [vmem:[%s7828_s23] sm:$0x4]  ;;  %v5507_v4 = vor.u32 %v7208_v59, %v5506_v58 }
  0x3e   : > { %912 = vmatpush.bf16.msra.mxu1 %v5435_v9  ;;  %v5550_v5 = vld [vmem:[%s9337_s2 + $0x98] sm:$0xf0]  ;;  %v7205_v6 = vld [vmem:[%s9337_s2 + $0x44] sm:$0xf]  ;;  %v5500_v7 = vld [vmem:[%s9337_s2 + $0x48] sm:$0xf0]  ;;  %v1046_v11 = vunpack.c.l.b16 %v1036_v2  ;;  %v5549_v15 = vor.u32 %v7216_v0, %v5548_v61 }
  0x3f   : > { %1010 = vmatpush.bf16.msra.mxu2 %v5465_v20  ;;  %v5498_v8 = vld [vmem:[%s9337_s2 + $0x40] sm:$0xf]  ;;  %v7206_v9 = vld [vmem:[%s9337_s2 + $0x44] sm:$0xf0]  ;;  %v7227_v10 = vld [vmem:[%s9337_s2 + $0x34] sm:$0xf]  ;;  %v5553_v16 = vor.u32 %v7215_v1, %v5550_v5  ;;  %v5503_v20 = vor.u32 %v7205_v6, %v5500_v7 }
  0x40   : > { %899 = vmatpush.bf16.msra.mxu0 %v5431_v19  ;;  %1023 = vmatpush.bf16.msra.mxu3 %v5469_v24  ;;  %v5600_v12 = vld [vmem:[%s9337_s2 + $0x38] sm:$0xf0]  ;;  %v5598_v13 = vld [vmem:[%s9337_s2 + $0x30] sm:$0xf]  ;;  %v7228_v14 = vld [vmem:[%s9337_s2 + $0x34] sm:$0xf0]  ;;  %v5499_v21 = vor.u32 %v7206_v9, %v5498_v8  ;;  %v1047_v30 = vpack.c.b16 %v1046_v11, %v1046_v11 }
  0x41   : > { %v5540_v17 = vld [vmem:[%s9337_s2 + $0x80] sm:$0xf]  ;;  %v7214_v18 = vld [vmem:[%s9337_s2 + $0x84] sm:$0xf0]  ;;  %v7213_v19 = vld [vmem:[%s9337_s2 + $0x84] sm:$0xf]  ;;  %v5599_v26 = vor.u32 %v7228_v14, %v5598_v13 }
  0x42   : > { %913 = vmatpush.bf16.msra.mxu1 %v5427_v25  ;;  %v5542_v22 = vld [vmem:[%s9337_s2 + $0x88] sm:$0xf0]  ;;  %v5640_v23 = vld [vmem:[%s9337_s2 + $0x70] sm:$0xf]  ;;  %v7236_v24 = vld [vmem:[%s9337_s2 + $0x74] sm:$0xf0]  ;;  %v5603_v25 = vor.u32 %v7227_v10, %v5600_v12  ;;  %v5541_v34 = vor.u32 %v7214_v18, %v5540_v17 }
  0x43   : > { %1011 = vmatpush.bf16.msra.mxu2 %v5457_v39  ;;  %v7235_v27 = vld [vmem:[%s9337_s2 + $0x74] sm:$0xf]  ;;  %v5642_v28 = vld [vmem:[%s9337_s2 + $0x78] sm:$0xf0]  ;;  %v5592_v31 = vld [vmem:[%s9337_s2 + $0x28] sm:$0xf0]  ;;  %v5545_v35 = vor.u32 %v7213_v19, %v5542_v22  ;;  %v5641_v36 = vor.u32 %v7236_v24, %v5640_v23 }
  0x44   : > { %900 = vmatpush.bf16.msra.mxu0 %v5423_v38  ;;  %1024 = vmatpush.bf16.msra.mxu3 %v5461_v42  ;;  %v5590_v32 = vld [vmem:[%s9337_s2 + $0x20] sm:$0xf]  ;;  %v7226_v33 = vld [vmem:[%s9337_s2 + $0x24] sm:$0xf0]  ;;  %v5645_v37 = vor.u32 %v7235_v27, %v5642_v28  ;;  %v7233_v42 = vld [vmem:[%s9337_s2 + $0x64] sm:$0xf] }
  0x45   : > { %5453 = vmatmul.msk.bf16.vlgmr.msra.gmra.mxu1 %vm515_vm0, %v849_v50  ;;  %v5632_v38 = vld [vmem:[%s9337_s2 + $0x60] sm:$0xf]  ;;  %v5591_v40 = vor.u32 %v7226_v33, %v5590_v32  ;;  %v7234_v41 = vld [vmem:[%s9337_s2 + $0x64] sm:$0xf0]  ;;  %v7223_v46 = vld [vmem:[%s9337_s2 + $0x14] sm:$0xf] }
  0x46   : > { %1109 = vmatpush.bf16.msrb.mxu1 %v5527_v29  ;;  %5486 = vmatmul.msk.bf16.vlgmr.msra.gmra.mxu2 %vm515_vm0, %v960_v60  ;;  %v7225_v29 = vld [vmem:[%s9337_s2 + $0x24] sm:$0xf]  ;;  %v5584_v47 = vld [vmem:[%s9337_s2 + $0x18] sm:$0xf0]  ;;  %v1232_v48 = vld [vmem:[%s7828_s23] sm:$0x4] }
  0x47   : > { %1183 = vmatpush.bf16.msrb.mxu2 %v5565_v44  ;;  %5452 = vmatmul.msk.bf16.vlgmr.msra.gmra.mxu0 %vm515_vm0, %v849_v50  ;;  %v5595_v39 = vor.u32 %v7225_v29, %v5592_v31  ;;  %v1048_v44 = vrot.slane %v1047_v30, 2  ;;  %v5582_v51 = vld [vmem:[%s9337_s2 + $0x10] sm:$0xf]  ;;  %v7224_v52 = vld [vmem:[%s9337_s2 + $0x14] sm:$0xf0]  ;;  %v5587_v61 = vor.u32 %v7223_v46, %v5584_v47  ;;  %vm1224_vm15 = vcmask 1045509  }
  0x48   : > { %1096 = vmatpush.bf16.msrb.mxu0 %v5523_v43  ;;  %1196 = vmatpush.bf16.msrb.mxu3 %v5569_v45  ;;  %v5634_v43 = vld [vmem:[%s9337_s2 + $0x68] sm:$0xf0]  ;;  %v1133_v45 = vshrl.u32 %v1047_v30, 16  ;;  %v7232_v54 = vld [vmem:[%s9337_s2 + $0x54] sm:$0xf0]  ;;  %s5173_s16 = sld [smem:[#allocation6 + %s7741_s20]] }
  0x49   : > { %5487 = vmatmul.msk.bf16.vlgmr.msra.gmra.mxu3 %vm515_vm0, %v960_v60  ;;  %v5637_v50 = vor.u32 %v7233_v42, %v5634_v43  ;;  %v7231_v55 = vld [vmem:[%s9337_s2 + $0x54] sm:$0xf]  ;;  %v5626_v56 = vld [vmem:[%s9337_s2 + $0x58] sm:$0xf0]  ;;  %v7221_v58 = vld [vmem:[%s9337_s2 + $0x4] sm:$0xf]  ;;  %v1242_v60 = vunpack.c.l.b16 %v1232_v48 }
  0x4a   : > { %1110 = vmatpush.bf16.msrb.mxu1 %v5519_v49  ;;  %v5633_v49 = vor.u32 %v7234_v41, %v5632_v38  ;;  %v1135_v57 = vrot.slane %v1133_v45, 2  ;;  %v5576_v59 = vld [vmem:[%s9337_s2 + $0x8] sm:$0xf0]  ;;  %v7222_v0 = vld [vmem:[%s9337_s2 + $0x4] sm:$0xf0] }
  0x4b   : > { %1184 = vmatpush.bf16.msrb.mxu2 %v5557_v62  ;;  %v5583_v62 = vor.u32 %v7224_v52, %v5582_v51  ;;  %v5616_v1 = vld [vmem:[%s9337_s2 + $0x40] sm:$0xf]  ;;  %v7229_v5 = vld [vmem:[%s9337_s2 + $0x44] sm:$0xf]  ;;  %v5618_v6 = vld [vmem:[%s9337_s2 + $0x48] sm:$0xf0]  ;;  %v1243_v10 = vpack.c.b16 %v1242_v60, %v1242_v60  ;;  %v5579_v14 = vor.u32 %v7221_v58, %v5576_v59 }
  0x4c   : > { %1097 = vmatpush.bf16.msrb.mxu0 %v5515_v53  ;;  %1197 = vmatpush.bf16.msrb.mxu3 %v5561_v63  ;;  %v5624_v53 = vld [vmem:[%s9337_s2 + $0x50] sm:$0xf]  ;;  %v5574_v63 = vld [vmem:[%s9337_s2] sm:$0xf]  ;;  %v7243_v8 = vld [vmem:[%s9337_s2 + $0xb4] sm:$0xf] }
  0x4d   : > { %v5625_v2 = vor.u32 %v7232_v54, %v5624_v53  ;;  %v1323_v7 = vld [vmem:[%s7828_s23] sm:$0x8]  ;;  %v5684_v9 = vld [vmem:[%s9337_s2 + $0xb8] sm:$0xf0]  ;;  %v5682_v11 = vld [vmem:[%s9337_s2 + $0xb0] sm:$0xf] }
  0x4e   : > { %1111 = vmatpush.bf16.msrb.mxu1 %v5511_v3  ;;  %v5629_v3 = vor.u32 %v7231_v55, %v5626_v56  ;;  %v7244_v12 = vld [vmem:[%s9337_s2 + $0xb4] sm:$0xf0]  ;;  %v5716_v13 = vld [vmem:[%s9337_s2 + $0x30] sm:$0xf]  ;;  %v7251_v17 = vld [vmem:[%s9337_s2 + $0x34] sm:$0xf]  ;;  %v1333_v27 = vunpack.c.l.b16 %v1323_v7 }
  0x4f   : > { %1185 = vmatpush.bf16.msrb.mxu2 %v5549_v15  ;;  %v5575_v15 = vor.u32 %v7222_v0, %v5574_v63  ;;  %v5718_v18 = vld [vmem:[%s9337_s2 + $0x38] sm:$0xf0]  ;;  %v5683_v22 = vor.u32 %v7244_v12, %v5682_v11  ;;  %v7241_v23 = vld [vmem:[%s9337_s2 + $0xa4] sm:$0xf]  ;;  %v5676_v24 = vld [vmem:[%s9337_s2 + $0xa8] sm:$0xf0] }
  0x50   : > { %1098 = vmatpush.bf16.msrb.mxu0 %v5507_v4  ;;  %1198 = vmatpush.bf16.msrb.mxu3 %v5553_v16  ;;  %v7230_v4 = vld [vmem:[%s9337_s2 + $0x44] sm:$0xf0]  ;;  %v7252_v16 = vld [vmem:[%s9337_s2 + $0x34] sm:$0xf0]  ;;  %v5721_v29 = vor.u32 %v7251_v17, %v5718_v18  ;;  %v5708_v31 = vld [vmem:[%s9337_s2 + $0x20] sm:$0xf] }
  0x51   : > { %v5617_v19 = vor.u32 %v7230_v4, %v5616_v1  ;;  %v5717_v28 = vor.u32 %v7252_v16, %v5716_v13  ;;  %v7242_v30 = vld [vmem:[%s9337_s2 + $0xa4] sm:$0xf0]  ;;  %v7249_v33 = vld [vmem:[%s9337_s2 + $0x24] sm:$0xf]  ;;  %v7239_v41 = vld [vmem:[%s9337_s2 + $0x94] sm:$0xf] }
  0x52   : > { %1112 = vmatpush.bf16.msrb.mxu1 %v5503_v20  ;;  %v5621_v20 = vor.u32 %v7229_v5, %v5618_v6  ;;  %v7250_v32 = vld [vmem:[%s9337_s2 + $0x24] sm:$0xf0]  ;;  %v5668_v42 = vld [vmem:[%s9337_s2 + $0x98] sm:$0xf0]  ;;  %v5666_v43 = vld [vmem:[%s9337_s2 + $0x90] sm:$0xf] }
  0x53   : > { %1186 = vmatpush.bf16.msrb.mxu2 %v5541_v34  ;;  %v5710_v34 = vld [vmem:[%s9337_s2 + $0x28] sm:$0xf0]  ;;  %v5709_v38 = vor.u32 %v7250_v32, %v5708_v31  ;;  %v5700_v45 = vld [vmem:[%s9337_s2 + $0x10] sm:$0xf]  ;;  %v7248_v46 = vld [vmem:[%s9337_s2 + $0x14] sm:$0xf0]  ;;  %v5671_v52 = vor.u32 %v7239_v41, %v5668_v42 }
  0x54   : > { %1099 = vmatpush.bf16.msrb.mxu0 %v5499_v21  ;;  %1199 = vmatpush.bf16.msrb.mxu3 %v5545_v35  ;;  %v5687_v21 = vor.u32 %v7243_v8, %v5684_v9  ;;  %v5679_v35 = vor.u32 %v7241_v23, %v5676_v24  ;;  %v7247_v47 = vld [vmem:[%s9337_s2 + $0x14] sm:$0xf]  ;;  %v5702_v48 = vld [vmem:[%s9337_s2 + $0x18] sm:$0xf0]  ;;  %v5660_v51 = vld [vmem:[%s9337_s2 + $0x88] sm:$0xf0] }
  0x55   : > { %5529 = vmatmul.msk.bf16.vlgmr.msrb.gmra.mxu1 %vm515_vm0, %v1048_v44  ;;  %v5658_v54 = vld [vmem:[%s9337_s2 + $0x80] sm:$0xf]  ;;  %v7238_v55 = vld [vmem:[%s9337_s2 + $0x84] sm:$0xf0]  ;;  %v5705_v58 = vor.u32 %v7247_v47, %v5702_v48  ;;  %v5800_v63 = vld [vmem:[%s9337_s2 + $0xb0] sm:$0xf] }
  0x56   : > { %1308 = vmatpush.bf16.msra.mxu1 %v5603_v25  ;;  %5570 = vmatmul.msk.bf16.vlgmr.msrb.gmra.mxu2 %vm515_vm0, %v1135_v57  ;;  %v5674_v25 = vld [vmem:[%s9337_s2 + $0xa0] sm:$0xf]  ;;  %v7246_v60 = vld [vmem:[%s9337_s2 + $0x4] sm:$0xf0]  ;;  %v7268_v0 = vld [vmem:[%s9337_s2 + $0xb4] sm:$0xf0]  ;;  %v5659_v6 = vor.u32 %v7238_v55, %v5658_v54 }
  0x57   : > { %1383 = vmatpush.bf16.msra.mxu2 %v5641_v36  ;;  %5528 = vmatmul.msk.bf16.vlgmr.msrb.gmra.mxu0 %vm515_vm0, %v1048_v44  ;;  %v5675_v36 = vor.u32 %v7242_v30, %v5674_v25  ;;  %v7240_v44 = vld [vmem:[%s9337_s2 + $0x94] sm:$0xf0]  ;;  %v1519_v56 = vld [vmem:[%s7828_s23] sm:$0x8]  ;;  %v7267_v1 = vld [vmem:[%s9337_s2 + $0xb4] sm:$0xf]  ;;  %v5801_v12 = vor.u32 %v7268_v0, %v5800_v63 }
  0x58   : > { %1295 = vmatpush.bf16.msra.mxu0 %v5599_v26  ;;  %1396 = vmatpush.bf16.msra.mxu3 %v5645_v37  ;;  %v1245_v26 = vshrl.u32 %v1243_v10, 16  ;;  %v8313_v37 = vpack.c.b16 %v1333_v27, %v1333_v27  ;;  %v5667_v53 = vor.u32 %v7240_v44, %v5666_v43  ;;  %v5692_v59 = vld [vmem:[%s9337_s2] sm:$0xf]  ;;  %v7259_v4 = vld [vmem:[%s9337_s2 + $0x74] sm:$0xf] }
  0x59   : > { %5571 = vmatmul.msk.bf16.vlgmr.msrb.gmra.mxu3 %vm515_vm0, %v1135_v57  ;;  %v5701_v57 = vor.u32 %v7248_v46, %v5700_v45  ;;  %v5760_v7 = vld [vmem:[%s9337_s2 + $0x78] sm:$0xf0]  ;;  %v5758_v8 = vld [vmem:[%s9337_s2 + $0x70] sm:$0xf]  ;;  %v7260_v9 = vld [vmem:[%s9337_s2 + $0x74] sm:$0xf0]  ;;  %v5693_v10 = vor.u32 %v7246_v60, %v5692_v59 }
  0x5a   : > { %1309 = vmatpush.bf16.msra.mxu1 %v5595_v39  ;;  %v5713_v39 = vor.u32 %v7249_v33, %v5710_v34  ;;  %v7266_v16 = vld [vmem:[%s9337_s2 + $0xa4] sm:$0xf0]  ;;  %v5763_v18 = vor.u32 %v7259_v4, %v5760_v7  ;;  %v5752_v23 = vld [vmem:[%s9337_s2 + $0x68] sm:$0xf0]  ;;  %v5750_v24 = vld [vmem:[%s9337_s2 + $0x60] sm:$0xf] }
  0x5b   : > { %1384 = vmatpush.bf16.msra.mxu2 %v5633_v49  ;;  %v1335_v49 = vrot.slane %v8313_v37, 3  ;;  %v7258_v25 = vld [vmem:[%s9337_s2 + $0x64] sm:$0xf0]  ;;  %v5784_v32 = vld [vmem:[%s9337_s2 + $0x90] sm:$0xf] }
  0x5c   : > { %1296 = vmatpush.bf16.msra.mxu0 %v5591_v40  ;;  %1397 = vmatpush.bf16.msra.mxu3 %v5637_v50  ;;  %v1247_v40 = vrot.slane %v1245_v26, 2  ;;  %v7237_v50 = vld [vmem:[%s9337_s2 + $0x84] sm:$0xf]  ;;  %v5751_v30 = vor.u32 %v7258_v25, %v5750_v24  ;;  %v7264_v33 = vld [vmem:[%s9337_s2 + $0x94] sm:$0xf0] }
  0x5d   : > { %v5663_v5 = vor.u32 %v7237_v50, %v5660_v51  ;;  %v7263_v34 = vld [vmem:[%s9337_s2 + $0x94] sm:$0xf]  ;;  %v5776_v41 = vld [vmem:[%s9337_s2 + $0x80] sm:$0xf]  ;;  %v7262_v42 = vld [vmem:[%s9337_s2 + $0x84] sm:$0xf0]  ;;  %v5785_v43 = vor.u32 %v7264_v33, %v5784_v32 }
  0x5e   : > { %1310 = vmatpush.bf16.msra.mxu1 %v5587_v61  ;;  %v7245_v61 = vld [vmem:[%s9337_s2 + $0x4] sm:$0xf]  ;;  %v5778_v46 = vld [vmem:[%s9337_s2 + $0x88] sm:$0xf0]  ;;  %v5876_v51 = vld [vmem:[%s9337_s2 + $0x70] sm:$0xf]  ;;  %v5777_v59 = vor.u32 %v7262_v42, %v5776_v41 }
  0x5f   : > { %1385 = vmatpush.bf16.msra.mxu2 %v5625_v2  ;;  %v5802_v2 = vld [vmem:[%s9337_s2 + $0xb8] sm:$0xf0]  ;;  %v7261_v45 = vld [vmem:[%s9337_s2 + $0x84] sm:$0xf]  ;;  %v5736_v50 = vld [vmem:[%s9337_s2 + $0x48] sm:$0xf0] }
  0x60   : > { %1297 = vmatpush.bf16.msra.mxu0 %v5583_v62  ;;  %1398 = vmatpush.bf16.msra.mxu3 %v5629_v3  ;;  %v5694_v62 = vld [vmem:[%s9337_s2 + $0x8] sm:$0xf0]  ;;  %v1529_v3 = vunpack.c.l.b16 %v1519_v56  ;;  %v5805_v13 = vor.u32 %v7267_v1, %v5802_v2  ;;  %v7253_v47 = vld [vmem:[%s9337_s2 + $0x44] sm:$0xf]  ;;  %v7283_v54 = vld [vmem:[%s9337_s2 + $0x74] sm:$0xf]  ;;  %v5781_v60 = vor.u32 %v7261_v45, %v5778_v46 }
  0x61   : > { %v5697_v11 = vor.u32 %v7245_v61, %v5694_v62  ;;  %v5878_v55 = vld [vmem:[%s9337_s2 + $0x78] sm:$0xf0]  ;;  %v5734_v56 = vld [vmem:[%s9337_s2 + $0x40] sm:$0xf]  ;;  %v7276_v62 = vld [vmem:[%s9337_s2 + $0x34] sm:$0xf0]  ;;  %v5739_v1 = vor.u32 %v7253_v47, %v5736_v50 }
  0x62   : > { %1311 = vmatpush.bf16.msra.mxu1 %v5579_v14  ;;  %v1420_v14 = vshrl.u32 %v8313_v37, 16  ;;  %v1530_v17 = vpack.c.b16 %v1529_v3, %v1529_v3  ;;  %v5744_v37 = vld [vmem:[%s9337_s2 + $0x58] sm:$0xf0]  ;;  %v7275_v63 = vld [vmem:[%s9337_s2 + $0x34] sm:$0xf]  ;;  %v5881_v3 = vor.u32 %v7283_v54, %v5878_v55 }
  0x63   : > { %1386 = vmatpush.bf16.msra.mxu2 %v5617_v19  ;;  %v5759_v19 = vor.u32 %v7260_v9, %v5758_v8  ;;  %v5836_v0 = vld [vmem:[%s9337_s2 + $0x38] sm:$0xf0]  ;;  %v7281_v9 = vld [vmem:[%s9337_s2 + $0x64] sm:$0xf]  ;;  %v5854_v33 = vld [vmem:[%s9337_s2 + $0x48] sm:$0xf0] }
  0x64   : > { %1298 = vmatpush.bf16.msra.mxu0 %v5575_v15  ;;  %1399 = vmatpush.bf16.msra.mxu3 %v5621_v20  ;;  %v5792_v15 = vld [vmem:[%s9337_s2 + $0xa0] sm:$0xf]  ;;  %v7265_v20 = vld [vmem:[%s9337_s2 + $0xa4] sm:$0xf]  ;;  %v1422_v31 = vrot.slane %v1420_v14, 3  ;;  %v5839_v8 = vor.u32 %v7275_v63, %v5836_v0 }
  0x65   : > { %5605 = vmatmul.msk.bf16.vlgmr.msra.gmra.mxu1 %vm515_vm0, %v1247_v40  ;;  %v5793_v26 = vor.u32 %v7266_v16, %v5792_v15  ;;  %v7273_v14 = vld [vmem:[%s9337_s2 + $0x24] sm:$0xf]  ;;  %v5828_v15 = vld [vmem:[%s9337_s2 + $0x28] sm:$0xf0]  ;;  %v5862_v24 = vld [vmem:[%s9337_s2 + $0x58] sm:$0xf0] }
  0x66   : > { %1483 = vmatpush.bf16.msrb.mxu1 %v5687_v21  ;;  %5646 = vmatmul.msk.bf16.vlgmr.msra.gmra.mxu2 %vm515_vm0, %v1335_v49  ;;  %v5794_v21 = vld [vmem:[%s9337_s2 + $0xa8] sm:$0xf0]  ;;  %v7277_v32 = vld [vmem:[%s9337_s2 + $0x44] sm:$0xf]  ;;  %v5918_v47 = vld [vmem:[%s9337_s2 + $0xb0] sm:$0xf] }
  0x67   : > { %1582 = vmatpush.bf16.msrb.mxu2 %v5717_v28  ;;  %5604 = vmatmul.msk.bf16.vlgmr.msra.gmra.mxu0 %vm515_vm0, %v1247_v40  ;;  %v5797_v27 = vor.u32 %v7265_v20, %v5794_v21  ;;  %v1532_v28 = vshrl.u32 %v1530_v17, 16  ;;  %v5831_v21 = vor.u32 %v7273_v14, %v5828_v15  ;;  %v5812_v45 = vld [vmem:[%s9337_s2 + $0x8] sm:$0xf0]  ;;  %v7292_v50 = vld [vmem:[%s9337_s2 + $0xb4] sm:$0xf0] }
  0x68   : > { %1470 = vmatpush.bf16.msrb.mxu0 %v5683_v22  ;;  %1595 = vmatpush.bf16.msrb.mxu3 %v5721_v29  ;;  %v7257_v22 = vld [vmem:[%s9337_s2 + $0x64] sm:$0xf]  ;;  %v5944_v55 = vld [vmem:[%s9337_s2 + $0x20] sm:$0xf]  ;;  %v5946_v0 = vld [vmem:[%s9337_s2 + $0x28] sm:$0xf0] }
  0x69   : > { %5647 = vmatmul.msk.bf16.vlgmr.msra.gmra.mxu3 %vm515_vm0, %v1335_v49  ;;  %v5755_v29 = vor.u32 %v7257_v22, %v5752_v23  ;;  %v1534_v40 = vrot.slane %v1532_v28, 3  ;;  %v7279_v23 = vld [vmem:[%s9337_s2 + $0x54] sm:$0xf]  ;;  %v7297_v63 = vld [vmem:[%s9337_s2 + $0x24] sm:$0xf] }
  0x6a   : > { %1484 = vmatpush.bf16.msrb.mxu1 %v5679_v35  ;;  %v5786_v35 = vld [vmem:[%s9337_s2 + $0x98] sm:$0xf0]  ;;  %v7271_v28 = vld [vmem:[%s9337_s2 + $0x14] sm:$0xf]  ;;  %vm650_vm2 = vsmask.f32 256 }
  0x6b   : > { %1583 = vmatpush.bf16.msrb.mxu2 %v5709_v38  ;;  %v5742_v38 = vld [vmem:[%s9337_s2 + $0x50] sm:$0xf]  ;;  %v5789_v44 = vor.u32 %v7263_v34, %v5786_v35  ;;  %v7300_v35 = vld [vmem:[%s9337_s2 + $0x34] sm:$0xf0]  ;;  %v5938_v14 = vld [vmem:[%s9337_s2 + $0x18] sm:$0xf0] }
  0x6c   : > { %1471 = vmatpush.bf16.msrb.mxu0 %v5675_v36  ;;  %1596 = vmatpush.bf16.msrb.mxu3 %v5713_v39  ;;  %v7255_v36 = vld [vmem:[%s9337_s2 + $0x54] sm:$0xf]  ;;  %v7256_v39 = vld [vmem:[%s9337_s2 + $0x54] sm:$0xf0]  ;;  %v5952_v34 = vld [vmem:[%s9337_s2 + $0x30] sm:$0xf] }
  0x6d   : > { %v5747_v48 = vor.u32 %v7255_v36, %v5744_v37  ;;  %v5743_v49 = vor.u32 %v7256_v39, %v5742_v38  ;;  %v5865_v36 = vor.u32 %v7279_v23, %v5862_v24  ;;  %v7299_v38 = vld [vmem:[%s9337_s2 + $0x34] sm:$0xf]  ;;  %v5954_v39 = vld [vmem:[%s9337_s2 + $0x38] sm:$0xf0]  ;;  %v5953_v46 = vor.u32 %v7300_v35, %v5952_v34  ;;  %v5928_v24 = vld [vmem:[%s9337_s2] sm:$0xf] }
  0x6e   : > { %1485 = vmatpush.bf16.msrb.mxu1 %v5671_v52  ;;  %v8464_v52 = vld [vmem:[%s7828_s23 + $0x4] sm:$0x1]  ;;  %v5894_v35 = vld [vmem:[%s9337_s2 + $0x80] sm:$0xf]  ;;  %vm653_vm3 = vsmask.f32 4352  ;;  %vm8866_vm5 = vmand %vm548_vm1, %vm650_vm2 }
  0x6f   : > { %1584 = vmatpush.bf16.msrb.mxu2 %v5701_v57  ;;  %v7254_v57 = vld [vmem:[%s9337_s2 + $0x44] sm:$0xf0]  ;;  %v1703_v61 = vunpack.c.l.b16 %v8464_v52  ;;  %vm8884_vm6 = vmand %vm652_vm4, %vm653_vm3  ;;  %vm938_vm8 = vsmask.f32 7954  ;;  %vm936_vm9 = vsmask.f32 7938 }
  0x70   : > { %1472 = vmatpush.bf16.msrb.mxu0 %v5667_v53  ;;  %1597 = vmatpush.bf16.msrb.mxu3 %v5705_v58  ;;  %v7284_v53 = vld [vmem:[%s9337_s2 + $0x74] sm:$0xf0]  ;;  %v5834_v58 = vld [vmem:[%s9337_s2 + $0x30] sm:$0xf]  ;;  %v5735_v4 = vor.u32 %v7254_v57, %v5734_v56  ;;  %v7298_v56 = vld [vmem:[%s9337_s2 + $0x24] sm:$0xf0]  ;;  %v5957_v57 = vor.u32 %v7299_v38, %v5954_v39 }
  0x71   : > { %v5877_v2 = vor.u32 %v7284_v53, %v5876_v51  ;;  %v5835_v7 = vor.u32 %v7276_v62, %v5834_v58  ;;  %v7291_v51 = vld [vmem:[%s9337_s2 + $0xb4] sm:$0xf]  ;;  %v5857_v53 = vor.u32 %v7277_v32, %v5854_v33  ;;  %vm655_vm7 = vmor %vm8884_vm6, %vm8866_vm5  ;;  %vm1222_vm14 = vsmask.f32 1280 }
  0x72   : > { %1486 = vmatpush.bf16.msrb.mxu1 %v5663_v5  ;;  %v5868_v5 = vld [vmem:[%s9337_s2 + $0x60] sm:$0xf]  ;;  %vm8983_vm10 = vmand %vm652_vm4, %vm938_vm8  ;;  %vm1225_vm3 = vsmask.f32 5376  ;;  %vm1510_vm8 = vsmask.f32 7942 }
  0x73   : > { %1585 = vmatpush.bf16.msrb.mxu2 %v5693_v10  ;;  %v5870_v10 = vld [vmem:[%s9337_s2 + $0x68] sm:$0xf0]  ;;  %vm8990_vm11 = vmand %vm548_vm1, %vm936_vm9 }
  0x74   : > { %1473 = vmatpush.bf16.msrb.mxu0 %v5659_v6  ;;  %1598 = vmatpush.bf16.msrb.mxu3 %v5697_v11  ;;  %v7282_v6 = vld [vmem:[%s9337_s2 + $0x64] sm:$0xf0]  ;;  %v5826_v11 = vld [vmem:[%s9337_s2 + $0x20] sm:$0xf]  ;;  %v5873_v17 = vor.u32 %v7281_v9, %v5870_v10  ;;  %vm940_vm12 = vmor %vm8983_vm10, %vm8990_vm11  ;;  %vm1512_vm10 = vsmask.f32 7958 }
  0x75   : > { %5689 = vmatmul.msk.bf16.vlgmr.msrb.gmra.mxu1 %vm515_vm0, %v1422_v31  ;;  %v5869_v16 = vor.u32 %v7282_v6, %v5868_v5  ;;  %v5912_v5 = vld [vmem:[%s9337_s2 + $0xa8] sm:$0xf0]  ;;  %v5936_v6 = vld [vmem:[%s9337_s2 + $0x10] sm:$0xf]  ;;  %vm9008_vm4 = vmand %vm1221_vm13, %vm1222_vm14 }
  0x76   : > { %1679 = vmatpush.bf16.msra.mxu1 %v5763_v18  ;;  %5722 = vmatmul.msk.bf16.vlgmr.msrb.gmra.mxu2 %vm515_vm0, %v1534_v40  ;;  %v5860_v18 = vld [vmem:[%s9337_s2 + $0x50] sm:$0xf]  ;;  %vm9013_vm6 = vmand %vm1224_vm15, %vm1225_vm3  ;;  %vm1794_vm3 = vsmask.f32 2304 }
  0x77   : > { %1755 = vmatpush.bf16.msra.mxu2 %v5801_v12  ;;  %5688 = vmatmul.msk.bf16.vlgmr.msrb.gmra.mxu0 %vm515_vm0, %v1422_v31  ;;  %v1704_v12 = vpack.c.b16 %v1703_v61, %v1703_v61  ;;  %v7278_v31 = vld [vmem:[%s9337_s2 + $0x44] sm:$0xf0]  ;;  %v5919_v61 = vor.u32 %v7292_v50, %v5918_v47  ;;  %v6028_v47 = vld [vmem:[%s9337_s2 + $0xa0] sm:$0xf]  ;;  %v6030_v50 = vld [vmem:[%s9337_s2 + $0xa8] sm:$0xf0] }
  0x78   : > { %1768 = vmatpush.bf16.msra.mxu3 %v5805_v13  ;;  %1666 = vmatpush.bf16.msra.mxu0 %v5759_v19  ;;  %v7274_v13 = vld [vmem:[%s9337_s2 + $0x24] sm:$0xf0]  ;;  %v7280_v19 = vld [vmem:[%s9337_s2 + $0x54] sm:$0xf0]  ;;  %vm9033_vm14 = vmand %vm1224_vm15, %vm1512_vm10  ;;  %vm1793_vm15 = vcmask 1042434  }
  0x79   : > { %5723 = vmatmul.msk.bf16.vlgmr.msrb.gmra.mxu3 %vm515_vm0, %v1534_v40  ;;  %v5827_v20 = vor.u32 %v7274_v13, %v5826_v11  ;;  %v1706_v22 = vshrl.u32 %v1704_v12, 16  ;;  %v5861_v25 = vor.u32 %v7280_v19, %v5860_v18  ;;  %v5810_v40 = vld [vmem:[%s9337_s2] sm:$0xf]  ;;  %v7295_v13 = vld [vmem:[%s9337_s2 + $0x14] sm:$0xf] }
  0x7a   : > { %1680 = vmatpush.bf16.msra.mxu1 %v5755_v29  ;;  %v5820_v29 = vld [vmem:[%s9337_s2 + $0x18] sm:$0xf0]  ;;  %v7287_v18 = vld [vmem:[%s9337_s2 + $0x94] sm:$0xf]  ;;  %v5941_v23 = vor.u32 %v7295_v13, %v5938_v14  ;;  %v6012_v14 = vld [vmem:[%s9337_s2 + $0x80] sm:$0xf] }
  0x7b   : > { %1756 = vmatpush.bf16.msra.mxu2 %v5793_v26  ;;  %v5818_v26 = vld [vmem:[%s9337_s2 + $0x10] sm:$0xf]  ;;  %v5823_v41 = vor.u32 %v7271_v28, %v5820_v29  ;;  %v5904_v19 = vld [vmem:[%s9337_s2 + $0x98] sm:$0xf0]  ;;  %v7316_v29 = vld [vmem:[%s9337_s2 + $0xb4] sm:$0xf0] }
  0x7c   : > { %1769 = vmatpush.bf16.msra.mxu3 %v5797_v27  ;;  %1667 = vmatpush.bf16.msra.mxu0 %v5751_v30  ;;  %v7272_v27 = vld [vmem:[%s9337_s2 + $0x14] sm:$0xf0]  ;;  %v5852_v30 = vld [vmem:[%s9337_s2 + $0x40] sm:$0xf]  ;;  %v6036_v28 = vld [vmem:[%s9337_s2 + $0xb0] sm:$0xf]  ;;  %v5907_v34 = vor.u32 %v7287_v18, %v5904_v19 }
  0x7d   : > { %v5819_v37 = vor.u32 %v7272_v27, %v5818_v26  ;;  %v5853_v42 = vor.u32 %v7278_v31, %v5852_v30  ;;  %v7293_v26 = vld [vmem:[%s9337_s2 + $0x4] sm:$0xf]  ;;  %v5930_v27 = vld [vmem:[%s9337_s2 + $0x8] sm:$0xf0]  ;;  %v7315_v30 = vld [vmem:[%s9337_s2 + $0xb4] sm:$0xf] }
  0x7e   : > { %1681 = vmatpush.bf16.msra.mxu1 %v5747_v48  ;;  %v1804_v48 = vld [vmem:[%s7828_s23 + $0x4] sm:$0x1]  ;;  %v6038_v31 = vld [vmem:[%s9337_s2 + $0xb8] sm:$0xf0]  ;;  %v5933_v39 = vor.u32 %v7293_v26, %v5930_v27  ;;  %v6112_v18 = vld [vmem:[%s9337_s2 + $0x70] sm:$0xf] }
  0x7f   : > { %1757 = vmatpush.bf16.msra.mxu2 %v5785_v43  ;;  %v7270_v43 = vld [vmem:[%s9337_s2 + $0x4] sm:$0xf0]  ;;  %v5970_v26 = vld [vmem:[%s9337_s2 + $0x40] sm:$0xf] }
  0x80   : > { %1770 = vmatpush.bf16.msra.mxu3 %v5789_v44  ;;  %1668 = vmatpush.bf16.msra.mxu0 %v5743_v49  ;;  %v7269_v44 = vld [vmem:[%s9337_s2 + $0x4] sm:$0xf]  ;;  %v5811_v54 = vor.u32 %v7270_v43, %v5810_v40  ;;  %v5896_v40 = vld [vmem:[%s9337_s2 + $0x88] sm:$0xf0]  ;;  %v6037_v43 = vor.u32 %v7316_v29, %v6036_v28  ;;  %v7302_v27 = vld [vmem:[%s9337_s2 + $0x44] sm:$0xf0] }
  0x81   : > { %v1894_v49 = vld [vmem:[%s7828_s23 + $0x4] sm:$0x2]  ;;  %v5815_v58 = vor.u32 %v7269_v44, %v5812_v45  ;;  %v6041_v44 = vor.u32 %v7315_v30, %v6038_v31  ;;  %v7307_v45 = vld [vmem:[%s9337_s2 + $0x74] sm:$0xf]  ;;  %v5972_v30 = vld [vmem:[%s9337_s2 + $0x48] sm:$0xf0] }
  0x82   : > { %1682 = vmatpush.bf16.msra.mxu1 %v5739_v1  ;;  %v5910_v1 = vld [vmem:[%s9337_s2 + $0xa0] sm:$0xf]  ;;  %v7301_v29 = vld [vmem:[%s9337_s2 + $0x44] sm:$0xf]  ;;  %v6070_v31 = vld [vmem:[%s9337_s2 + $0x30] sm:$0xf] }
  0x83   : > { %1758 = vmatpush.bf16.msra.mxu2 %v5777_v59  ;;  %v1814_v59 = vunpack.c.l.b16 %v1804_v48  ;;  %v7314_v48 = vld [vmem:[%s9337_s2 + $0xa4] sm:$0xf0] }
  0x84   : > { %1771 = vmatpush.bf16.msra.mxu3 %v5781_v60  ;;  %1669 = vmatpush.bf16.msra.mxu0 %v5735_v4  ;;  %v1904_v60 = vunpack.c.l.b16 %v1894_v49  ;;  %v7289_v4 = vld [vmem:[%s9337_s2 + $0xa4] sm:$0xf] }
  0x85   : > { %5765 = vmatmul.msk.bf16.vlgmr.msra.gmra.mxu1 %vm515_vm0, %v8464_v52  ;;  %v1815_v9 = vpack.c.b16 %v1814_v59, %v1814_v59  ;;  %v5915_v12 = vor.u32 %v7289_v4, %v5912_v5  ;;  %v7313_v49 = vld [vmem:[%s9337_s2 + $0xa4] sm:$0xf]  ;;  %v6029_v59 = vor.u32 %v7314_v48, %v6028_v47  ;;  %v464_v47 = vld [vmem:[%s9338_s3] sm:$0x3] }
  0x86   : > { %1879 = vmatpush.bf16.msrb.mxu1 %v5839_v8  ;;  %5806 = vmatmul.msk.bf16.vlgmr.msra.gmra.mxu2 %vm515_vm0, %v1706_v22  ;;  %v5949_v8 = vor.u32 %v7297_v63, %v5946_v0  ;;  %v8632_v10 = vpack.c.b16 %v1904_v60, %v1904_v60  ;;  %v6033_v60 = vor.u32 %v7313_v49, %v6030_v50  ;;  %v7312_v63 = vld [vmem:[%s9337_s2 + $0x94] sm:$0xf0]  ;;  %v7311_v0 = vld [vmem:[%s9337_s2 + $0x94] sm:$0xf]  ;;  %v6062_v50 = vld [vmem:[%s9337_s2 + $0x20] sm:$0xf] }
  0x87   : > { %1954 = vmatpush.bf16.msrb.mxu2 %v5877_v2  ;;  %5764 = vmatmul.msk.bf16.vlgmr.msra.gmra.mxu0 %vm515_vm0, %v8464_v52  ;;  %v5920_v52 = vld [vmem:[%s9337_s2 + $0xb8] sm:$0xf0]  ;;  %v5945_v2 = vor.u32 %v7298_v56, %v5944_v55  ;;  %v5986_v56 = vld [vmem:[%s9337_s2 + $0x60] sm:$0xf] }
  0x88   : > { %1967 = vmatpush.bf16.msrb.mxu3 %v5881_v3  ;;  %1866 = vmatpush.bf16.msrb.mxu0 %v5835_v7  ;;  %v5923_v62 = vor.u32 %v7291_v51, %v5920_v52  ;;  %v7290_v3 = vld [vmem:[%s9337_s2 + $0xa4] sm:$0xf0]  ;;  %v7296_v7 = vld [vmem:[%s9337_s2 + $0x14] sm:$0xf0] }
  0x89   : > { %5807 = vmatmul.msk.bf16.vlgmr.msra.gmra.mxu3 %vm515_vm0, %v1706_v22  ;;  %v5911_v11 = vor.u32 %v7290_v3, %v5910_v1  ;;  %v5937_v15 = vor.u32 %v7296_v7, %v5936_v6  ;;  %v1906_v22 = vrot.slane %v8632_v10, 1  ;;  %v6022_v1 = vld [vmem:[%s9337_s2 + $0x98] sm:$0xf0]  ;;  %v5978_v6 = vld [vmem:[%s9337_s2 + $0x50] sm:$0xf] }
  0x8a   : > { %1880 = vmatpush.bf16.msrb.mxu1 %v5831_v21  ;;  %v1817_v21 = vshrl.u32 %v1815_v9, 16  ;;  %v7304_v9 = vld [vmem:[%s9337_s2 + $0x54] sm:$0xf0] }
  0x8b   : > { %1955 = vmatpush.bf16.msrb.mxu2 %v5869_v16  ;;  %v5902_v16 = vld [vmem:[%s9337_s2 + $0x90] sm:$0xf]  ;;  %v5979_v19 = vor.u32 %v7304_v9, %v5978_v6  ;;  %v7320_v6 = vld [vmem:[%s9337_s2 + $0x14] sm:$0xf0]  ;;  %v6056_v9 = vld [vmem:[%s9337_s2 + $0x18] sm:$0xf0] }
  0x8c   : > { %1968 = vmatpush.bf16.msrb.mxu3 %v5873_v17  ;;  %1867 = vmatpush.bf16.msrb.mxu0 %v5827_v20  ;;  %v7288_v17 = vld [vmem:[%s9337_s2 + $0x94] sm:$0xf0]  ;;  %v2090_v20 = vld [vmem:[%s7828_s23 + $0x4] sm:$0x2] }
  0x8d   : > { %v2100_v32 = vunpack.c.l.b16 %v2090_v20  ;;  %v5903_v33 = vor.u32 %v7288_v17, %v5902_v16  ;;  %v7309_v16 = vld [vmem:[%s9337_s2 + $0x84] sm:$0xf]  ;;  %v6014_v17 = vld [vmem:[%s9337_s2 + $0x88] sm:$0xf0] }
  0x8e   : > { %1881 = vmatpush.bf16.msrb.mxu1 %v5823_v41  ;;  %v5994_v41 = vld [vmem:[%s9337_s2 + $0x70] sm:$0xf] }
  0x8f   : > { %1956 = vmatpush.bf16.msrb.mxu2 %v5861_v25  ;;  %v7294_v25 = vld [vmem:[%s9337_s2 + $0x4] sm:$0xf0]  ;;  %v2101_v51 = vpack.c.b16 %v2100_v32, %v2100_v32 }
  0x90   : > { %1969 = vmatpush.bf16.msrb.mxu3 %v5865_v36  ;;  %1868 = vmatpush.bf16.msrb.mxu0 %v5819_v37  ;;  %v7286_v36 = vld [vmem:[%s9337_s2 + $0x84] sm:$0xf0]  ;;  %v7285_v37 = vld [vmem:[%s9337_s2 + $0x84] sm:$0xf]  ;;  %v5929_v38 = vor.u32 %v7294_v25, %v5928_v24  ;;  %v6114_v25 = vld [vmem:[%s9337_s2 + $0x78] sm:$0xf0] }
  0x91   : > { %v5895_v52 = vor.u32 %v7286_v36, %v5894_v35  ;;  %v2103_v3 = vshrl.u32 %v2101_v51, 16  ;;  %v7323_v35 = vld [vmem:[%s9337_s2 + $0x34] sm:$0xf]  ;;  %v6072_v36 = vld [vmem:[%s9337_s2 + $0x38] sm:$0xf0] }
  0x92   : > { %1882 = vmatpush.bf16.msrb.mxu1 %v5815_v58  ;;  %v7305_v58 = vld [vmem:[%s9337_s2 + $0x64] sm:$0xf]  ;;  %v6075_v49 = vor.u32 %v7323_v35, %v6072_v36  ;;  %v7322_v51 = vld [vmem:[%s9337_s2 + $0x24] sm:$0xf0] }
  0x93   : > { %1957 = vmatpush.bf16.msrb.mxu2 %v5853_v42  ;;  %v7308_v42 = vld [vmem:[%s9337_s2 + $0x74] sm:$0xf0]  ;;  %v2105_v13 = vrot.slane %v2103_v3, 1  ;;  %v6063_v3 = vor.u32 %v7322_v51, %v6062_v50 }
  0x94   : > { %1970 = vmatpush.bf16.msrb.mxu3 %v5857_v53  ;;  %1869 = vmatpush.bf16.msrb.mxu0 %v5811_v54  ;;  %v5899_v53 = vor.u32 %v7285_v37, %v5896_v40  ;;  %v5995_v54 = vor.u32 %v7308_v42, %v5994_v41  ;;  %v6104_v41 = vld [vmem:[%s9337_s2 + $0x60] sm:$0xf]  ;;  %v5971_v42 = vor.u32 %v7302_v27, %v5970_v26  ;;  %v656_v27 = vld [vmem:[#allocation2] sm:$0x11] }
  0x95   : > { %5841 = vmatmul.msk.bf16.vlgmr.msrb.gmra.mxu1 %vm515_vm0, %v1817_v21  ;;  %v6046_v26 = vld [vmem:[%s9337_s2] sm:$0xf] }
  0x96   : > { %2054 = vmatpush.bf16.msra.mxu1 %v5923_v62  ;;  %5882 = vmatmul.msk.bf16.vlgmr.msrb.gmra.mxu2 %vm515_vm0, %v1906_v22  ;;  %v6020_v62 = vld [vmem:[%s9337_s2 + $0x90] sm:$0xf] }
  0x97   : > { %2153 = vmatpush.bf16.msra.mxu2 %v5953_v46  ;;  %5840 = vmatmul.msk.bf16.vlgmr.msrb.gmra.mxu0 %vm515_vm0, %v1817_v21  ;;  %v5996_v46 = vld [vmem:[%s9337_s2 + $0x78] sm:$0xf0]  ;;  %v6021_v7 = vor.u32 %v7312_v63, %v6020_v62  ;;  %v7332_v21 = vld [vmem:[%s9337_s2 + $0x74] sm:$0xf0] }
  0x98   : > { %2166 = vmatpush.bf16.msra.mxu3 %v5957_v57  ;;  %2041 = vmatpush.bf16.msra.mxu0 %v5919_v61  ;;  %v5999_v55 = vor.u32 %v7307_v45, %v5996_v46  ;;  %v7306_v57 = vld [vmem:[%s9337_s2 + $0x64] sm:$0xf0]  ;;  %v5988_v61 = vld [vmem:[%s9337_s2 + $0x68] sm:$0xf0]  ;;  %v7329_v45 = vld [vmem:[%s9337_s2 + $0x64] sm:$0xf] }
  0x99   : > { %5883 = vmatmul.msk.bf16.vlgmr.msrb.gmra.mxu3 %vm515_vm0, %v1906_v22  ;;  %v5987_v4 = vor.u32 %v7306_v57, %v5986_v56  ;;  %v5991_v5 = vor.u32 %v7305_v58, %v5988_v61  ;;  %v7331_v22 = vld [vmem:[%s9337_s2 + $0x74] sm:$0xf]  ;;  %v6106_v46 = vld [vmem:[%s9337_s2 + $0x68] sm:$0xf0] }
  0x9a   : > { %2055 = vmatpush.bf16.msra.mxu1 %v5915_v12  ;;  %v6117_v40 = vor.u32 %v7331_v22, %v6114_v25  ;;  %v6109_v58 = vor.u32 %v7329_v45, %v6106_v46  ;;  %v7327_v61 = vld [vmem:[%s9337_s2 + $0x54] sm:$0xf]  ;;  %v7348_v45 = vld [vmem:[#allocation7 + $0xb8] sm:$0xff] }
  0x9b   : > { %2154 = vmatpush.bf16.msra.mxu2 %v5945_v2  ;;  %v1991_v2 = vshrl.u32 %v8632_v10, 16  ;;  %v7303_v10 = vld [vmem:[%s9337_s2 + $0x54] sm:$0xf]  ;;  %v7356_v46 = vld [vmem:[#allocation7 + $0xf8] sm:$0xff] }
  0x9c   : > { %2167 = vmatpush.bf16.msra.mxu3 %v5949_v8  ;;  %2042 = vmatpush.bf16.msra.mxu0 %v5911_v11  ;;  %v6025_v8 = vor.u32 %v7311_v0, %v6022_v1  ;;  %v5980_v11 = vld [vmem:[%s9337_s2 + $0x58] sm:$0xf0] }
  0x9d   : > { %v1993_v12 = vrot.slane %v1991_v2, 1  ;;  %v5983_v20 = vor.u32 %v7303_v10, %v5980_v11  ;;  %v6098_v0 = vld [vmem:[%s9337_s2 + $0x58] sm:$0xf0] }
  0x9e   : > { %2056 = vmatpush.bf16.msra.mxu1 %v5907_v34  ;;  %v7324_v34 = vld [vmem:[%s9337_s2 + $0x34] sm:$0xf0] }
  0x9f   : > { %2155 = vmatpush.bf16.msra.mxu2 %v5937_v15  ;;  %v7310_v15 = vld [vmem:[%s9337_s2 + $0x84] sm:$0xf0]  ;;  %v6071_v48 = vor.u32 %v7324_v34, %v6070_v31 }
  0xa0   : > { %2168 = vmatpush.bf16.msra.mxu3 %v5941_v23  ;;  %2043 = vmatpush.bf16.msra.mxu0 %v5903_v33  ;;  %v2181_v23 = vld [vmem:[%s7828_s23 + $0x4] sm:$0x4]  ;;  %v6013_v32 = vor.u32 %v7310_v15, %v6012_v14  ;;  %v6017_v33 = vor.u32 %v7309_v16, %v6014_v17  ;;  %v6101_v14 = vor.u32 %v7327_v61, %v6098_v0  ;;  %v6088_v15 = vld [vmem:[%s9337_s2 + $0x40] sm:$0xf]  ;;  %v7326_v17 = vld [vmem:[%s9337_s2 + $0x44] sm:$0xf0] }
  0xa1   : > { %v2191_v37 = vunpack.c.l.b16 %v2181_v23  ;;  %v7318_v31 = vld [vmem:[%s9337_s2 + $0x4] sm:$0xf0]  ;;  %v6138_v0 = vld [vmem:[%s9337_s2 + $0x90] sm:$0xf] }
  0xa2   : > { %2057 = vmatpush.bf16.msra.mxu1 %v5899_v53  ;;  %v528_v24 = vpop.f32.mrf.mxu0  ;;  %v541_v28 = vpop.f32.mrf.mxu1  ;;  %v6064_v53 = vld [vmem:[%s9337_s2 + $0x28] sm:$0xf0] }
  0xa3   : > { %2156 = vmatpush.bf16.msra.mxu2 %v5929_v38  ;;  %v547_v38 = vrot.slane %v541_v28, 7 }
  0xa4   : > { %2169 = vmatpush.bf16.msra.mxu3 %v5933_v39  ;;  %2044 = vmatpush.bf16.msra.mxu0 %v5895_v52  ;;  %v6113_v39 = vor.u32 %v7332_v21, %v6112_v18  ;;  %v7321_v52 = vld [vmem:[%s9337_s2 + $0x24] sm:$0xf] }
  0xa5   : > { %5925 = vmatmul.msk.bf16.vlgmr.msra.gmra.mxu1 %vm515_vm0, %v1993_v12  ;;  %v7325_v18 = vld [vmem:[%s9337_s2 + $0x44] sm:$0xf] }
  0xa6   : > { %2254 = vmatpush.bf16.msrb.mxu1 %v5999_v55  ;;  %5958 = vmatmul.msk.bf16.vlgmr.msra.gmra.mxu2 %vm515_vm0, %v2105_v13  ;;  %v549_v55 = vsel %vm548_vm1, %v528_v24, %v547_v38  ;;  %v7340_v38 = vld [vmem:[%s9337_s2 + $0xb4] sm:$0xf0] }
  0xa7   : > { %2328 = vmatpush.bf16.msrb.mxu2 %v6037_v43  ;;  %5924 = vmatmul.msk.bf16.vlgmr.msra.gmra.mxu0 %vm515_vm0, %v1993_v12  ;;  %v5975_v43 = vor.u32 %v7301_v29, %v5972_v30  ;;  %v6089_v29 = vor.u32 %v7326_v17, %v6088_v15  ;;  %v7345_v17 = vld [vmem:[#allocation7 + $0xa0] sm:$0xff] }
  0xa8   : > { %2341 = vmatpush.bf16.msrb.mxu3 %v6041_v44  ;;  %2241 = vmatpush.bf16.msrb.mxu0 %v5995_v54  ;;  %v7330_v44 = vld [vmem:[%s9337_s2 + $0x64] sm:$0xf0]  ;;  %v8835_v54 = vpack.c.b16 %v2191_v37, %v2191_v37  ;;  %v6154_v37 = vld [vmem:[%s9337_s2 + $0xb0] sm:$0xf] }
  0xa9   : > { %5959 = vmatmul.msk.bf16.vlgmr.msra.gmra.mxu3 %vm515_vm0, %v2105_v13  ;;  %v619_v56 = vpop.f32.mrf.mxu2  ;;  %v6105_v57 = vor.u32 %v7330_v44, %v6104_v41  ;;  %v7339_v41 = vld [vmem:[%s9337_s2 + $0xb4] sm:$0xf]  ;;  %v6155_v50 = vor.u32 %v7340_v38, %v6154_v37  ;;  %v7352_v38 = vld [vmem:[#allocation7 + $0xd8] sm:$0xff] }
  0xaa   : > { %2255 = vmatpush.bf16.msrb.mxu1 %v5991_v5  ;;  %v632_v62 = vpop.f32.mrf.mxu3  ;;  %v530_v63 = vpop.f32.mrf.mxu0  ;;  %v6054_v5 = vld [vmem:[%s9337_s2 + $0x10] sm:$0xf]  ;;  %v2278_v10 = vshrl.u32 %v8835_v54, 16  ;;  %v2193_v24 = vrot.slane %v8835_v54, 2 }
  0xab   : > { %2329 = vmatpush.bf16.msrb.mxu2 %v6029_v59  ;;  %v6096_v59 = vld [vmem:[%s9337_s2 + $0x50] sm:$0xf]  ;;  %v638_v1 = vrot.slane %v632_v62, 7  ;;  %v543_v2 = vpop.f32.mrf.mxu1  ;;  %v6055_v21 = vor.u32 %v7320_v6, %v6054_v5  ;;  %v7335_v5 = vld [vmem:[%s9337_s2 + $0x94] sm:$0xf] }
  0xac   : > { %2342 = vmatpush.bf16.msrb.mxu3 %v6033_v60  ;;  %2242 = vmatpush.bf16.msrb.mxu0 %v5987_v4  ;;  %v7328_v60 = vld [vmem:[%s9337_s2 + $0x54] sm:$0xf0]  ;;  %v6067_v4 = vor.u32 %v7321_v52, %v6064_v53  ;;  %v2280_v25 = vrot.slane %v2278_v10, 2  ;;  %v6146_v52 = vld [vmem:[%s9337_s2 + $0xa0] sm:$0xf] }
  0xad   : > { %v639_v11 = vsel %vm548_vm1, %v619_v56, %v638_v1  ;;  %v6097_v13 = vor.u32 %v7328_v60, %v6096_v59  ;;  %v7338_v53 = vld [vmem:[%s9337_s2 + $0xa4] sm:$0xf0]  ;;  %v6148_v56 = vld [vmem:[%s9337_s2 + $0xa8] sm:$0xf0]  ;;  %v2468_v59 = vld [vmem:[%s7828_s23 + $0x4] sm:$0x8] }
  0xae   : > { %2256 = vmatpush.bf16.msrb.mxu1 %v5983_v20  ;;  %v6147_v62 = vor.u32 %v7338_v53, %v6146_v52  ;;  %v6140_v6 = vld [vmem:[%s9337_s2 + $0x98] sm:$0xf0]  ;;  %v7353_v20 = vld [vmem:[#allocation7 + $0xe0] sm:$0xff]  ;;  %v3511_v53 = vld [vmem:[%s9340_s5] sm:$0x1] }
  0xaf   : > { %2330 = vmatpush.bf16.msrb.mxu2 %v6021_v7  ;;  %v551_v7 = vadd.f32 %v549_v55, %v464_v47  ;;  %v6047_v47 = vor.u32 %v7318_v31, %v6046_v26  ;;  %v7337_v55 = vld [vmem:[%s9337_s2 + $0xa4] sm:$0xf]  ;;  %v7354_v10 = vld [vmem:[#allocation7 + $0xe8] sm:$0xff] }
  0xb0   : > { %2343 = vmatpush.bf16.msrb.mxu3 %v6025_v8  ;;  %2243 = vmatpush.bf16.msrb.mxu0 %v5979_v19  ;;  %v7319_v8 = vld [vmem:[%s9337_s2 + $0x14] sm:$0xf]  ;;  %v6090_v19 = vld [vmem:[%s9337_s2 + $0x48] sm:$0xf0]  ;;  %v6151_v63 = vor.u32 %v7337_v55, %v6148_v56  ;;  %v7342_v56 = vld [vmem:[#allocation7 + $0x88] sm:$0xff] }
  0xb1   : > { %v641_v16 = vadd.f32 %v639_v11, %v551_v7  ;;  %v6059_v22 = vor.u32 %v7319_v8, %v6056_v9  ;;  %v621_v28 = vpop.f32.mrf.mxu2  ;;  %v6093_v30 = vor.u32 %v7325_v18, %v6090_v19  ;;  %v2478_v7 = vunpack.c.l.b16 %v2468_v59  ;;  %v7346_v9 = vld [vmem:[#allocation7 + $0xa8] sm:$0xff] }
  0xb2   : > { %2257 = vmatpush.bf16.msrb.mxu1 %v5975_v43  ;;  %v634_v36 = vpop.f32.mrf.mxu3  ;;  %v2377_v43 = vld [vmem:[%s7828_s23 + $0x4] sm:$0x4]  ;;  %v7362_v59 = vld [vmem:[#allocation7 + $0x128] sm:$0xff] }
  0xb3   : > { %2331 = vmatpush.bf16.msrb.mxu2 %v6013_v32  ;;  %v642_v23 = vmax.f32 %v641_v16, 0.0  ;;  %v7317_v32 = vld [vmem:[%s9337_s2 + $0x4] sm:$0xf]  ;;  %v2387_v54 = vunpack.c.l.b16 %v2377_v43  ;;  %v659_v16 = vld [vmem:[%s9338_s3] sm:$0x3]  ;;  %v8960_v18 = vpack.c.b16 %v2478_v7, %v2478_v7  ;;  %v7344_v36 = vld [vmem:[#allocation7 + $0x98] sm:$0xff] }
  0xb4   : > { %2344 = vmatpush.bf16.msrb.mxu3 %v6017_v33  ;;  %2244 = vmatpush.bf16.msrb.mxu0 %v5971_v42  ;;  %v6048_v33 = vld [vmem:[%s9337_s2 + $0x8] sm:$0xf0]  ;;  %v6156_v42 = vld [vmem:[%s9337_s2 + $0xb8] sm:$0xf0]  ;;  %v7343_v43 = vld [vmem:[#allocation7 + $0x90] sm:$0xff] }
  0xb5   : > { %v644_v34 = vperm.slane %v642_v23, 0  ;;  %v645_v35 = vperm.slane %v642_v23, 1  ;;  %6001 = vmatmul.msk.bf16.vlgmr.msrb.gmra.mxu1 %vm515_vm0, %v2193_v24  ;;  %v6159_v51 = vor.u32 %v7339_v41, %v6156_v42  ;;  %v2388_v1 = vpack.c.b16 %v2387_v54, %v2387_v54  ;;  %v7333_v23 = vld [vmem:[%s9337_s2 + $0x84] sm:$0xf]  ;;  %v7372_v41 = vld [vmem:[#allocation7 + $0x178] sm:$0xff]  ;;  %v7369_v7 = vld [vmem:[#allocation7 + $0x160] sm:$0xff] }
  0xb6   : > { %2453 = vmatpush.bf16.msra.mxu1 %v6075_v49  ;;  %6042 = vmatmul.msk.bf16.vlgmr.msrb.gmra.mxu2 %vm515_vm0, %v2280_v25 }
  0xb7   : > { %2528 = vmatpush.bf16.msra.mxu2 %v6113_v39  ;;  %v8911_v39 = vpop.f32.mrf.mxu0  ;;  %v648_v44 = vpack.c.bf16 %v645_v35, %v644_v34  ;;  %6000 = vmatmul.msk.bf16.vlgmr.msrb.gmra.mxu0 %vm515_vm0, %v2193_v24  ;;  %v2390_v15 = vshrl.u32 %v2388_v1, 16  ;;  %v6132_v24 = vld [vmem:[%s9337_s2 + $0x88] sm:$0xf0] }
  0xb8   : > { %2541 = vmatpush.bf16.msra.mxu3 %v6117_v40  ;;  %2440 = vmatpush.bf16.msra.mxu0 %v6071_v48  ;;  %v8913_v40 = vpop.f32.mrf.mxu1  ;;  %v6051_v48 = vor.u32 %v7317_v32, %v6048_v33  ;;  %v2480_v32 = vrot.slane %v8960_v18, 3  ;;  %v6135_v35 = vor.u32 %v7333_v23, %v6132_v24  ;;  %v7359_v23 = vld [vmem:[#allocation7 + $0x110] sm:$0xff] }
  0xb9   : > { %v657_v49 = vsel %vm655_vm7, %v648_v44, %v656_v27  ;;  %6043 = vmatmul.msk.bf16.vlgmr.msrb.gmra.mxu3 %vm515_vm0, %v2280_v25  ;;  %v815_v61 = vpop.f32.mrf.mxu2  ;;  %v746_v8 = vrot.slane %v8913_v40, 7  ;;  %v2392_v28 = vrot.slane %v2390_v15, 2  ;;  %vm1227_vm7 = vmor %vm9013_vm6, %vm9008_vm4  ;;  %vm1796_vm6 = vcmask 1046534  }
  0xba   : > { %2454 = vmatpush.bf16.msra.mxu1 %v6067_v4  ;;  %658 = vst [vmem:[#allocation2] sm:$0x11] %v657_v49  ;;  %v7336_v4 = vld [vmem:[%s9337_s2 + $0x94] sm:$0xf0] }
  0xbb   : > { %2529 = vmatpush.bf16.msra.mxu2 %v6105_v57  ;;  %v7347_v57 = vld [vmem:[#allocation7 + $0xb0] sm:$0xff]  ;;  %v747_v19 = vsel %vm548_vm1, %v8911_v39, %v746_v8  ;;  %v7364_v39 = vld [vmem:[#allocation7 + $0x138] sm:$0xff] }
  0xbc   : > { %2542 = vmatpush.bf16.msra.mxu3 %v6109_v58  ;;  %2441 = vmatpush.bf16.msra.mxu0 %v6063_v3  ;;  %v7355_v58 = vld [vmem:[#allocation7 + $0xf0] sm:$0xff]  ;;  %v828_v60 = vpop.f32.mrf.mxu3  ;;  %v7380_v8 = vld [vmem:[#allocation7 + $0x38] sm:$0xff] }
  0xbd   : > { %v834_v11 = vrot.slane %v828_v60, 7  ;;  %v7370_v60 = vld [vmem:[#allocation7 + $0x168] sm:$0xff] }
  0xbe   : > { %2455 = vmatpush.bf16.msra.mxu1 %v6059_v22  ;;  %v7334_v22 = vld [vmem:[%s9337_s2 + $0x84] sm:$0xf0] }
  0xbf   : > { %2530 = vmatpush.bf16.msra.mxu2 %v6097_v13  ;;  %v729_v2 = vpop.f32.mrf.mxu0  ;;  %v6139_v13 = vor.u32 %v7336_v4, %v6138_v0  ;;  %v835_v25 = vsel %vm548_vm1, %v815_v61, %v834_v11  ;;  %v7341_v0 = vld [vmem:[#allocation7 + $0x80] sm:$0xff]  ;;  %v7388_v11 = vld [vmem:[#allocation7 + $0x78] sm:$0xff] }
  0xc0   : > { %2543 = vmatpush.bf16.msra.mxu3 %v6101_v14  ;;  %2442 = vmatpush.bf16.msra.mxu0 %v6055_v21  ;;  %v742_v3 = vpop.f32.mrf.mxu1  ;;  %v6143_v14 = vor.u32 %v7335_v5, %v6140_v6  ;;  %v6130_v21 = vld [vmem:[%s9337_s2 + $0x80] sm:$0xf]  ;;  %v7361_v4 = vld [vmem:[#allocation7 + $0x120] sm:$0xff] }
  0xc1   : > { %v817_v27 = vpop.f32.mrf.mxu2  ;;  %v6131_v33 = vor.u32 %v7334_v22, %v6130_v21  ;;  %v7349_v3 = vld [vmem:[#allocation7 + $0xc0] sm:$0xff] }
  0xc2   : > { %2456 = vmatpush.bf16.msra.mxu1 %v6051_v48  ;;  %v7367_v27 = vld [vmem:[#allocation7 + $0x150] sm:$0xff] }
  0xc3   : > { %2531 = vmatpush.bf16.msra.mxu2 %v6089_v29  ;;  %v749_v29 = vadd.f32 %v747_v19, %v659_v16  ;;  %v7379_v19 = vld [vmem:[#allocation7 + $0x30] sm:$0xff] }
  0xc4   : > { %2544 = vmatpush.bf16.msra.mxu3 %v6093_v30  ;;  %2443 = vmatpush.bf16.msra.mxu0 %v6047_v47  ;;  %v830_v26 = vpop.f32.mrf.mxu3 }
  0xc5   : > { %v837_v37 = vadd.f32 %v835_v25, %v749_v29  ;;  %6077 = vmatmul.msk.bf16.vlgmr.msra.gmra.mxu1 %vm515_vm0, %v2392_v28 }
  0xc6   : > { %2628 = vmatpush.bf16.msrb.mxu1 %v6159_v51  ;;  %6118 = vmatmul.msk.bf16.vlgmr.msra.gmra.mxu2 %vm515_vm0, %v2480_v32 }
  0xc7   : > { %2801 = vmatpush.bf16.msrb.mxu2 %v7348_v45  ;;  %v902_v30 = vpop.f32.mrf.mxu0  ;;  %6076 = vmatmul.msk.bf16.vlgmr.msra.gmra.mxu0 %vm515_vm0, %v2392_v28  ;;  %v7351_v45 = vld [vmem:[#allocation7 + $0xd0] sm:$0xff]  ;;  %v7378_v28 = vld [vmem:[#allocation7 + $0x28] sm:$0xff] }
  0xc8   : > { %2814 = vmatpush.bf16.msrb.mxu3 %v7356_v46  ;;  %2615 = vmatpush.bf16.msrb.mxu0 %v6155_v50  ;;  %v915_v31 = vpop.f32.mrf.mxu1  ;;  %v7363_v46 = vld [vmem:[#allocation7 + $0x130] sm:$0xff] }
  0xc9   : > { %v921_v34 = vrot.slane %v915_v31, 7  ;;  %6119 = vmatmul.msk.bf16.vlgmr.msra.gmra.mxu3 %vm515_vm0, %v2480_v32  ;;  %v1013_v49 = vpop.f32.mrf.mxu2  ;;  %v7371_v50 = vld [vmem:[#allocation7 + $0x170] sm:$0xff] }
  0xca   : > { %2629 = vmatpush.bf16.msrb.mxu1 %v6151_v63  ;;  %v941_v63 = vld [vmem:[#allocation2] sm:$0x11] }
  0xcb   : > { %2802 = vmatpush.bf16.msrb.mxu2 %v7347_v57  ;;  %v922_v40 = vsel %vm548_vm1, %v902_v30, %v921_v34  ;;  %v7386_v34 = vld [vmem:[#allocation7 + $0x68] sm:$0xff] }
  0xcc   : > { %2815 = vmatpush.bf16.msrb.mxu3 %v7355_v58  ;;  %2616 = vmatpush.bf16.msrb.mxu0 %v6147_v62  ;;  %v924_v42 = vadd.f32 %v922_v40, %v837_v37  ;;  %v1026_v48 = vpop.f32.mrf.mxu3  ;;  %v7350_v58 = vld [vmem:[#allocation7 + $0xc8] sm:$0xff]  ;;  %v2565_v62 = vshrl.u32 %v8960_v18, 16  ;;  %v7368_v18 = vld [vmem:[#allocation7 + $0x158] sm:$0xff] }
  0xcd   : > { %v1032_v2 = vrot.slane %v1026_v48, 7 }
  0xce   : > { %2630 = vmatpush.bf16.msrb.mxu1 %v6143_v14  ;;  %v925_v44 = vmax.f32 %v924_v42, 0.0  ;;  %v944_v14 = vld [vmem:[%s9338_s3] sm:$0x3]  ;;  %v7377_v42 = vld [vmem:[#allocation7 + $0x20] sm:$0xff] }
  0xcf   : > { %2803 = vmatpush.bf16.msrb.mxu2 %v7346_v9  ;;  %v904_v54 = vpop.f32.mrf.mxu0  ;;  %v1033_v15 = vsel %vm548_vm1, %v1013_v49, %v1032_v2  ;;  %v7383_v2 = vld [vmem:[#allocation7 + $0x50] sm:$0xff]  ;;  %v7410_v49 = vld [vmem:[#allocation7 + $0x128] sm:$0xff] }
  0xd0   : > { %2816 = vmatpush.bf16.msrb.mxu3 %v7354_v10  ;;  %2617 = vmatpush.bf16.msrb.mxu0 %v6139_v13  ;;  %v927_v51 = vperm.slane %v925_v44, 0  ;;  %v928_v52 = vperm.slane %v925_v44, 1  ;;  %v917_v55 = vpop.f32.mrf.mxu1  ;;  %v2567_v13 = vrot.slane %v2565_v62, 3  ;;  %v1035_v21 = vadd.f32 %v1033_v15, %v944_v14  ;;  %v7376_v54 = vld [vmem:[#allocation7 + $0x18] sm:$0xff]  ;;  %v7394_v14 = vld [vmem:[#allocation7 + $0xa8] sm:$0xff] }
  0xd1   : > { %v1015_v6 = vpop.f32.mrf.mxu2 }
  0xd2   : > { %2631 = vmatpush.bf16.msrb.mxu1 %v6135_v35  ;;  %v931_v57 = vpack.c.bf16 %v928_v52, %v927_v51  ;;  %v7365_v52 = vld [vmem:[#allocation7 + $0x140] sm:$0xff] }
  0xd3   : > { %2804 = vmatpush.bf16.msrb.mxu2 %v7345_v17  ;;  %v7360_v17 = vld [vmem:[#allocation7 + $0x118] sm:$0xff] }
  0xd4   : > { %2817 = vmatpush.bf16.msrb.mxu3 %v7353_v20  ;;  %2618 = vmatpush.bf16.msrb.mxu0 %v6131_v33  ;;  %v933_v61 = vshll.u32 %v931_v57, 16  ;;  %v1028_v5 = vpop.f32.mrf.mxu3  ;;  %v7387_v20 = vld [vmem:[#allocation7 + $0x70] sm:$0xff]  ;;  %v7384_v57 = vld [vmem:[#allocation7 + $0x58] sm:$0xff] }
  0xd5   : > { %6161 = vmatmul.msk.bf16.vlgmr.msrb.gmra.mxu1 %vm515_vm0, %v2567_v13  ;;  %v7403_v5 = vld [vmem:[#allocation7 + $0xf0] sm:$0xff] }
  0xd6   : > { %2978 = vmatpush.bf16.msra.mxu1 %v7372_v41  ;;  %v942_v1 = vsel %vm940_vm12, %v933_v61, %v941_v63  ;;  %v7366_v41 = vld [vmem:[#allocation7 + $0x148] sm:$0xff]  ;;  %v1228_v61 = vld [vmem:[#allocation2] sm:$0x22]  ;;  %vm9028_vm12 = vmand %vm1221_vm13, %vm1510_vm8 }
  0xd7   : > { %2805 = vmatpush.bf16.msrb.mxu2 %v7344_v36  ;;  %943 = vst [vmem:[#allocation2] sm:$0x11] %v942_v1  ;;  %v1101_v9 = vpop.f32.mrf.mxu0  ;;  %6160 = vmatmul.msk.bf16.vlgmr.msrb.gmra.mxu0 %vm515_vm0, %v2567_v13  ;;  %v7382_v13 = vld [vmem:[#allocation7 + $0x48] sm:$0xff]  ;;  %vm1514_vm13 = vmor %vm9033_vm14, %vm9028_vm12 }
  0xd8   : > { %2818 = vmatpush.bf16.msrb.mxu3 %v7352_v38  ;;  %2965 = vmatpush.bf16.msra.mxu0 %v7364_v39  ;;  %v1114_v10 = vpop.f32.mrf.mxu1  ;;  %v7358_v39 = vld [vmem:[#allocation7 + $0x108] sm:$0xff]  ;;  %vm9048_vm8 = vmand %vm1793_vm15, %vm1794_vm3  ;;  %vm2083_vm3 = vsmask.f32 7962 }
  0xd9   : > { %v1120_v16 = vrot.slane %v1114_v10, 7  ;;  %v1188_v26 = vpop.f32.mrf.mxu2 }
  0xda   : > { %2979 = vmatpush.bf16.msra.mxu1 %v7371_v50 }
  0xdb   : > { %2806 = vmatpush.bf16.msrb.mxu2 %v7343_v43  ;;  %v1121_v22 = vsel %vm548_vm1, %v1101_v9, %v1120_v16  ;;  %v7385_v43 = vld [vmem:[#allocation7 + $0x60] sm:$0xff]  ;;  %v7374_v9 = vld [vmem:[#allocation7 + $0x8] sm:$0xff] }
  0xdc   : > { %2819 = vmatpush.bf16.msrb.mxu3 %v7351_v45  ;;  %2966 = vmatpush.bf16.msra.mxu0 %v7363_v46  ;;  %v1201_v25 = vpop.f32.mrf.mxu3  ;;  %v1123_v35 = vadd.f32 %v1121_v22, %v1035_v21  ;;  %v7357_v46 = vld [vmem:[#allocation7 + $0x100] sm:$0xff]  ;;  %v7546_v45 = vld [vmem:[%s9341_s6 + $0x68] sm:$0xff] }
  0xdd   : > { %v1207_v31 = vrot.slane %v1201_v25, 7  ;;  %v7381_v21 = vld [vmem:[#allocation7 + $0x40] sm:$0xff]  ;;  %v1231_v25 = vld [vmem:[%s9338_s3] sm:$0x3] }
  0xde   : > { %2980 = vmatpush.bf16.msra.mxu1 %v7370_v60  ;;  %v2664_v24 = vld [vmem:[#allocation2] sm:$0x11] }
  0xdf   : > { %2807 = vmatpush.bf16.msrb.mxu2 %v7342_v56  ;;  %v2699_v29 = vunpack.c.l.b16 %v2664_v24  ;;  %v2700_v30 = vunpack.c.h.b16 %v2664_v24  ;;  %v1103_v32 = vpop.f32.mrf.mxu0  ;;  %v1208_v38 = vsel %vm548_vm1, %v1188_v26, %v1207_v31  ;;  %v7404_v60 = vld [vmem:[#allocation7 + $0xf8] sm:$0xff] }
  0xe0   : > { %2820 = vmatpush.bf16.msrb.mxu3 %v7350_v58  ;;  %2967 = vmatpush.bf16.msra.mxu0 %v7362_v59  ;;  %v1116_v33 = vpop.f32.mrf.mxu1  ;;  %v1210_v40 = vadd.f32 %v1208_v38, %v1123_v35  ;;  %v7396_v58 = vld [vmem:[#allocation7 + $0xb8] sm:$0xff] }
  0xe1   : > { %v2701_v36 = vpack.c.b16 %v2699_v29, %v2699_v29  ;;  %v2702_v37 = vpack.c.b16 %v2700_v30, %v2700_v30  ;;  %v1190_v51 = vpop.f32.mrf.mxu2  ;;  %v2998_v6 = vld [vmem:[#allocation2] sm:$0x11] }
  0xe2   : > { %2981 = vmatpush.bf16.msra.mxu1 %v7369_v7  ;;  %v1211_v44 = vmax.f32 %v1210_v40, 0.0  ;;  %v3032_v15 = vunpack.c.l.b16 %v2998_v6  ;;  %v7420_v29 = vld [vmem:[#allocation7 + $0x178] sm:$0xff]  ;;  %v7418_v51 = vld [vmem:[#allocation7 + $0x168] sm:$0xff] }
  0xe3   : > { %2808 = vmatpush.bf16.msrb.mxu2 %v7341_v0  ;;  %v2862_v63 = vshrl.u32 %v2701_v36, 16  ;;  %v7375_v0 = vld [vmem:[#allocation7 + $0x10] sm:$0xff]  ;;  %v2865_v1 = vshrl.u32 %v2702_v37, 16  ;;  %v7400_v40 = vld [vmem:[#allocation7 + $0xd8] sm:$0xff] }
  0xe4   : > { %2821 = vmatpush.bf16.msrb.mxu3 %v7349_v3  ;;  %2968 = vmatpush.bf16.msra.mxu0 %v7361_v4  ;;  %v1213_v47 = vperm.slane %v1211_v44, 0  ;;  %v1214_v48 = vperm.slane %v1211_v44, 1  ;;  %v1203_v50 = vpop.f32.mrf.mxu3  ;;  %v7395_v3 = vld [vmem:[#allocation7 + $0xb0] sm:$0xff]  ;;  %v3034_v22 = vpack.c.b16 %v3032_v15, %v3032_v15 }
  0xe6   : > { %2982 = vmatpush.bf16.msra.mxu1 %v7368_v18  ;;  %2809 = vmatmul.bf16.vlgmr.msrb.gmra.mxu2 %v2701_v36  ;;  %v1217_v59 = vpack.c.bf16 %v1214_v48, %v1213_v47  ;;  %v3033_v18 = vunpack.c.h.b16 %v2998_v6  ;;  %v7391_v47 = vld [vmem:[#allocation7 + $0x90] sm:$0xff] }
  0xe7   : > { %3140 = vmatpush.bf16.msra.mxu2 %v7380_v8  ;;  %2822 = vmatmul.bf16.vlgmr.msrb.gmra.mxu3 %v2702_v37  ;;  %v1300_v55 = vpop.f32.mrf.mxu0  ;;  %v7392_v37 = vld [vmem:[#allocation7 + $0x98] sm:$0xff]  ;;  %v7399_v48 = vld [vmem:[#allocation7 + $0xd0] sm:$0xff] }
  0xe8   : > { %3153 = vmatpush.bf16.msra.mxu3 %v7388_v11  ;;  %2969 = vmatpush.bf16.msra.mxu0 %v7360_v17  ;;  %v1313_v56 = vpop.f32.mrf.mxu1  ;;  %v1219_v62 = vrot.slane %v1217_v59, 7  ;;  %v7402_v17 = vld [vmem:[#allocation7 + $0xe8] sm:$0xff]  ;;  %v3035_v26 = vpack.c.b16 %v3033_v18, %v3033_v18  ;;  %v7427_v18 = vld [vmem:[#allocation7 + $0x30] sm:$0xff] }
  0xe9   : > { %v1388_v8 = vpop.f32.mrf.mxu2  ;;  %v1319_v16 = vrot.slane %v1313_v56, 7  ;;  %v7390_v59 = vld [vmem:[#allocation7 + $0x88] sm:$0xff] }
  0xea   : > { %2983 = vmatpush.bf16.msra.mxu1 %v7367_v27  ;;  %v1229_v4 = vsel %vm1227_vm7, %v1219_v62, %v1228_v61  ;;  %v7401_v27 = vld [vmem:[#allocation7 + $0xe0] sm:$0xff]  ;;  %v3040_v38 = vshrl.u32 %v3035_v26, 16  ;;  %v7398_v61 = vld [vmem:[#allocation7 + $0xc8] sm:$0xff]  ;;  %vm1797_vm7 = vsmask.f32 6400 }
  0xeb   : > { %3141 = vmatpush.bf16.msra.mxu2 %v7379_v19  ;;  %1230 = vst [vmem:[#allocation2] sm:$0x22] %v1229_v4  ;;  %v1320_v24 = vsel %vm548_vm1, %v1300_v55, %v1319_v16  ;;  %v7409_v62 = vld [vmem:[#allocation7 + $0x120] sm:$0xff]  ;;  %v7426_v26 = vld [vmem:[#allocation7 + $0x28] sm:$0xff]  ;;  %vm9054_vm10 = vmand %vm1796_vm6, %vm1797_vm7 }
  0xec   : > { %3154 = vmatpush.bf16.msra.mxu3 %v7387_v20  ;;  %2970 = vmatpush.bf16.msra.mxu0 %v7359_v23  ;;  %v1401_v7 = vpop.f32.mrf.mxu3  ;;  %v7373_v20 = vld [vmem:[#allocation7] sm:$0xff]  ;;  %v1322_v33 = vadd.f32 %v1320_v24, %v1231_v25  ;;  %v7415_v24 = vld [vmem:[#allocation7 + $0x150] sm:$0xff]  ;;  %vm1799_vm14 = vmor %vm9054_vm10, %vm9048_vm8  ;;  %vm2367_vm10 = vsmask.f32 3328 }
  0xed   : > { %v1407_v19 = vrot.slane %v1401_v7, 7  ;;  %v7393_v23 = vld [vmem:[#allocation7 + $0xa0] sm:$0xff]  ;;  %vm9076_vm8 = vmand %vm1796_vm6, %vm2083_vm3  ;;  %vm2366_vm6 = vcmask 1043459  }
  0xee   : > { %2984 = vmatpush.bf16.msra.mxu1 %v7366_v41  ;;  %v7411_v41 = vld [vmem:[#allocation7 + $0x130] sm:$0xff]  ;;  %v7397_v4 = vld [vmem:[#allocation7 + $0xc0] sm:$0xff]  ;;  %vm9092_vm3 = vmand %vm2366_vm6, %vm2367_vm10  ;;  %vm2657_vm10 = vsmask.f32 7966 }
  0xef   : > { %3142 = vmatpush.bf16.msra.mxu2 %v7378_v28  ;;  %v1302_v10 = vpop.f32.mrf.mxu0  ;;  %v7412_v28 = vld [vmem:[#allocation7 + $0x138] sm:$0xff]  ;;  %v1408_v30 = vsel %vm548_vm1, %v1388_v8, %v1407_v19  ;;  %v1518_v19 = vld [vmem:[%s9338_s3] sm:$0x3] }
  0xf0   : > { %3155 = vmatpush.bf16.msra.mxu3 %v7386_v34  ;;  %2971 = vmatpush.bf16.msra.mxu0 %v7358_v39  ;;  %v1315_v11 = vpop.f32.mrf.mxu1  ;;  %v3037_v34 = vshrl.u32 %v3034_v22, 16  ;;  %v7436_v8 = vld [vmem:[#allocation7 + $0x78] sm:$0xff]  ;;  %v7435_v22 = vld [vmem:[#allocation7 + $0x70] sm:$0xff] }
  0xf1   : > { %v1390_v32 = vpop.f32.mrf.mxu2 }
  0xf2   : > { %2985 = vmatpush.bf16.msra.mxu1 %v7365_v52  ;;  %v1515_v10 = vld [vmem:[#allocation2] sm:$0x22]  ;;  %v7414_v32 = vld [vmem:[#allocation7 + $0x148] sm:$0xff] }
  0xf3   : > { %3143 = vmatpush.bf16.msra.mxu2 %v7377_v42  ;;  %v1410_v42 = vadd.f32 %v1408_v30, %v1322_v33 }
  0xf4   : > { %3156 = vmatpush.bf16.msra.mxu3 %v7385_v43  ;;  %2972 = vmatpush.bf16.msra.mxu0 %v7357_v46  ;;  %v1403_v31 = vpop.f32.mrf.mxu3  ;;  %v7419_v43 = vld [vmem:[#allocation7 + $0x170] sm:$0xff] }
  0xf5   : > { %2986 = vmatmul.bf16.vlgmr.msra.gmra.mxu1 %v2865_v1  ;;  %v7417_v1 = vld [vmem:[#allocation7 + $0x160] sm:$0xff] }
  0xf6   : > { %3318 = vmatpush.bf16.msrb.mxu1 %v7404_v60 }
  0xf7   : > { %3144 = vmatpush.bf16.msra.mxu2 %v7376_v54  ;;  %2973 = vmatmul.bf16.vlgmr.msra.gmra.mxu0 %v2862_v63  ;;  %v1475_v35 = vpop.f32.mrf.mxu0 }
  0xf8   : > { %3157 = vmatpush.bf16.msra.mxu3 %v7384_v57  ;;  %3305 = vmatpush.bf16.msrb.mxu0 %v7396_v58  ;;  %v1488_v36 = vpop.f32.mrf.mxu1 }
  0xf9   : > { %v1494_v39 = vrot.slane %v1488_v36, 7  ;;  %v1587_v54 = vpop.f32.mrf.mxu2 }
  0xfa   : > { %3319 = vmatpush.bf16.msrb.mxu1 %v7403_v5  ;;  %v7428_v5 = vld [vmem:[#allocation7 + $0x38] sm:$0xff] }
  0xfb   : > { %3145 = vmatpush.bf16.msra.mxu2 %v7375_v0  ;;  %v1495_v44 = vsel %vm548_vm1, %v1475_v35, %v1494_v39 }
  0xfc   : > { %3158 = vmatpush.bf16.msra.mxu3 %v7383_v2  ;;  %3306 = vmatpush.bf16.msrb.mxu0 %v7395_v3  ;;  %v1497_v46 = vadd.f32 %v1495_v44, %v1410_v42  ;;  %v1600_v52 = vpop.f32.mrf.mxu3  ;;  %v7389_v3 = vld [vmem:[#allocation7 + $0x80] sm:$0xff] }
  0xfd   : > { %v1606_v7 = vrot.slane %v1600_v52, 7  ;;  %v7433_v42 = vld [vmem:[#allocation7 + $0x60] sm:$0xff] }
  0xfe   : > { %3320 = vmatpush.bf16.msrb.mxu1 %v7402_v17  ;;  %v1498_v50 = vmax.f32 %v1497_v46, 0.0  ;;  %v7413_v46 = vld [vmem:[#allocation7 + $0x140] sm:$0xff] }
  0xff   : > { %3146 = vmatpush.bf16.msra.mxu2 %v7374_v9  ;;  %v1477_v57 = vpop.f32.mrf.mxu0  ;;  %v7408_v9 = vld [vmem:[#allocation7 + $0x118] sm:$0xff] }
 0x100   : > { %3159 = vmatpush.bf16.msra.mxu3 %v7382_v13  ;;  %3307 = vmatpush.bf16.msrb.mxu0 %v7394_v14  ;;  %v1500_v55 = vperm.slane %v1498_v50, 0  ;;  %v1501_v56 = vperm.slane %v1498_v50, 1  ;;  %v1490_v58 = vpop.f32.mrf.mxu1  ;;  %v7416_v14 = vld [vmem:[#allocation7 + $0x158] sm:$0xff] }
 0x101   : > { %v1589_v13 = vpop.f32.mrf.mxu2  ;;  %v7432_v57 = vld [vmem:[#allocation7 + $0x58] sm:$0xff] }
 0x102   : > { %3321 = vmatpush.bf16.msrb.mxu1 %v7401_v27  ;;  %v1504_v0 = vpack.c.bf16 %v1501_v56, %v1500_v55 }
 0x103   : > { %3147 = vmatpush.bf16.msra.mxu2 %v7373_v20  ;;  %v1607_v20 = vsel %vm548_vm1, %v1587_v54, %v1606_v7  ;;  %v7424_v54 = vld [vmem:[#allocation7 + $0x18] sm:$0xff]  ;;  %v7443_v7 = vld [vmem:[#allocation7 + $0xb0] sm:$0xff] }
 0x104   : > { %3160 = vmatpush.bf16.msra.mxu3 %v7381_v21  ;;  %3308 = vmatpush.bf16.msrb.mxu0 %v7393_v23  ;;  %v1506_v2 = vshll.u32 %v1504_v0, 16  ;;  %v1602_v11 = vpop.f32.mrf.mxu3  ;;  %v7407_v23 = vld [vmem:[#allocation7 + $0x110] sm:$0xff]  ;;  %v1609_v25 = vadd.f32 %v1607_v20, %v1518_v19  ;;  %v7422_v19 = vld [vmem:[#allocation7 + $0x8] sm:$0xff] }
 0x105   : > { %v7431_v11 = vld [vmem:[#allocation7 + $0x50] sm:$0xff]  ;;  %v7430_v20 = vld [vmem:[#allocation7 + $0x48] sm:$0xff] }
 0x106   : > { %3148 = vmatmul.bf16.vlgmr.msra.gmra.mxu2 %v3037_v34  ;;  %3322 = vmatpush.bf16.msrb.mxu1 %v7400_v40  ;;  %v1508_v6 = vrot.slane %v1506_v2, 7  ;;  %v7452_v2 = vld [vmem:[#allocation7 + $0xf8] sm:$0xff] }
 0x107   : > { %3470 = vmatpush.bf16.msrb.mxu2 %v7412_v28  ;;  %3161 = vmatmul.bf16.vlgmr.msra.gmra.mxu3 %v3040_v38  ;;  %v1671_v16 = vpop.f32.mrf.mxu0  ;;  %v7434_v28 = vld [vmem:[#allocation7 + $0x68] sm:$0xff]  ;;  %v7425_v38 = vld [vmem:[#allocation7 + $0x20] sm:$0xff] }
 0x108   : > { %3483 = vmatpush.bf16.msrb.mxu3 %v7420_v29  ;;  %3309 = vmatpush.bf16.msrb.mxu0 %v7392_v37  ;;  %v1516_v15 = vsel %vm1514_vm13, %v1508_v6, %v1515_v10  ;;  %v1684_v17 = vpop.f32.mrf.mxu1  ;;  %v7406_v29 = vld [vmem:[#allocation7 + $0x108] sm:$0xff]  ;;  %v1800_v10 = vld [vmem:[#allocation2] sm:$0x44]  ;;  %vm2081_vm13 = vsmask.f32 7946 }
 0x109   : > { %1517 = vst [vmem:[#allocation2] sm:$0x22] %v1516_v15  ;;  %v1690_v21 = vrot.slane %v1684_v17, 7  ;;  %v1760_v31 = vpop.f32.mrf.mxu2  ;;  %v7451_v15 = vld [vmem:[#allocation7 + $0xf0] sm:$0xff]  ;;  %v7442_v17 = vld [vmem:[#allocation7 + $0xa8] sm:$0xff]  ;;  %vm9070_vm7 = vmand %vm1793_vm15, %vm2081_vm13 }
 0x10a   : > { %3323 = vmatpush.bf16.msrb.mxu1 %v7399_v48  ;;  %vm2085_vm15 = vmor %vm9076_vm8, %vm9070_vm7  ;;  %vm2370_vm13 = vsmask.f32 7424 }
 0x10b   : > { %3471 = vmatpush.bf16.msrb.mxu2 %v7411_v41  ;;  %v1691_v27 = vsel %vm548_vm1, %v1671_v16, %v1690_v21 }
 0x10c   : > { %3484 = vmatpush.bf16.msrb.mxu3 %v7419_v43  ;;  %3310 = vmatpush.bf16.msrb.mxu0 %v7391_v47  ;;  %v1773_v30 = vpop.f32.mrf.mxu3  ;;  %v1693_v37 = vadd.f32 %v1691_v27, %v1609_v25  ;;  %v7405_v43 = vld [vmem:[#allocation7 + $0x100] sm:$0xff] }
 0x10d   : > { %v1779_v33 = vrot.slane %v1773_v30, 7  ;;  %v7421_v30 = vld [vmem:[#allocation7] sm:$0xff] }
 0x10e   : > { %3324 = vmatpush.bf16.msrb.mxu1 %v7398_v61 }
 0x10f   : > { %3472 = vmatpush.bf16.msrb.mxu2 %v7410_v49  ;;  %v1673_v34 = vpop.f32.mrf.mxu0  ;;  %v1780_v41 = vsel %vm548_vm1, %v1760_v31, %v1779_v33  ;;  %v7444_v49 = vld [vmem:[#allocation7 + $0xb8] sm:$0xff]  ;;  %v7429_v31 = vld [vmem:[#allocation7 + $0x40] sm:$0xff] }
 0x110   : > { %3485 = vmatpush.bf16.msrb.mxu3 %v7418_v51  ;;  %3311 = vmatpush.bf16.msrb.mxu0 %v7390_v59  ;;  %v1686_v35 = vpop.f32.mrf.mxu1  ;;  %v3167_v36 = vld [vmem:[#allocation2] sm:$0x22]  ;;  %v1782_v44 = vadd.f32 %v1780_v41, %v1693_v37 }
 0x111   : > { %v3201_v39 = vunpack.c.l.b16 %v3167_v36  ;;  %v3202_v40 = vunpack.c.h.b16 %v3167_v36  ;;  %v1762_v0 = vpop.f32.mrf.mxu2  ;;  %v7460_v33 = vld [vmem:[#allocation7 + $0x138] sm:$0xff]  ;;  %v7449_v36 = vld [vmem:[#allocation7 + $0xe0] sm:$0xff] }
 0x112   : > { %3325 = vmatpush.bf16.msrb.mxu1 %v7397_v4  ;;  %v1783_v50 = vmax.f32 %v1782_v44, 0.0  ;;  %v7468_v37 = vld [vmem:[#allocation7 + $0x178] sm:$0xff] }
 0x113   : > { %3473 = vmatpush.bf16.msrb.mxu2 %v7409_v62  ;;  %v3203_v47 = vpack.c.b16 %v3201_v39, %v3201_v39  ;;  %v3204_v48 = vpack.c.b16 %v3202_v40, %v3202_v40  ;;  %v1803_v40 = vld [vmem:[%s9338_s3] sm:$0x3] }
 0x114   : > { %3486 = vmatpush.bf16.msrb.mxu3 %v7417_v1  ;;  %3312 = vmatpush.bf16.msrb.mxu0 %v7389_v3  ;;  %v1785_v59 = vperm.slane %v1783_v50, 0  ;;  %v1786_v61 = vperm.slane %v1783_v50, 1  ;;  %v1775_v63 = vpop.f32.mrf.mxu3  ;;  %v3512_v3 = vld [vmem:[#allocation2] sm:$0x22] }
 0x115   : > { %v3205_v51 = vrot.slane %v3203_v47, 1  ;;  %v3206_v52 = vrot.slane %v3204_v48, 1  ;;  %v3365_v55 = vshrl.u32 %v3203_v47, 16  ;;  %v3369_v58 = vshrl.u32 %v3204_v48, 16  ;;  %v7448_v48 = vld [vmem:[#allocation7 + $0xd8] sm:$0xff]  ;;  %v7438_v63 = vld [vmem:[#allocation7 + $0x88] sm:$0xff] }
 0x116   : > { %3669 = vmatpush.bf16.msra.mxu1 %v7436_v8  ;;  %v1789_v8 = vpack.c.bf16 %v1786_v61, %v1785_v59  ;;  %v3546_v13 = vunpack.c.l.b16 %v3512_v3  ;;  %v3547_v16 = vunpack.c.h.b16 %v3512_v3  ;;  %v7447_v59 = vld [vmem:[#allocation7 + $0xd0] sm:$0xff]  ;;  %v7466_v61 = vld [vmem:[#allocation7 + $0x168] sm:$0xff] }
 0x117   : > { %3474 = vmatpush.bf16.msrb.mxu2 %v7408_v9  ;;  %3313 = vmatmul.bf16.vlgmr.msrb.gmra.mxu0 %v3205_v51  ;;  %v3367_v1 = vrot.slane %v3365_v55, 1  ;;  %v1871_v4 = vpop.f32.mrf.mxu0  ;;  %v3371_v6 = vrot.slane %v3369_v58, 1  ;;  %v7423_v9 = vld [vmem:[#allocation7 + $0x10] sm:$0xff] }
 0x118   : > { %3656 = vmatpush.bf16.msra.mxu0 %v7428_v5  ;;  %3487 = vmatpush.bf16.msrb.mxu3 %v7416_v14  ;;  %v1884_v5 = vpop.f32.mrf.mxu1  ;;  %v1791_v14 = vrot.slane %v1789_v8, 6  ;;  %v3548_v21 = vpack.c.b16 %v3546_v13, %v3546_v13  ;;  %v3549_v25 = vpack.c.b16 %v3547_v16, %v3547_v16  ;;  %v7476_v13 = vld [vmem:[#allocation7 + $0x38] sm:$0xff] }
 0x119   : > { %3326 = vmatmul.bf16.vlgmr.msrb.gmra.mxu1 %v3206_v52  ;;  %v7456_v16 = vld [vmem:[#allocation7 + $0x118] sm:$0xff] }
 0x11a   : > { %3670 = vmatpush.bf16.msra.mxu1 %v7435_v22  ;;  %v3555_v35 = vshrl.u32 %v3549_v25, 16 }
 0x11b   : > { %3475 = vmatpush.bf16.msrb.mxu2 %v7407_v23  ;;  %v1959_v23 = vpop.f32.mrf.mxu2 }
 0x11c   : > { %3657 = vmatpush.bf16.msra.mxu0 %v7427_v18  ;;  %3488 = vmatpush.bf16.msrb.mxu3 %v7415_v24  ;;  %v1801_v18 = vsel %vm1799_vm14, %v1791_v14, %v1800_v10  ;;  %v1972_v22 = vpop.f32.mrf.mxu3  ;;  %v7450_v24 = vld [vmem:[#allocation7 + $0xe8] sm:$0xff]  ;;  %v7437_v10 = vld [vmem:[#allocation7 + $0x80] sm:$0xff]  ;;  %vm2369_vm14 = vcmask 1047559  }
 0x11d   : > { %1802 = vst [vmem:[#allocation2] sm:$0x44] %v1801_v18  ;;  %v1978_v34 = vrot.slane %v1972_v22, 7  ;;  %v7464_v18 = vld [vmem:[#allocation7 + $0x158] sm:$0xff]  ;;  %vm9098_vm7 = vmand %vm2369_vm14, %vm2370_vm13  ;;  %v7513_v14 = vld [vmem:[#allocation7 + $0x160] sm:$0xff] }
 0x11e   : > { %3671 = vmatpush.bf16.msra.mxu1 %v7434_v28  ;;  %v7441_v28 = vld [vmem:[#allocation7 + $0xa0] sm:$0xff]  ;;  %vm2372_vm8 = vmor %vm9098_vm7, %vm9092_vm3 }
 0x11f   : > { %3476 = vmatpush.bf16.msrb.mxu2 %v7406_v29  ;;  %v1890_v29 = vrot.slane %v1884_v5, 7  ;;  %v7465_v5 = vld [vmem:[#allocation7 + $0x160] sm:$0xff]  ;;  %vm9118_vm3 = vmand %vm2369_vm14, %vm2657_vm10 }
 0x120   : > { %3658 = vmatpush.bf16.msra.mxu0 %v7426_v26  ;;  %3489 = vmatpush.bf16.msrb.mxu3 %v7414_v32  ;;  %v1873_v26 = vpop.f32.mrf.mxu0  ;;  %v1886_v27 = vpop.f32.mrf.mxu1  ;;  %v3551_v32 = vshrl.u32 %v3548_v21, 16  ;;  %v7475_v21 = vld [vmem:[#allocation7 + $0x30] sm:$0xff] }
 0x121   : > { %v1891_v39 = vsel %vm548_vm1, %v1871_v4, %v1890_v29  ;;  %v7446_v4 = vld [vmem:[#allocation7 + $0xc8] sm:$0xff] }
 0x122   : > { %3672 = vmatpush.bf16.msra.mxu1 %v7433_v42  ;;  %v3553_v41 = vrot.slane %v3551_v32, 1  ;;  %v7459_v42 = vld [vmem:[#allocation7 + $0x130] sm:$0xff]  ;;  %v1893_v50 = vadd.f32 %v1891_v39, %v1803_v40  ;;  %v7482_v39 = vld [vmem:[#allocation7 + $0x68] sm:$0xff] }
 0x123   : > { %3477 = vmatpush.bf16.msrb.mxu2 %v7405_v43  ;;  %v1979_v43 = vsel %vm548_vm1, %v1959_v23, %v1978_v34  ;;  %v1961_v47 = vpop.f32.mrf.mxu2  ;;  %v7483_v32 = vld [vmem:[#allocation7 + $0x70] sm:$0xff]  ;;  %v2089_v34 = vld [vmem:[%s9338_s3] sm:$0x3] }
 0x124   : > { %3659 = vmatpush.bf16.msra.mxu0 %v7425_v38  ;;  %3490 = vmatpush.bf16.msrb.mxu3 %v7413_v46  ;;  %v7440_v38 = vld [vmem:[#allocation7 + $0x98] sm:$0xff]  ;;  %v1974_v44 = vpop.f32.mrf.mxu3  ;;  %v3557_v46 = vrot.slane %v3555_v35, 1  ;;  %v1981_v56 = vadd.f32 %v1979_v43, %v1893_v50  ;;  %v7453_v43 = vld [vmem:[#allocation7 + $0x100] sm:$0xff] }
 0x125   : > { %v2086_v25 = vld [vmem:[#allocation2] sm:$0x44]  ;;  %v7461_v47 = vld [vmem:[#allocation7 + $0x140] sm:$0xff] }
 0x126   : > { %3478 = vmatmul.bf16.vlgmr.msrb.gmra.mxu2 %v3367_v1  ;;  %3673 = vmatpush.bf16.msra.mxu1 %v7432_v57  ;;  %v7458_v57 = vld [vmem:[#allocation7 + $0x128] sm:$0xff]  ;;  %v7457_v1 = vld [vmem:[#allocation7 + $0x120] sm:$0xff] }
 0x127   : > { %3821 = vmatpush.bf16.msra.mxu2 %v7444_v49  ;;  %3491 = vmatmul.bf16.vlgmr.msrb.gmra.mxu3 %v3371_v6  ;;  %v7467_v49 = vld [vmem:[#allocation7 + $0x170] sm:$0xff] }
 0x128   : > { %3660 = vmatpush.bf16.msra.mxu0 %v7424_v54  ;;  %3834 = vmatpush.bf16.msra.mxu3 %v7452_v2  ;;  %v2046_v51 = vpop.f32.mrf.mxu0  ;;  %v2059_v52 = vpop.f32.mrf.mxu1  ;;  %v7439_v54 = vld [vmem:[#allocation7 + $0x90] sm:$0xff] }
 0x129   : > { %v2065_v55 = vrot.slane %v2059_v52, 7 }
 0x12a   : > { %3674 = vmatpush.bf16.msra.mxu1 %v7431_v11 }
 0x12b   : > { %3822 = vmatpush.bf16.msra.mxu2 %v7443_v7  ;;  %v2066_v58 = vsel %vm548_vm1, %v2046_v51, %v2065_v55  ;;  %v2158_v3 = vpop.f32.mrf.mxu2  ;;  %v7481_v51 = vld [vmem:[#allocation7 + $0x60] sm:$0xff] }
 0x12c   : > { %3661 = vmatpush.bf16.msra.mxu0 %v7423_v9  ;;  %3835 = vmatpush.bf16.msra.mxu3 %v7451_v15  ;;  %v2068_v62 = vadd.f32 %v2066_v58, %v1981_v56  ;;  %v2171_v2 = vpop.f32.mrf.mxu3  ;;  %v7472_v58 = vld [vmem:[#allocation7 + $0x18] sm:$0xff] }
 0x12d   : > { %v2177_v23 = vrot.slane %v2171_v2, 7  ;;  %v7491_v2 = vld [vmem:[#allocation7 + $0xb0] sm:$0xff] }
 0x12e   : > { %3675 = vmatpush.bf16.msra.mxu1 %v7430_v20  ;;  %v2069_v0 = vmax.f32 %v2068_v62, 0.0  ;;  %v7484_v20 = vld [vmem:[#allocation7 + $0x78] sm:$0xff] }
 0x12f   : > { %3823 = vmatpush.bf16.msra.mxu2 %v7442_v17  ;;  %v7445_v17 = vld [vmem:[#allocation7 + $0xc0] sm:$0xff]  ;;  %v2178_v35 = vsel %vm548_vm1, %v2158_v3, %v2177_v23  ;;  %v7490_v23 = vld [vmem:[#allocation7 + $0xa8] sm:$0xff] }
 0x130   : > { %3662 = vmatpush.bf16.msra.mxu0 %v7422_v19  ;;  %3836 = vmatpush.bf16.msra.mxu3 %v7450_v24  ;;  %v2071_v6 = vperm.slane %v2069_v0, 0  ;;  %v2072_v7 = vperm.slane %v2069_v0, 1  ;;  %v2048_v8 = vpop.f32.mrf.mxu0  ;;  %v2061_v9 = vpop.f32.mrf.mxu1  ;;  %v7455_v24 = vld [vmem:[#allocation7 + $0x110] sm:$0xff]  ;;  %v2180_v40 = vadd.f32 %v2178_v35, %v2089_v34  ;;  %v7469_v34 = vld [vmem:[#allocation7] sm:$0xff] }
 0x132   : > { %3676 = vmatpush.bf16.msra.mxu1 %v7429_v31  ;;  %v2075_v15 = vpack.c.bf16 %v2072_v7, %v2071_v6  ;;  %v7471_v7 = vld [vmem:[#allocation7 + $0x10] sm:$0xff] }
 0x133   : > { %3824 = vmatpush.bf16.msra.mxu2 %v7441_v28  ;;  %v2160_v27 = vpop.f32.mrf.mxu2  ;;  %v7463_v28 = vld [vmem:[#allocation7 + $0x150] sm:$0xff] }
 0x134   : > { %3663 = vmatpush.bf16.msra.mxu0 %v7421_v30  ;;  %3837 = vmatpush.bf16.msra.mxu3 %v7449_v36  ;;  %v2077_v19 = vshll.u32 %v2075_v15, 16  ;;  %v2173_v26 = vpop.f32.mrf.mxu3 }
 0x135   : > { %3677 = vmatmul.bf16.vlgmr.msra.gmra.mxu1 %v3557_v46 }
 0x136   : > { %3999 = vmatpush.bf16.msrb.mxu1 %v7468_v37  ;;  %v2079_v22 = vrot.slane %v2077_v19, 6  ;;  %v7454_v37 = vld [vmem:[#allocation7 + $0x108] sm:$0xff] }
 0x137   : > { %3664 = vmatmul.bf16.vlgmr.msra.gmra.mxu0 %v3553_v41  ;;  %3825 = vmatpush.bf16.msra.mxu2 %v7440_v38  ;;  %v7462_v38 = vld [vmem:[#allocation7 + $0x148] sm:$0xff]  ;;  %v7473_v41 = vld [vmem:[#allocation7 + $0x20] sm:$0xff] }
 0x138   : > { %3986 = vmatpush.bf16.msrb.mxu0 %v7460_v33  ;;  %3838 = vmatpush.bf16.msra.mxu3 %v7448_v48  ;;  %v2087_v29 = vsel %vm2085_vm15, %v2079_v22, %v2086_v25  ;;  %v2246_v30 = vpop.f32.mrf.mxu0  ;;  %v2259_v31 = vpop.f32.mrf.mxu1  ;;  %v7474_v33 = vld [vmem:[#allocation7 + $0x28] sm:$0xff]  ;;  %v7479_v22 = vld [vmem:[#allocation7 + $0x50] sm:$0xff]  ;;  %vm2655_vm15 = vsmask.f32 7950 }
 0x139   : > { %2088 = vst [vmem:[#allocation2] sm:$0x44] %v2087_v29  ;;  %v2265_v36 = vrot.slane %v2259_v31, 7  ;;  %v7470_v25 = vld [vmem:[#allocation7 + $0x8] sm:$0xff]  ;;  %vm9113_vm13 = vmand %vm2366_vm6, %vm2655_vm15 }
 0x13a   : > { %4000 = vmatpush.bf16.msrb.mxu1 %v7467_v49  ;;  %v7478_v31 = vld [vmem:[#allocation7 + $0x48] sm:$0xff]  ;;  %vm2659_vm6 = vmor %vm9118_vm3, %vm9113_vm13 }
 0x13b   : > { %3826 = vmatpush.bf16.msra.mxu2 %v7439_v54  ;;  %v2333_v46 = vpop.f32.mrf.mxu2  ;;  %v7492_v54 = vld [vmem:[#allocation7 + $0xb8] sm:$0xff] }
 0x13c   : > { %3987 = vmatpush.bf16.msrb.mxu0 %v7459_v42  ;;  %3839 = vmatpush.bf16.msra.mxu3 %v7447_v59  ;;  %v2266_v42 = vsel %vm548_vm1, %v2246_v30, %v2265_v36  ;;  %v2346_v44 = vpop.f32.mrf.mxu3  ;;  %v7500_v59 = vld [vmem:[#allocation7 + $0xf8] sm:$0xff]  ;;  %v7498_v30 = vld [vmem:[#allocation7 + $0xe8] sm:$0xff] }
 0x13d   : > { %v2352_v48 = vrot.slane %v2346_v44, 7  ;;  %v2268_v55 = vadd.f32 %v2266_v42, %v2180_v40  ;;  %v7477_v42 = vld [vmem:[#allocation7 + $0x40] sm:$0xff] }
 0x13e   : > { %4001 = vmatpush.bf16.msrb.mxu1 %v7466_v61 }
 0x13f   : > { %3827 = vmatpush.bf16.msra.mxu2 %v7438_v63  ;;  %v2353_v61 = vsel %vm548_vm1, %v2333_v46, %v2352_v48 }
 0x140   : > { %3988 = vmatpush.bf16.msrb.mxu0 %v7458_v57  ;;  %3840 = vmatpush.bf16.msra.mxu3 %v7446_v4  ;;  %v2248_v49 = vpop.f32.mrf.mxu0  ;;  %v2261_v50 = vpop.f32.mrf.mxu1  ;;  %v3683_v52 = vld [vmem:[#allocation2] sm:$0x44]  ;;  %v2355_v62 = vadd.f32 %v2353_v61, %v2268_v55  ;;  %v2376_v61 = vld [vmem:[%s9338_s3] sm:$0x3] }
 0x141   : > { %v3717_v56 = vunpack.c.l.b16 %v3683_v52  ;;  %v3718_v57 = vunpack.c.h.b16 %v3683_v52  ;;  %v7507_v49 = vld [vmem:[#allocation7 + $0x130] sm:$0xff] }
 0x142   : > { %4002 = vmatpush.bf16.msrb.mxu1 %v7465_v5  ;;  %v2356_v3 = vmax.f32 %v2355_v62, 0.0  ;;  %v7487_v52 = vld [vmem:[#allocation7 + $0x90] sm:$0xff] }
 0x143   : > { %3828 = vmatpush.bf16.msra.mxu2 %v7437_v10  ;;  %v3719_v63 = vpack.c.b16 %v3717_v56, %v3717_v56  ;;  %v3720_v0 = vpack.c.b16 %v3718_v57, %v3718_v57  ;;  %v4027_v10 = vld [vmem:[#allocation2] sm:$0x44] }
 0x144   : > { %3989 = vmatpush.bf16.msrb.mxu0 %v7457_v1  ;;  %3841 = vmatpush.bf16.msra.mxu3 %v7445_v17  ;;  %v7480_v1 = vld [vmem:[#allocation7 + $0x58] sm:$0xff]  ;;  %v2358_v11 = vperm.slane %v2356_v3, 0  ;;  %v2348_v15 = vpop.f32.mrf.mxu3  ;;  %v4061_v26 = vunpack.c.l.b16 %v4027_v10  ;;  %v4062_v27 = vunpack.c.h.b16 %v4027_v10  ;;  %v7515_v57 = vld [vmem:[#allocation7 + $0x170] sm:$0xff]  ;;  %v7494_v10 = vld [vmem:[#allocation7 + $0xc8] sm:$0xff] }
 0x145   : > { %v3721_v4 = vrot.slane %v3719_v63, 2  ;;  %v3722_v5 = vrot.slane %v3720_v0, 2  ;;  %v3881_v6 = vshrl.u32 %v3719_v63, 16  ;;  %v3885_v9 = vshrl.u32 %v3720_v0, 16  ;;  %v7495_v63 = vld [vmem:[#allocation7 + $0xd0] sm:$0xff]  ;;  %v7486_v0 = vld [vmem:[#allocation7 + $0x88] sm:$0xff] }
 0x146   : > { %4003 = vmatpush.bf16.msrb.mxu1 %v7464_v18  ;;  %v7499_v18 = vld [vmem:[#allocation7 + $0xf0] sm:$0xff]  ;;  %v4063_v35 = vpack.c.b16 %v4061_v26, %v4061_v26  ;;  %v4064_v36 = vpack.c.b16 %v4062_v27, %v4062_v27 }
 0x147   : > { %4171 = vmatpush.bf16.msrb.mxu2 %v7476_v13  ;;  %v2359_v13 = vperm.slane %v2356_v3, 1  ;;  %3842 = vmatmul.bf16.vlgmr.msra.gmra.mxu3 %v3722_v5  ;;  %v3883_v17 = vrot.slane %v3881_v6, 2  ;;  %v7514_v3 = vld [vmem:[#allocation7 + $0x168] sm:$0xff] }
 0x148   : > { %3990 = vmatpush.bf16.msrb.mxu0 %v7456_v16  ;;  %4184 = vmatpush.bf16.msrb.mxu3 %v7484_v20  ;;  %v2335_v16 = vpop.f32.mrf.mxu2  ;;  %v2445_v19 = vpop.f32.mrf.mxu0  ;;  %v4066_v44 = vshrl.u32 %v4063_v35, 16  ;;  %v4070_v46 = vshrl.u32 %v4064_v36, 16 }
 0x149   : > { %3829 = vmatmul.bf16.vlgmr.msra.gmra.mxu2 %v3721_v4  ;;  %v2458_v20 = vpop.f32.mrf.mxu1  ;;  %v7504_v16 = vld [vmem:[#allocation7 + $0x118] sm:$0xff] }
 0x14a   : > { %4004 = vmatpush.bf16.msrb.mxu1 %v7463_v28  ;;  %v2373_v28 = vld [vmem:[#allocation2] sm:$0x88]  ;;  %v2464_v50 = vrot.slane %v2458_v20, 7  ;;  %v4068_v55 = vrot.slane %v4066_v44, 2  ;;  %v4072_v56 = vrot.slane %v4070_v46, 2  ;;  %v7509_v44 = vld [vmem:[#allocation7 + $0x140] sm:$0xff] }
 0x14b   : > { %4172 = vmatpush.bf16.msrb.mxu2 %v7475_v21  ;;  %v3887_v21 = vrot.slane %v3885_v9, 2  ;;  %v7512_v20 = vld [vmem:[#allocation7 + $0x158] sm:$0xff] }
 0x14c   : > { %3991 = vmatpush.bf16.msrb.mxu0 %v7455_v24  ;;  %4185 = vmatpush.bf16.msrb.mxu3 %v7483_v32  ;;  %v2362_v24 = vpack.c.bf16 %v2359_v13, %v2358_v11  ;;  %v7489_v32 = vld [vmem:[#allocation7 + $0xa0] sm:$0xff] }
 0x14d   : > { %v7485_v11 = vld [vmem:[#allocation7 + $0x80] sm:$0xff] }
 0x14e   : > { %4005 = vmatpush.bf16.msrb.mxu1 %v7462_v38  ;;  %v2364_v29 = vrot.slane %v2362_v24, 5  ;;  %v2546_v38 = vpop.f32.mrf.mxu3  ;;  %v7503_v24 = vld [vmem:[#allocation7 + $0x110] sm:$0xff] }
 0x14f   : > { %4173 = vmatpush.bf16.msrb.mxu2 %v7474_v33 }
 0x150   : > { %3992 = vmatpush.bf16.msrb.mxu0 %v7454_v37  ;;  %4186 = vmatpush.bf16.msrb.mxu3 %v7482_v39  ;;  %v2374_v33 = vsel %vm2372_vm8, %v2364_v29, %v2373_v28  ;;  %v7508_v37 = vld [vmem:[#allocation7 + $0x138] sm:$0xff]  ;;  %v7497_v39 = vld [vmem:[#allocation7 + $0xe0] sm:$0xff]  ;;  %v2447_v40 = vpop.f32.mrf.mxu0  ;;  %v2533_v48 = vpop.f32.mrf.mxu2  ;;  %v7511_v28 = vld [vmem:[#allocation7 + $0x150] sm:$0xff] }
 0x151   : > { %2375 = vst [vmem:[#allocation2] sm:$0x88] %v2374_v33  ;;  %v2663_v33 = vld [vmem:[%s9340_s5] sm:$0x1]  ;;  %v7501_v40 = vld [vmem:[#allocation7 + $0x100] sm:$0xff] }
 0x152   : > { %4006 = vmatpush.bf16.msrb.mxu1 %v7461_v47  ;;  %v7516_v47 = vld [vmem:[#allocation7 + $0x178] sm:$0xff] }
 0x153   : > { %4174 = vmatpush.bf16.msrb.mxu2 %v7473_v41  ;;  %v2460_v41 = vpop.f32.mrf.mxu1 }
 0x154   : > { %3993 = vmatpush.bf16.msrb.mxu0 %v7453_v43  ;;  %4187 = vmatpush.bf16.msrb.mxu3 %v7481_v51  ;;  %v7488_v43 = vld [vmem:[#allocation7 + $0x98] sm:$0xff] }
 0x155   : > { %4007 = vmatmul.bf16.vlgmr.msrb.gmra.mxu1 %v3887_v21  ;;  %v7496_v51 = vld [vmem:[#allocation7 + $0xd8] sm:$0xff] }
 0x156   : > { %4349 = vmatpush.bf16.msra.mxu1 %v7500_v59  ;;  %v2465_v59 = vsel %vm548_vm1, %v2445_v19, %v2464_v50  ;;  %v2548_v62 = vpop.f32.mrf.mxu3  ;;  %v2994_v50 = vld [vmem:[#allocation3] sm:$0x1] }
 0x157   : > { %4175 = vmatpush.bf16.msrb.mxu2 %v7472_v58  ;;  %3994 = vmatmul.bf16.vlgmr.msrb.gmra.mxu0 %v3883_v17  ;;  %v7506_v58 = vld [vmem:[#allocation7 + $0x128] sm:$0xff]  ;;  %v2467_v4 = vadd.f32 %v2465_v59, %v2376_v61 }
 0x158   : > { %4336 = vmatpush.bf16.msra.mxu0 %v7492_v54  ;;  %4188 = vmatpush.bf16.msrb.mxu3 %v7480_v1  ;;  %v2552_v54 = vrot.slane %v2546_v38, 7  ;;  %v2535_v5 = vpop.f32.mrf.mxu2  ;;  %v2660_v35 = vld [vmem:[#allocation2] sm:$0x88]  ;;  %v7524_v62 = vld [vmem:[%s9341_s6 + $0x78] sm:$0xff] }
 0x15a   : > { %4350 = vmatpush.bf16.msra.mxu1 %v7499_v18  ;;  %v2553_v1 = vsel %vm548_vm1, %v2533_v48, %v2552_v54  ;;  %v7493_v18 = vld [vmem:[#allocation7 + $0xc0] sm:$0xff] }
 0x15b   : > { %4176 = vmatpush.bf16.msrb.mxu2 %v7471_v7  ;;  %v2633_v6 = vpop.f32.mrf.mxu1  ;;  %v7505_v7 = vld [vmem:[#allocation7 + $0x120] sm:$0xff]  ;;  %v2555_v9 = vadd.f32 %v2553_v1, %v2467_v4 }
 0x15c   : > { %4337 = vmatpush.bf16.msra.mxu0 %v7491_v2  ;;  %4189 = vmatpush.bf16.msrb.mxu3 %v7479_v22  ;;  %v2620_v2 = vpop.f32.mrf.mxu0  ;;  %v2639_v8 = vrot.slane %v2633_v6, 7 }
 0x15e   : > { %4351 = vmatpush.bf16.msra.mxu1 %v7498_v30  ;;  %v2640_v13 = vsel %vm548_vm1, %v2620_v2, %v2639_v8  ;;  %v7502_v30 = vld [vmem:[#allocation7 + $0x108] sm:$0xff] }
 0x15f   : > { %4177 = vmatpush.bf16.msrb.mxu2 %v7470_v25  ;;  %v2642_v15 = vadd.f32 %v2640_v13, %v2555_v9  ;;  %v7532_v8 = vld [vmem:[%s9341_s6 + $0xb8] sm:$0xff]  ;;  %v7521_v9 = vld [vmem:[%s9341_s6 + $0x60] sm:$0xff] }
 0x160   : > { %4338 = vmatpush.bf16.msra.mxu0 %v7490_v23  ;;  %4190 = vmatpush.bf16.msrb.mxu3 %v7478_v31  ;;  %v7537_v25 = vld [vmem:[%s9341_s6 + $0x20] sm:$0xff] }
 0x161   : > { %v2643_v17 = vmax.f32 %v2642_v15, 0.0  ;;  %v7530_v15 = vld [vmem:[%s9341_s6 + $0xa8] sm:$0xff] }
 0x162   : > { %4352 = vmatpush.bf16.msra.mxu1 %v7497_v39 }
 0x163   : > { %4178 = vmatpush.bf16.msrb.mxu2 %v7469_v34  ;;  %v2645_v21 = vperm.slane %v2643_v17, 0  ;;  %v2646_v22 = vperm.slane %v2643_v17, 1  ;;  %v2635_v23 = vpop.f32.mrf.mxu1  ;;  %v7519_v17 = vld [vmem:[%s9341_s6 + $0x50] sm:$0xff] }
 0x164   : > { %4339 = vmatpush.bf16.msra.mxu0 %v7489_v32  ;;  %4191 = vmatpush.bf16.msrb.mxu3 %v7477_v42  ;;  %v2622_v19 = vpop.f32.mrf.mxu0  ;;  %v7517_v23 = vld [vmem:[%s9341_s6 + $0x40] sm:$0xff] }
 0x165   : > { %v2649_v27 = vpack.c.bf16 %v2646_v22, %v2645_v21  ;;  %v7539_v19 = vld [vmem:[%s9341_s6 + $0x30] sm:$0xff]  ;;  %v7528_v21 = vld [vmem:[%s9341_s6 + $0x98] sm:$0xff]  ;;  %v7538_v22 = vld [vmem:[%s9341_s6 + $0x28] sm:$0xff] }
 0x166   : > { %4179 = vmatmul.bf16.vlgmr.msrb.gmra.mxu2 %v4068_v55  ;;  %4353 = vmatpush.bf16.msra.mxu1 %v7496_v51 }
 0x167   : > { %4501 = vmatpush.bf16.msra.mxu2 %v7508_v37  ;;  %4192 = vmatmul.bf16.vlgmr.msrb.gmra.mxu3 %v4072_v56  ;;  %v2651_v29 = vshll.u32 %v2649_v27, 16  ;;  %v7510_v37 = vld [vmem:[#allocation7 + $0x148] sm:$0xff] }
 0x168   : > { %4340 = vmatpush.bf16.msra.mxu0 %v7488_v43  ;;  %4514 = vmatpush.bf16.msra.mxu3 %v7516_v47 }
 0x169   : > { %v2810_v31 = vpop.f32.mrf.mxu2  ;;  %v2653_v32 = vrot.slane %v2651_v29, 5  ;;  %v7526_v29 = vld [vmem:[%s9341_s6 + $0x88] sm:$0xff] }
 0x16a   : > { %4354 = vmatpush.bf16.msra.mxu1 %v7495_v63  ;;  %v2823_v34 = vpop.f32.mrf.mxu3 }
 0x16b   : > { %4502 = vmatpush.bf16.msra.mxu2 %v7507_v49  ;;  %v2824_v36 = vadd.f32 %v2823_v34, %v2810_v31  ;;  %v2661_v38 = vsel %vm2659_vm6, %v2653_v32, %v2660_v35  ;;  %v2997_v31 = vld [vmem:[%s9340_s5] sm:$0x1] }
 0x16c   : > { %4341 = vmatpush.bf16.msra.mxu0 %v7487_v52  ;;  %4515 = vmatpush.bf16.msra.mxu3 %v7515_v57  ;;  %2662 = vst [vmem:[#allocation2] sm:$0x88] %v2661_v38 }
 0x16d   : > { %v2827_v41 = vadd.f32 %v2824_v36, %v2663_v33  ;;  %v7525_v36 = vld [vmem:[%s9341_s6 + $0x80] sm:$0xff] }
 0x16e   : > { %4355 = vmatpush.bf16.msra.mxu1 %v7494_v10  ;;  %v7531_v10 = vld [vmem:[%s9341_s6 + $0xb0] sm:$0xff] }
 0x16f   : > { %4503 = vmatpush.bf16.msra.mxu2 %v7506_v58 }
 0x170   : > { %4342 = vmatpush.bf16.msra.mxu0 %v7486_v0  ;;  %4516 = vmatpush.bf16.msra.mxu3 %v7514_v3  ;;  %v7523_v3 = vld [vmem:[%s9341_s6 + $0x70] sm:$0xff] }
 0x171   : > { %v2812_v47 = vpop.f32.mrf.mxu2 }
 0x172   : > { %4356 = vmatpush.bf16.msra.mxu1 %v7493_v18  ;;  %v2987_v42 = vpop.f32.mrf.mxu1  ;;  %v2825_v49 = vpop.f32.mrf.mxu3  ;;  %v7529_v18 = vld [vmem:[%s9341_s6 + $0xa0] sm:$0xff] }
 0x173   : > { %4504 = vmatpush.bf16.msra.mxu2 %v7505_v7  ;;  %v4198_v54 = vld [vmem:[#allocation2] sm:$0x88] }
 0x174   : > { %4343 = vmatpush.bf16.msra.mxu0 %v7485_v11  ;;  %4517 = vmatpush.bf16.msra.mxu3 %v7513_v14  ;;  %v2974_v39 = vpop.f32.mrf.mxu0  ;;  %v4232_v56 = vunpack.c.l.b16 %v4198_v54  ;;  %v4233_v57 = vunpack.c.h.b16 %v4198_v54  ;;  %v7522_v7 = vld [vmem:[%s9341_s6 + $0x68] sm:$0xff]  ;;  %v7520_v14 = vld [vmem:[%s9341_s6 + $0x58] sm:$0xff] }
 0x175   : > { %v2988_v43 = vadd.f32 %v2987_v42, %v2974_v39  ;;  %v7534_v42 = vld [vmem:[%s9341_s6 + $0x8] sm:$0xff] }
 0x176   : > { %v4234_v59 = vpack.c.b16 %v4232_v56, %v4232_v56  ;;  %v4235_v61 = vpack.c.b16 %v4233_v57, %v4233_v57  ;;  %4694 = vmatpush.bf16.msrb.mxu1 %v7532_v8 }
 0x177   : > { %4505 = vmatpush.bf16.msra.mxu2 %v7504_v16  ;;  %v2991_v46 = vadd.f32 %v2988_v43, %v2827_v41  ;;  %v7540_v16 = vld [vmem:[%s9341_s6 + $0x38] sm:$0xff] }
 0x178   : > { %4518 = vmatpush.bf16.msra.mxu3 %v7512_v20  ;;  %v4236_v63 = vrot.slane %v4234_v59, 3  ;;  %v4237_v0 = vrot.slane %v4235_v61, 3  ;;  %v4396_v1 = vshrl.u32 %v4234_v59, 16  ;;  %v4400_v2 = vshrl.u32 %v4235_v61, 16  ;;  %4609 = vmatpush.bf16.msrb.mxu0 %v7524_v62  ;;  %v7518_v20 = vld [vmem:[%s9341_s6 + $0x48] sm:$0xff] }
 0x179   : > { %v2992_v48 = vmax.f32 %v2991_v46, 0.0  ;;  %v7533_v46 = vld [vmem:[%s9341_s6] sm:$0xff] }
 0x17a   : > { %v2989_v55 = vpop.f32.mrf.mxu1  ;;  %4344 = vmatmul.bf16.vlgmr.msra.gmra.mxu0 %v4236_v63  ;;  %4357 = vmatmul.bf16.vlgmr.msra.gmra.mxu1 %v4237_v0  ;;  %v4398_v12 = vrot.slane %v4396_v1, 3  ;;  %v4402_v4 = vrot.slane %v4400_v2, 3 }
 0x17b   : > { %4506 = vmatpush.bf16.msra.mxu2 %v7503_v24  ;;  %v2993_v51 = vpack.c.bf16 %v2992_v48, %v2992_v48  ;;  %4695 = vmatpush.bf16.msrb.mxu1 %v7531_v10  ;;  %v7527_v24 = vld [vmem:[%s9341_s6 + $0x90] sm:$0xff] }
 0x17c   : > { %4519 = vmatpush.bf16.msra.mxu3 %v7511_v28  ;;  %v2976_v52 = vpop.f32.mrf.mxu0  ;;  %4610 = vmatpush.bf16.msrb.mxu0 %v7523_v3 }
 0x17d   : > { %v2995_v58 = vsel %vm8866_vm5, %v2993_v51, %v2994_v50  ;;  %vm3501_vm5 = vcmask 1041408  }
 0x17e   : > { %2996 = vst [vmem:[#allocation3] sm:$0x1] %v2995_v58 }
 0x17f   : > { %4507 = vmatpush.bf16.msra.mxu2 %v7502_v30  ;;  %4696 = vmatpush.bf16.msrb.mxu1 %v7530_v15  ;;  %v7536_v30 = vld [vmem:[%s9341_s6 + $0x18] sm:$0xff] }
 0x180   : > { %4520 = vmatpush.bf16.msra.mxu3 %v7510_v37  ;;  %4611 = vmatpush.bf16.msrb.mxu0 %v7522_v7  ;;  %v7535_v37 = vld [vmem:[%s9341_s6 + $0x10] sm:$0xff] }
 0x183   : > { %4508 = vmatpush.bf16.msra.mxu2 %v7501_v40  ;;  %4697 = vmatpush.bf16.msrb.mxu1 %v7529_v18 }
 0x184   : > { %4521 = vmatpush.bf16.msra.mxu3 %v7509_v44  ;;  %4612 = vmatpush.bf16.msrb.mxu0 %v7521_v9 }
 0x185   : > { %v3508_v56 = vld [vmem:[#allocation3] sm:$0x1] }
 0x186   : > { %4509 = vmatmul.bf16.vlgmr.msra.gmra.mxu2 %v4398_v12 }
 0x187   : > { %4522 = vmatmul.bf16.vlgmr.msra.gmra.mxu3 %v4402_v4  ;;  %4787 = vmatpush.bf16.msrb.mxu2 %v7540_v16 }
 0x188   : > { %4613 = vmatpush.bf16.msrb.mxu0 %v7520_v14  ;;  %4698 = vmatpush.bf16.msrb.mxu1 %v7528_v21  ;;  %v4023_v21 = vld [vmem:[#allocation3] sm:$0x2] }
 0x189   : > { %v3149_v5 = vpop.f32.mrf.mxu2 }
 0x18a   : > { %v3162_v6 = vpop.f32.mrf.mxu3 }
 0x18b   : > { %4788 = vmatpush.bf16.msrb.mxu2 %v7539_v19  ;;  %v3163_v28 = vadd.f32 %v3162_v6, %v3149_v5 }
 0x18c   : > { %4614 = vmatpush.bf16.msrb.mxu0 %v7519_v17  ;;  %4699 = vmatpush.bf16.msrb.mxu1 %v7527_v24 }
 0x18d   : > { %v3166_v33 = vadd.f32 %v3163_v28, %v2997_v31  ;;  %v7548_v28 = vld [vmem:[%s9341_s6 + $0x78] sm:$0xff]  ;;  %v7545_v31 = vld [vmem:[%s9341_s6 + $0x60] sm:$0xff] }
 0x18e   : > { %4872 = vmatpush.bf16.msrb.mxu3 %v7548_v28  ;;  %v7563_v28 = vld [vmem:[%s9343_s8 + $0x50] sm:$0xff] }
 0x18f   : > { %4789 = vmatpush.bf16.msrb.mxu2 %v7538_v22 }
 0x190   : > { %4615 = vmatpush.bf16.msrb.mxu0 %v7518_v20  ;;  %4700 = vmatpush.bf16.msrb.mxu1 %v7526_v29  ;;  %v7547_v29 = vld [vmem:[%s9341_s6 + $0x70] sm:$0xff] }
 0x191   : > { %v3151_v11 = vpop.f32.mrf.mxu2 }
 0x192   : > { %v3164_v13 = vpop.f32.mrf.mxu3  ;;  %4873 = vmatpush.bf16.msrb.mxu3 %v7547_v29  ;;  %v4715_v29 = vld [vmem:[%s9342_s7] sm:$0x1] }
 0x193   : > { %4790 = vmatpush.bf16.msrb.mxu2 %v7537_v25 }
 0x194   : > { %v3314_v26 = vpop.f32.mrf.mxu0  ;;  %4616 = vmatpush.bf16.msrb.mxu0 %v7517_v23  ;;  %4701 = vmatpush.bf16.msrb.mxu1 %v7525_v36 }
 0x196   : > { %v3327_v27 = vpop.f32.mrf.mxu1  ;;  %4874 = vmatpush.bf16.msrb.mxu3 %v7546_v45  ;;  %v7562_v45 = vld [vmem:[%s9343_s8 + $0x48] sm:$0xff] }
 0x197   : > { %v3328_v32 = vadd.f32 %v3327_v27, %v3314_v26  ;;  %4791 = vmatpush.bf16.msrb.mxu2 %v7536_v30  ;;  %v7556_v30 = vld [vmem:[%s9341_s6 + $0xb8] sm:$0xff] }
 0x198   : > { %4958 = vmatpush.bf16.msra.mxu0 %v7556_v30 }
 0x199   : > { %v3331_v40 = vadd.f32 %v3328_v32, %v3166_v33  ;;  %v7555_v32 = vld [vmem:[%s9341_s6 + $0xb0] sm:$0xff]  ;;  %v7544_v33 = vld [vmem:[%s9341_s6 + $0x58] sm:$0xff] }
 0x19a   : > { %4875 = vmatpush.bf16.msrb.mxu3 %v7545_v31 }
 0x19b   : > { %4792 = vmatpush.bf16.msrb.mxu2 %v7535_v37 }
 0x19c   : > { %v3316_v34 = vpop.f32.mrf.mxu0  ;;  %4959 = vmatpush.bf16.msra.mxu0 %v7555_v32 }
 0x19d   : > { %v7554_v34 = vld [vmem:[%s9341_s6 + $0xa8] sm:$0xff] }
 0x19e   : > { %v3329_v38 = vpop.f32.mrf.mxu1  ;;  %4876 = vmatpush.bf16.msrb.mxu3 %v7544_v33  ;;  %v7561_v33 = vld [vmem:[%s9343_s8 + $0x40] sm:$0xff] }
 0x19f   : > { %4793 = vmatpush.bf16.msrb.mxu2 %v7534_v42  ;;  %v7553_v38 = vld [vmem:[%s9341_s6 + $0xa0] sm:$0xff] }
 0x1a0   : > { %4960 = vmatpush.bf16.msra.mxu0 %v7554_v34  ;;  %v4026_v42 = vld [vmem:[%s9340_s5] sm:$0x1] }
 0x1a3   : > { %4794 = vmatpush.bf16.msrb.mxu2 %v7533_v46 }
 0x1a4   : > { %4961 = vmatpush.bf16.msra.mxu0 %v7553_v38 }
 0x1a9   : > { %v3479_v35 = vpop.f32.mrf.mxu2 }
 0x1aa   : > { %v3492_v39 = vpop.f32.mrf.mxu3 }
 0x1ab   : > { %v3493_v41 = vadd.f32 %v3492_v39, %v3479_v35  ;;  %v7543_v35 = vld [vmem:[%s9341_s6 + $0x50] sm:$0xff]  ;;  %v7542_v39 = vld [vmem:[%s9341_s6 + $0x48] sm:$0xff] }
 0x1ac   : > { %4877 = vmatpush.bf16.msrb.mxu3 %v7543_v35 }
 0x1ad   : > { %v3496_v43 = vadd.f32 %v3493_v41, %v3331_v40  ;;  %v7552_v41 = vld [vmem:[%s9341_s6 + $0x98] sm:$0xff] }
 0x1ae   : > { %4962 = vmatpush.bf16.msra.mxu0 %v7552_v41 }
 0x1af   : > { %v3497_v44 = vmax.f32 %v3496_v43, 0.0 }
 0x1b0   : > { %4878 = vmatpush.bf16.msrb.mxu3 %v7542_v39 }
 0x1b1   : > { %v3498_v47 = vpack.c.bf16 %v3497_v44, %v3497_v44  ;;  %v3481_v48 = vpop.f32.mrf.mxu2  ;;  %v7541_v44 = vld [vmem:[%s9341_s6 + $0x40] sm:$0xff] }
 0x1b2   : > { %v3494_v49 = vpop.f32.mrf.mxu3  ;;  %v3678_v52 = vpop.f32.mrf.mxu1 }
 0x1b3   : > { %v3500_v51 = vrot.slane %v3498_v47, 2  ;;  %v7551_v49 = vld [vmem:[%s9341_s6 + $0x90] sm:$0xff] }
 0x1b4   : > { %v3665_v50 = vpop.f32.mrf.mxu0  ;;  %4879 = vmatpush.bf16.msrb.mxu3 %v7541_v44  ;;  %4963 = vmatpush.bf16.msra.mxu0 %v7551_v49  ;;  %v7566_v49 = vld [vmem:[%s9345_s10 + $0x8] sm:$0xff] }
 0x1b5   : > { %v3504_v54 = vsel %vm3501_vm5, %v3498_v47, %v3500_v51  ;;  %v3679_v12 = vadd.f32 %v3678_v52, %v3665_v50  ;;  %5121 = vmatpush.bf16.msra.mxu2 %v7566_v49 }
 0x1b6   : > { %v3505_v55 = vshll.u32 %v3504_v54, 16 }
 0x1b7   : > { %v3682_v7 = vadd.f32 %v3679_v12, %v3511_v53 }
 0x1b8   : > { %v3509_v57 = vsel %vm8990_vm11, %v3505_v55, %v3508_v56  ;;  %v7550_v56 = vld [vmem:[%s9341_s6 + $0x88] sm:$0xff]  ;;  %vm4710_vm11 = vcmask 516096  }
 0x1b9   : > { %3510 = vst [vmem:[#allocation3] sm:$0x1] %v3509_v57  ;;  %4964 = vmatpush.bf16.msra.mxu0 %v7550_v56 }
 0x1ba   : > { %v3680_v59 = vpop.f32.mrf.mxu1 }
 0x1bb   : > { %v7549_v59 = vld [vmem:[%s9341_s6 + $0x80] sm:$0xff] }
 0x1bc   : > { %v3667_v58 = vpop.f32.mrf.mxu0 }
 0x1bd   : > { %4965 = vmatpush.bf16.msra.mxu0 %v7549_v59 }
 0x1c0   : > { %v4543_v61 = vld [vmem:[#allocation3] sm:$0x1] }
 0x1c1   : > { %4617 = vmatmul.bf16.vlgmr.msrb.gmra.mxu0 %v4543_v61  ;;  %4641 = vst [vmem:[#allocation1] ss:$4 sm:$0xff] %v4543_v61  ;;  %v4716_v63 = vld [vmem:[#allocation3] sm:$0x1] }
 0x1c8   : > { %v4642_v62 = vld.sshfl [vmem:[#allocation1] sm:$0xff pattern:$0x73625140] }
 0x1c9   : > { %4734 = vst [vmem:[#allocation1] ss:$4 sm:$0xff] %v4716_v63  ;;  %v4643_v0 = vshrl.u32 %v4642_v62, 16 }
 0x1ca   : > { %v3843_v6 = vpop.f32.mrf.mxu3 }
 0x1cb   : > { %4702 = vmatmul.bf16.vlgmr.msrb.gmra.mxu1 %v4643_v0 }
 0x1cc   : > { %v3830_v5 = vpop.f32.mrf.mxu2 }
 0x1cd   : > { %v3844_v8 = vadd.f32 %v3843_v6, %v3830_v5 }
 0x1cf   : > { %v3847_v10 = vadd.f32 %v3844_v8, %v3682_v7 }
 0x1d0   : > { %v4735_v1 = vld.sshfl [vmem:[#allocation1] sm:$0xff pattern:$0x73625140] }
 0x1d1   : > { %v4736_v2 = vshrl.u32 %v4735_v1, 16 }
 0x1d2   : > { %v4008_v4 = vpop.f32.mrf.mxu1  ;;  %v3845_v17 = vpop.f32.mrf.mxu3 }
 0x1d3   : > { %4795 = vmatmul.bf16.vlgmr.msrb.gmra.mxu2 %v4736_v2  ;;  %v4712_v17 = vld [vmem:[#allocation4] sm:$0x1] }
 0x1d4   : > { %v3995_v3 = vpop.f32.mrf.mxu0  ;;  %v3832_v16 = vpop.f32.mrf.mxu2 }
 0x1d5   : > { %v4009_v9 = vadd.f32 %v4008_v4, %v3995_v3 }
 0x1d7   : > { %v4012_v13 = vadd.f32 %v4009_v9, %v3847_v10 }
 0x1d9   : > { %v4013_v15 = vmax.f32 %v4012_v13, 0.0 }
 0x1da   : > { %v4010_v14 = vpop.f32.mrf.mxu1 }
 0x1db   : > { %v4014_v18 = vpack.c.bf16 %v4013_v15, %v4013_v15 }
 0x1dc   : > { %v3997_v11 = vpop.f32.mrf.mxu0 }
 0x1dd   : > { %v4016_v19 = vrot.slane %v4014_v18, 2  ;;  %v4542_v11 = vld [vmem:[%s9342_s7] sm:$0x1] }
 0x1df   : > { %v4019_v20 = vsel %vm3501_vm5, %v4014_v18, %v4016_v19 }
 0x1e0   : > { %v4021_v22 = vrot.slane %v4019_v20, 7 }
 0x1e2   : > { %v4024_v23 = vsel %vm9008_vm4, %v4021_v22, %v4023_v21  ;;  %vm4711_vm4 = vmand %vm4710_vm11, %vm650_vm2 }
 0x1e3   : > { %4025 = vst [vmem:[#allocation3] sm:$0x2] %v4024_v23  ;;  %v7560_v23 = vld [vmem:[%s9343_s8 + $0x38] sm:$0xff]  ;;  %vm4982_vm2 = vmand %vm4710_vm11, %vm936_vm9  ;;  %vm5139_vm9 = vcmask 130048  }
 0x1e4   : > { %5028 = vmatpush.bf16.msra.mxu1 %v7560_v23 }
 0x1e9   : > { %v4180_v24 = vpop.f32.mrf.mxu2 }
 0x1ea   : > { %v4193_v25 = vpop.f32.mrf.mxu3  ;;  %v4539_v3 = vld [vmem:[#allocation3] sm:$0x2] }
 0x1eb   : > { %v4194_v40 = vadd.f32 %v4193_v25, %v4180_v24  ;;  %v7559_v24 = vld [vmem:[%s9343_s8 + $0x30] sm:$0xff]  ;;  %v7558_v25 = vld [vmem:[%s9343_s8 + $0x28] sm:$0xff] }
 0x1ec   : > { %5029 = vmatpush.bf16.msra.mxu1 %v7559_v24 }
 0x1ed   : > { %v4197_v46 = vadd.f32 %v4194_v40, %v4026_v42 }
 0x1f0   : > { %5030 = vmatpush.bf16.msra.mxu1 %v7558_v25 }
 0x1f1   : > { %v4182_v26 = vpop.f32.mrf.mxu2 }
 0x1f2   : > { %v4195_v27 = vpop.f32.mrf.mxu3  ;;  %v7557_v26 = vld [vmem:[%s9343_s8 + $0x20] sm:$0xff] }
 0x1f3   : > { %v7564_v27 = vld [vmem:[%s9343_s8 + $0x58] sm:$0xff] }
 0x1f4   : > { %5031 = vmatpush.bf16.msra.mxu1 %v7557_v26 }
 0x1f7   : > { %v4345_v36 = vpop.f32.mrf.mxu0  ;;  %v4358_v37 = vpop.f32.mrf.mxu1 }
 0x1f8   : > { %v4359_v43 = vadd.f32 %v4358_v37, %v4345_v36  ;;  %5082 = vmatpush.bf16.msrb.mxu1 %v7564_v27 }
 0x1fa   : > { %v4362_v52 = vadd.f32 %v4359_v43, %v4197_v46 }
 0x1fc   : > { %5083 = vmatpush.bf16.msrb.mxu1 %v7563_v28 }
 0x1ff   : > { %v4347_v47 = vpop.f32.mrf.mxu0  ;;  %v4360_v48 = vpop.f32.mrf.mxu1 }
 0x200   : > { %5084 = vmatpush.bf16.msrb.mxu1 %v7562_v45 }
 0x204   : > { %5085 = vmatpush.bf16.msrb.mxu1 %v7561_v33 }
 0x209   : > { %v4510_v50 = vpop.f32.mrf.mxu2 }
 0x20a   : > { %v4523_v51 = vpop.f32.mrf.mxu3 }
 0x20b   : > { %v4524_v54 = vadd.f32 %v4523_v51, %v4510_v50  ;;  %v7565_v50 = vld [vmem:[%s9345_s10] sm:$0xff] }
 0x20c   : > { %5122 = vmatpush.bf16.msra.mxu2 %v7565_v50  ;;  %v7567_v51 = vld [vmem:[%s9347_s12] sm:$0xff] }
 0x20d   : > { %v4527_v55 = vadd.f32 %v4524_v54, %v4362_v52  ;;  %5150 = vmatpush.bf16.msra.mxu3 %v7567_v51 }
 0x20f   : > { %v4528_v57 = vmax.f32 %v4527_v55, 0.0  ;;  %v4986_v55 = vld [vmem:[%s9344_s9] sm:$0x1] }
 0x211   : > { %v4529_v58 = vpack.c.bf16 %v4528_v57, %v4528_v57  ;;  %v4512_v61 = vpop.f32.mrf.mxu2 }
 0x212   : > { %v4525_v62 = vpop.f32.mrf.mxu3 }
 0x213   : > { %v4531_v63 = vrot.slane %v4529_v58, 2 }
 0x215   : > { %v4534_v0 = vsel %vm3501_vm5, %v4529_v58, %v4531_v63  ;;  %v5098_v63 = vld [vmem:[%s9346_s11] sm:$0x1] }
 0x216   : > { %v4535_v1 = vshll.u32 %v4534_v0, 16 }
 0x218   : > { %v4537_v2 = vrot.slane %v4535_v1, 7 }
 0x21a   : > { %v4540_v12 = vsel %vm9028_vm12, %v4537_v2, %v4539_v3 }
 0x21b   : > { %4541 = vst [vmem:[#allocation3] sm:$0x2] %v4540_v12 }
 0x222   : > { %v4801_v4 = vld [vmem:[#allocation3] sm:$0x2] }
 0x223   : > { %4819 = vst [vmem:[#allocation1] ss:$4 sm:$0xff] %v4801_v4  ;;  %v4886_v5 = vld [vmem:[#allocation3] sm:$0x2]  ;;  %v5156_v4 = vlaneseq }
 0x22a   : > { %v4820_v53 = vld.sshfl [vmem:[#allocation1] sm:$0xff pattern:$0x73625140] }
 0x22b   : > { %v4822_v6 = vrot.slane %v4820_v53, 1  ;;  %4904 = vst [vmem:[#allocation1] ss:$4 sm:$0xff] %v4886_v5  ;;  %v5157_v53 = vand.u32 127, %v5156_v4  ;;  %v5132_v5 = vld [vmem:[%s9348_s13] sm:$0x1] }
 0x22d   : > { %4880 = vmatmul.bf16.vlgmr.msrb.gmra.mxu3 %v4822_v6  ;;  %vm5158_vm12 = vcmp.lt.s32.totalorder %v5157_v53, 6  ;;  %vm5181_vm7 = vcmp.eq.s32.totalorder %v5157_v53, 7 }
 0x232   : > { %v4905_v7 = vld.sshfl [vmem:[#allocation1] sm:$0xff pattern:$0x73625140] }
 0x233   : > { %v4906_v8 = vshrl.u32 %v4905_v7, 16 }
 0x235   : > { %v4908_v9 = vrot.slane %v4906_v8, 1 }
 0x237   : > { %4966 = vmatmul.bf16.vlgmr.msra.gmra.mxu0 %v4908_v9 }
 0x23e   : > { %v4618_v10 = vpop.f32.mrf.mxu0 }
 0x23f   : > { %v4622_v60 = vadd.f32 %v4618_v10, %v4542_v11 }
 0x246   : > { %v4620_v13 = vpop.f32.mrf.mxu0 }
 0x248   : > { %v4703_v14 = vpop.f32.mrf.mxu1 }
 0x249   : > { %v4707_v15 = vadd.f32 %v4703_v14, %v4622_v60 }
 0x24b   : > { %v4708_v16 = vmax.f32 %v4707_v15, 0.0 }
 0x24d   : > { %v4709_v18 = vpack.c.bf16 %v4708_v16, %v4708_v16 }
 0x24f   : > { %v4713_v19 = vsel %vm4711_vm4, %v4709_v18, %v4712_v17 }
 0x250   : > { %4714 = vst [vmem:[#allocation4] sm:$0x1] %v4713_v19  ;;  %v4705_v20 = vpop.f32.mrf.mxu1 }
 0x251   : > { %v5174_v20 = vstv %s5173_s16 }
 0x252   : > { %vm5175_vm14 = vcmp.eq.s32.totalorder %v5157_v53, %v5174_v20 }
 0x256   : > { %v4796_v21 = vpop.f32.mrf.mxu2 }
 0x257   : > { %v4800_v31 = vadd.f32 %v4796_v21, %v4715_v29  ;;  %v4983_v43 = vld [vmem:[#allocation4] sm:$0x1] }
 0x25e   : > { %v4798_v22 = vpop.f32.mrf.mxu2 }
 0x2b0   : > { %v4881_v30 = vpop.f32.mrf.mxu3 }
 0x2b1   : > { %v4885_v32 = vadd.f32 %v4881_v30, %v4800_v31 }
 0x2b4   : > { %v4967_v34 = vpop.f32.mrf.mxu0 }
 0x2b5   : > { %v4971_v35 = vadd.f32 %v4967_v34, %v4885_v32 }
 0x2b7   : > { %v4972_v36 = vmax.f32 %v4971_v35, 0.0 }
 0x2b8   : > { %v4883_v37 = vpop.f32.mrf.mxu3 }
 0x2b9   : > { %v4973_v38 = vpack.c.bf16 %v4972_v36, %v4972_v36 }
 0x2bb   : > { %v4975_v39 = vrot.slane %v4973_v38, 3 }
 0x2bc   : > { %v4969_v40 = vpop.f32.mrf.mxu0 }
 0x2bd   : > { %v4978_v41 = vsel %vm548_vm1, %v4973_v38, %v4975_v39 }
 0x2be   : > { %v4979_v42 = vshll.u32 %v4978_v41, 16 }
 0x2c0   : > { %v4984_v44 = vsel %vm4982_vm2, %v4979_v42, %v4983_v43 }
 0x2c1   : > { %4985 = vst [vmem:[#allocation4] sm:$0x1] %v4984_v44 }
 0x2c8   : > { %v4987_v46 = vld [vmem:[#allocation4] sm:$0x1] }
 0x2c9   : > { %7114 = vmatmul.msk.bf16.vlgmr.msra.gmra.mxu1 %vm515_vm0, %v4987_v46  ;;  %5047 = vst [vmem:[#allocation1] ss:$9 sm:$0xff] %v4987_v46 }
 0x2d0   : > { %v5048_v47 = vld [vmem:[#allocation1] sm:$0xff] }
 0x2d1   : > { %v5049_v48 = vshrl.u32 %v5048_v47, 16 }
 0x2d9   : > { %7139 = vmatmul.msk.bf16.vlgmr.msrb.gmra.mxu1 %vm515_vm0, %v5049_v48  ;;  %vm5111_vm0 = vcmask 261120  }
 0x346   : > { %v5033_v52 = vpop.f32.mrf.mxu1 }
 0x347   : > { %v5037_v56 = vadd.f32 %v5033_v52, %v4986_v55 }
 0x34e   : > { %v5035_v54 = vpop.f32.mrf.mxu1 }
 0x356   : > { %v5087_v57 = vpop.f32.mrf.mxu1 }
 0x357   : > { %v5091_v58 = vadd.f32 %v5087_v57, %v5037_v56 }
 0x359   : > { %v5092_v59 = vmax.f32 %v5091_v58, 0.0 }
 0x35b   : > { %v5097_v61 = vpack.c.bf16 %v5092_v59, %v5092_v59 }
 0x35d   : > { %7148 = vmatmul.msk.bf16.vlgmr.msra.gmra.mxu2 %vm5111_vm0, %v5097_v61 }
 0x35e   : > { %v5089_v62 = vpop.f32.mrf.mxu1 }
 0x3e0   : > { %v5124_v0 = vpop.f32.mrf.mxu2 }
 0x3e1   : > { %v5125_v1 = vadd.f32 %v5124_v0, %v5098_v63 }
 0x3e3   : > { %v5128_v2 = vmax.f32 %v5125_v1, 0.0 }
 0x3e5   : > { %v5129_v3 = vpack.c.bf16 %v5128_v2, %v5128_v2 }
 0x3e7   : > { %7153 = vmatmul.msk.bf16.vlgmr.msra.gmra.mxu3 %vm5139_vm9, %v5129_v3 }
 0x3e8   : > { %v5126_v12 = vpop.f32.mrf.mxu2 }
 0x46a   : > { %v5152_v6 = vpop.f32.mrf.mxu3 }
 0x46b   : > { %v5153_v7 = vadd.f32 %v5152_v6, %v5132_v5 }
 0x46d   : > { %v5159_v8 = vsel %vm5158_vm12, %v5153_v7, -1e+30 }
 0x46e   : > { %v5160_v9 = vsel %vm548_vm1, %v5159_v8, -inf }
 0x46f   : > { %5161 = vmax.xlane.f32.xlu0 %v5160_v9 }
 0x472   : > { %v5154_v10 = vpop.f32.mrf.mxu3 }
 0x4e2   : > { %v5162_v11 = vpop.xlane.xlu0 %5161 }
 0x4e3   : > { %v5163_v13 = vsub.f32 %v5159_v8, %v5162_v11 }
 0x4e5   : > { %v5164_v60 = vmul.f32 1.442695, %v5163_v13 }
 0x4e7   : > { %7590 = vpow2.f32 %v5164_v60 }
 0x4ed   : > { %v7591_v14 = vpop.eup %7590 }
 0x4ee   : > { %v5166_v15 = vsel %vm5158_vm12, %v7591_v14, 0.0 }
 0x4ef   : > { %v5167_v16 = vsel %vm548_vm1, %v5166_v15, 0.0 }
 0x4f0   : > { %5168 = vadd.xlane.f32.xlu0 %v5167_v16 }
 0x563   : > { %v5169_v17 = vpop.xlane.xlu0 %5168 }
 0x564   : > { %7592 = vlog2.f32 %v5169_v17 }
 0x56a   : > { %v7593_v18 = vpop.eup %7592 }
 0x56b   : > { %v5171_v19 = vmul.f32 0.6931472, %v7593_v18 }
 0x56d   : > { %v5172_v21 = vadd.f32 %v5171_v19, %v5162_v11 }
 0x56f   : > { %v5176_v22 = vsub.f32 %v5153_v7, %v5172_v21 }
 0x571   : > { %v5177_v23 = vsel %vm5175_vm14, %v5176_v22, 0.0 }
 0x572   : > { %v5178_v24 = vsel %vm548_vm1, %v5177_v23, 0.0 }
 0x573   : > { %5179 = vadd.xlane.f32.xlu1 %v5178_v24 }
 0x5e6   : > { %v5180_v25 = vpop.xlane.xlu1 %5179 }
 0x5e7   : > { %v5182_v26 = vsel %vm5181_vm7, %v5180_v25, %v5153_v7 }
 0x5e8   : > { %5183 = vst [vmem:[%s462_s0] sm:$0x1] %v5182_v26 }
 0x5e9 PF: > { %s33_s17 = sadd.s32 1, %s7648_s17  }
 0x5ea   : > { %p30_p7 = scmp.ge.s32.totalorder %s33_s17, 4  }
 0x5ec   :  { %32 = sbr.rel (!%p30_p7) target bundleno = 7 (0x7), region = 115 }
 0x5f1   :  { %5201 = vsyncpa [#allocation8], 1 }
 0x5f2   :  { %5203 = vsyncpa [#allocation8 + $0x1], 1 }

</bundles_post_ra>
